<compile_context>
chip_gen: v7x
topology: tpu7x:2x2x1
jax: 0.10.0
libtpu: 0.0.40
codegen_flags: <defaults>
</compile_context>

<pallas_src>
import math

import jax
import jax.numpy as jnp
from jax.experimental import pallas as pl
from jax.experimental.pallas import tpu as pltpu


# ----------------------------- parameter setup (plain JAX) -----------------------------

def make_pe_table(d_model: int, max_len: int = 20000, dtype=jnp.float32):
    """Same math as PositionalEncoding.__init__ (sinusoidal table, (max_len, d_model))."""
    position = jnp.arange(0, max_len, dtype=jnp.float32)[:, None]
    div_term = jnp.exp(
        jnp.arange(0, d_model, 2, dtype=jnp.float32) * (-math.log(10000.0) / d_model)
    )
    pe = jnp.zeros((max_len, d_model), dtype=jnp.float32)
    pe = pe.at[:, 0::2].set(jnp.sin(position * div_term))
    pe = pe.at[:, 1::2].set(jnp.cos(position * div_term))
    return pe.astype(dtype)


def fold_bias_into_pe(pe_full: jax.Array, bias: jax.Array) -> jax.Array:
    """pe + in_linear.bias, folded offline so the kernel has one fewer operand / add."""
    return pe_full.astype(jnp.float32) + bias.astype(jnp.float32)[None, :]


def precompose_embed_tables(luts, emb_sizes, w, *, npad: int = 128, dtype=jnp.bfloat16):
    """Pre-compose (lut_i * sqrt(d_i)) @ W[rows_i] into a stacked (NF, npad, D) table.

    luts: list of (N_i, d_i) embedding matrices; w: (F, D) with F = sum(d_i).
    Vocab axis is zero-padded to `npad` (=128, one lane-width) for the in-kernel one-hot matmul.
    Total size 6*128*512*bf16 ~= 0.75 MiB -> VMEM resident for the whole kernel.
    """
    tabs, off = [], 0
    for lut, d in zip(luts, emb_sizes):
        n = lut.shape[0]
        assert n <= npad, "vocab must fit the padded one-hot width"
        t = (lut.astype(jnp.float32) * math.sqrt(d)) @ w[off:off + d].astype(jnp.float32)
        tabs.append(jnp.pad(t, ((0, npad - n), (0, 0))))
        off += d
    assert off == w.shape[0]
    return jnp.stack(tabs, axis=0).astype(dtype)          # (NF, npad, D)


# ------------------------------------- helpers -----------------------------------------

def _round_up(n: int, m: int) -> int:
    return ((n + m - 1) // m) * m


def _vmem_limit_bytes() -> int:
    """Generation-aware scoped-VMEM limit (v5e/v6e: 128 MiB physical, v7x: 64 MiB)."""
    cap = 64 * 1024 * 1024
    try:
        cap = int(pltpu.get_tpu_info().vmem_capacity_bytes)
    except Exception:
        pass
    return max(32 * 1024 * 1024, min(96 * 1024 * 1024, (cap * 3) // 4))


def _choose_ts(seq_len: int, batch: int, *, sublane: int = 8,
               mxu_multiple: int = 256, cap: int = 512) -> int:
    """Sequence-tile rows.

    - multiple of `sublane` (8 f32 / 16 bf16) -> valid TPU block tiling
    - once >= 256, a multiple of 256 -> clean MXU cadence on the M axis (v6e/v7x 2x256^2 MXU)
    - capped so blocks stay a few MiB (safe inside v7x's 64 MiB VMEM)
    - the ragged tail is handled by a partial block, never by padding S up to a tile multiple
    - if batch == 1, guarantee >= 2 grid steps so both v7x TensorCores get work
    """
    ts = min(cap, _round_up(seq_len, sublane))
    if ts >= mxu_multiple:
        ts = (ts // mxu_multiple) * mxu_multiple
    if batch == 1 and ts >= seq_len and seq_len > sublane:
        ts = _round_up(-(-seq_len // 2), sublane)
    return max(sublane, ts)


# ---------- kernel A (primary): fused embedding gather + in_linear + PE (+bias) ----------

def _embed_linear_pe_kernel(ids_ref, tab_ref, pe_ref, o_ref):
    """out = sum_i onehot(ids[:, i]) @ tab[i]  +  (pe + bias).

    ids_ref : (TS, NF)       int32 token ids (NF = 6 fields)
    tab_ref : (NF, NPAD, D)  pre-composed (lut_i * sqrt(d_i)) @ W[rows_i], VMEM resident
    pe_ref  : (TS, D)        float32 positional encoding with the in_linear bias folded in
    o_ref   : (TS, D)
    """
    ts, nf = ids_ref.shape
    npad = tab_ref.shape[1]
    ids = ids_ref[...]                                             # (TS, NF) int32
    lane_iota = jax.lax.broadcasted_iota(jnp.int32, (ts, npad), 1)  # hoisted out of the loop
    acc = pe_ref[...].astype(jnp.float32)
    for i in range(nf):                                            # static unroll over 6 fields
        onehot = (ids[:, i:i + 1] == lane_iota).astype(tab_ref.dtype)   # (TS, NPAD)
        acc = acc + jnp.dot(onehot, tab_ref[i], preferred_element_type=jnp.float32)
    o_ref[...] = acc.astype(o_ref.dtype)


def embed_linear_pe_forward(tokens: jax.Array, tables: jax.Array,
                            pe_plus_b: jax.Array) -> jax.Array:
    """Fused Embeddings -> concat -> in_linear -> PositionalEncoding (eval dropout = identity).

    tokens    : (B, S, NF) int32 token ids
    tables    : (NF, NPAD, D) from precompose_embed_tables
    pe_plus_b : (>=S, D) float32, from fold_bias_into_pe
    returns   : (B, S, D) float32  -- the (B, S, 768) embs tensor never hits HBM.
    """
    B, S, NF = tokens.shape
    _, NPAD, D = tables.shape
    if S > pe_plus_b.shape[0]:
        raise ValueError(f"sequence length {S} exceeds PE max_len {pe_plus_b.shape[0]}")

    TS = _choose_ts(S, B, sublane=8, cap=512)
    grid = (pl.cdiv(S, TS), B)     # seq outer: tables / PE blocks constant while b varies

    return pl.pallas_call(
        _embed_linear_pe_kernel,
        out_shape=jax.ShapeDtypeStruct((B, S, D), jnp.float32),
        grid=grid,
        in_specs=[
            pl.BlockSpec((pl.Squeezed(), TS, NF), lambda s, b: (b, s, 0)),
            pl.BlockSpec((NF, NPAD, D), lambda s, b: (0, 0, 0)),    # resident, never re-DMA'd
            pl.BlockSpec((TS, D), lambda s, b: (s, 0)),
        ],
        out_specs=pl.BlockSpec((pl.Squeezed(), TS, D), lambda s, b: (b, s, 0)),
        compiler_params=pltpu.CompilerParams(
            dimension_semantics=("parallel", "parallel"),
            vmem_limit_bytes=_vmem_limit_bytes(),
        ),
    )(tokens, tables, pe_plus_b)


# ------------- kernel B: in_linear + PE for an already-materialized embs tensor -------------

def _linear_pe_kernel(x_ref, w_ref, pe_ref, o_ref):
    # x_ref: (TS, F)  w_ref: (F, D)  pe_ref: (TS, D) f32 (bias folded in)  o_ref: (TS, D)
    acc = jnp.dot(x_ref[...], w_ref[...], preferred_element_type=jnp.float32)
    o_ref[...] = (acc + pe_ref[...].astype(jnp.float32)).astype(o_ref.dtype)


def in_linear_pe_forward(embs: jax.Array, w: jax.Array, bias: jax.Array,
                         pe_full: jax.Array, *, compute_dtype=jnp.bfloat16) -> jax.Array:
    """in_linear(embs) + PE add when `embs` is already materialized.

    embs: (B, S, F); w: (F, D) (transposed from PyTorch's (D, F)); bias: (D,).
    Prefer embed_linear_pe_forward wherever the token ids are available.
    NOTE: in a jitted end-to-end model the embedding producer should emit `compute_dtype`
    directly so the cast below fuses away instead of costing an extra HBM pass.
    """
    B, S, F = embs.shape
    D = w.shape[1]
    if S > pe_full.shape[0]:
        raise ValueError(f"sequence length {S} exceeds PE max_len {pe_full.shape[0]}")

    itemsize = jnp.dtype(compute_dtype).itemsize
    sublane = {4: 8, 2: 16, 1: 32}.get(itemsize, 8)
    TS = _choose_ts(S, B, sublane=sublane, cap=512)

    xc = embs if embs.dtype == compute_dtype else embs.astype(compute_dtype)
    wc = w if w.dtype == compute_dtype else w.astype(compute_dtype)
    pe_plus_b = pe_full[:S, :D].astype(jnp.float32) + bias.astype(jnp.float32)[None, :]

    grid = (pl.cdiv(S, TS), B)
    return pl.pallas_call(
        _linear_pe_kernel,
        out_shape=jax.ShapeDtypeStruct((B, S, D), jnp.float32),
        grid=grid,
        in_specs=[
            pl.BlockSpec((pl.Squeezed(), TS, F), lambda s, b: (b, s, 0)),
            pl.BlockSpec((F, D), lambda s, b: (0, 0)),              # resident weights
            pl.BlockSpec((TS, D), lambda s, b: (s, 0)),
        ],
        out_specs=pl.BlockSpec((pl.Squeezed(), TS, D), lambda s, b: (b, s, 0)),
        compiler_params=pltpu.CompilerParams(
            dimension_semantics=("parallel", "parallel"),
            vmem_limit_bytes=_vmem_limit_bytes(),
        ),
    )(xc, wc, pe_plus_b)


# --------------------- kernel C: standalone PositionalEncoding add ---------------------

def _pe_add_kernel(x_ref, pe_ref, o_ref):
    # same-rank (TS, D) add: pure per-vreg VPU op, no broadcast
    o_ref[...] = x_ref[...] + pe_ref[...]


def positional_encoding_forward(x: jax.Array, pe_full: jax.Array) -> jax.Array:
    """PositionalEncoding.forward (eval mode): x + pe[:S].  x: (B, S, D)."""
    B, S, D = x.shape
    if S > pe_full.shape[0]:
        raise ValueError(f"sequence length {S} exceeds PE max_len {pe_full.shape[0]}")

    sublane = {4: 8, 2: 16, 1: 32}.get(jnp.dtype(x.dtype).itemsize, 8)
    TS = _choose_ts(S, B, sublane=sublane, cap=1024)    # mem-bound add: bigger tiles are cheap
    pe = pe_full[:S, :D]
    if pe.dtype != x.dtype:
        pe = pe.astype(x.dtype)                          # cast once (bandwidth)

    grid = (pl.cdiv(S, TS), B)
    return pl.pallas_call(
        _pe_add_kernel,
        out_shape=jax.ShapeDtypeStruct((B, S, D), x.dtype),
        grid=grid,
        in_specs=[
            pl.BlockSpec((pl.Squeezed(), TS, D), lambda s, b: (b, s, 0)),
            pl.BlockSpec((TS, D), lambda s, b: (s, 0)),
        ],
        out_specs=pl.BlockSpec((pl.Squeezed(), TS, D), lambda s, b: (b, s, 0)),
        # in-place when the caller donates x; XLA inserts a copy otherwise (still correct)
        input_output_aliases={0: 0},
        compiler_params=pltpu.CompilerParams(
            dimension_semantics=("parallel", "parallel"),
            vmem_limit_bytes=_vmem_limit_bytes(),
        ),
    )(x, pe)


# ---------------------------------------- demo ------------------------------------------

if __name__ == "__main__":
    D_MODEL = 512
    EMB_SIZES = [32, 128, 256, 256, 32, 64]          # sum = 768 = in_linear fan-in
    N_TOKEN = [4, 17, 87, 65, 3, 5]
    NF = len(EMB_SIZES)
    B, S = 2, 203                                    # S deliberately NOT a tile multiple
    F = sum(EMB_SIZES)
    MAX_LEN = 1024

    key = jax.random.PRNGKey(0)
    keys = jax.random.split(key, 20)

    tokens = jnp.stack(
        [jax.random.randint(keys[i], (B, S), 0, N_TOKEN[i]) for i in range(NF)],
        axis=-1).astype(jnp.int32)                                           # (B, S, 6)
    luts = [jax.random.normal(keys[NF + i], (N_TOKEN[i], EMB_SIZES[i]), jnp.float32) * 0.02
            for i in range(NF)]
    w = jax.random.normal(keys[12], (F, D_MODEL), jnp.float32) / math.sqrt(F)   # (F, D) layout
    bias = jax.random.normal(keys[13], (D_MODEL,), jnp.float32) * 0.01
    pe_full = make_pe_table(D_MODEL, max_len=MAX_LEN)

    # -------- pure-JAX f32 reference for the forward_hidden front --------
    embs = jnp.concatenate(
        [jnp.take(luts[i], tokens[..., i], axis=0) * math.sqrt(EMB_SIZES[i])
         for i in range(NF)], axis=-1)                                       # (B, S, 768)
    ref_lin = embs @ w + bias[None, None, :]
    ref = ref_lin + pe_full[:S][None, :, :]

    # ---- kernel A (primary): fused embedding gather + in_linear + PE ----
    tables = precompose_embed_tables(luts, EMB_SIZES, w, dtype=jnp.bfloat16)
    pe_plus_b = fold_bias_into_pe(pe_full, bias)
    out_a = jax.block_until_ready(embed_linear_pe_forward(tokens, tables, pe_plus_b))
    assert out_a.shape == (B, S, D_MODEL)
    assert jnp.allclose(out_a, ref, rtol=2e-2, atol=2e-2), "embed+linear+pe kernel mismatch"

    # ---- kernel B: in_linear + PE on already-materialized embs (bf16 MXU path) ----
    out_b = jax.block_until_ready(in_linear_pe_forward(embs, w, bias, pe_full))
    assert jnp.allclose(out_b, ref, rtol=2e-2, atol=2e-2), "in_linear+pe kernel mismatch"

    # ---- kernel C: standalone PositionalEncoding (ragged S handled by a partial block) ----
    out_c = jax.block_until_ready(positional_encoding_forward(ref_lin, pe_full))
    assert jnp.allclose(out_c, ref, atol=1e-5), "pe kernel mismatch"

    # ragged last dim (D not a multiple of 128) exercises the full-extent-lane path
    x2 = jax.random.normal(keys[14], (2, 100, 96), jnp.float32)
    pe2 = make_pe_table(96, max_len=256)
    out2 = jax.block_until_ready(positional_encoding_forward(x2, pe2))
    assert jnp.allclose(out2, x2 + pe2[:100][None, :, :], atol=1e-6), "ragged pe mismatch"

    print("KERNEL_OK")
</pallas_src>

<mosaic_0001>
module attributes {stable_mosaic.version = 11 : i64} {
  func.func @_embed_linear_pe_kernel(%arg0: i32, %arg1: i32, %arg2: memref<1x208x6xi32, #tpu.memory_space<vmem>>, %arg3: memref<6x128x512xbf16, #tpu.memory_space<vmem>>, %arg4: memref<208x512xf32, #tpu.memory_space<vmem>>, %arg5: memref<1x208x512xf32, #tpu.memory_space<vmem>>) attributes {dimension_semantics = [#tpu.dimension_semantics<parallel>, #tpu.dimension_semantics<parallel>], iteration_bounds = array<i64: 1, 2>, scalar_prefetch = 0 : i64, scratch_operands = 0 : i64, tpu.core_type = #tpu.core_type<tc>, window_params = [{transform_indices = @transform_0, window_bounds = array<i64: 1, 208, 6>}, {pipeline_mode = #tpu.pipeline_mode<synchronous>, transform_indices = @transform_1, window_bounds = array<i64: 6, 128, 512>}, {transform_indices = @transform_2, window_bounds = array<i64: 208, 512>}, {transform_indices = @transform_3, window_bounds = array<i64: 1, 208, 512>}]} {
    %c0 = arith.constant 0 : index
    %c0_0 = arith.constant 0 : index
    %c0_1 = arith.constant 0 : index
    %0 = vector.load %arg2[%c0, %c0_0, %c0_1] : memref<1x208x6xi32, #tpu.memory_space<vmem>>, vector<1x208x6xi32>
    %1 = vector.shape_cast %0 : vector<1x208x6xi32> to vector<208x6xi32>
    %2 = tpu.iota {dimensions = array<i32: 1>} : vector<208x128xi32>
    %c0_2 = arith.constant 0 : index
    %c0_3 = arith.constant 0 : index
    %3 = vector.load %arg4[%c0_2, %c0_3] : memref<208x512xf32, #tpu.memory_space<vmem>>, vector<208x512xf32>
    %4 = vector.extract_strided_slice %1 {offsets = [0, 0], sizes = [208, 1], strides = [1, 1]} : vector<208x6xi32> to vector<208x1xi32>
    %5 = vector.broadcast %4 : vector<208x1xi32> to vector<208x128xi32>
    %6 = arith.cmpi eq, %5, %2 : vector<208x128xi32>
    %7 = arith.extui %6 : vector<208x128xi1> to vector<208x128xi32>
    %8 = arith.sitofp %7 : vector<208x128xi32> to vector<208x128xf32>
    %9 = arith.truncf %8 : vector<208x128xf32> to vector<208x128xbf16>
    %c0_4 = arith.constant 0 : index
    %c0_5 = arith.constant 0 : index
    %c0_6 = arith.constant 0 : index
    %10 = vector.load %arg3[%c0_4, %c0_5, %c0_6] : memref<6x128x512xbf16, #tpu.memory_space<vmem>>, vector<1x128x512xbf16>
    %11 = vector.shape_cast %10 : vector<1x128x512xbf16> to vector<128x512xbf16>
    %cst = arith.constant dense<0.000000e+00> : vector<208x512xf32>
    %12 = tpu.matmul %9, %11, %cst {dimension_numbers = #tpu.dot_dimension_numbers<[1], [0], [0], [1], [0, 0, 1, 1], [], []>} : vector<208x128xbf16>, vector<128x512xbf16>, vector<208x512xf32> -> vector<208x512xf32>
    %13 = arith.addf %3, %12 : vector<208x512xf32>
    %14 = vector.extract_strided_slice %1 {offsets = [0, 1], sizes = [208, 1], strides = [1, 1]} : vector<208x6xi32> to vector<208x1xi32>
    %15 = vector.broadcast %14 : vector<208x1xi32> to vector<208x128xi32>
    %16 = arith.cmpi eq, %15, %2 : vector<208x128xi32>
    %17 = arith.extui %16 : vector<208x128xi1> to vector<208x128xi32>
    %18 = arith.sitofp %17 : vector<208x128xi32> to vector<208x128xf32>
    %19 = arith.truncf %18 : vector<208x128xf32> to vector<208x128xbf16>
    %c1 = arith.constant 1 : index
    %c0_7 = arith.constant 0 : index
    %c0_8 = arith.constant 0 : index
    %20 = vector.load %arg3[%c1, %c0_7, %c0_8] : memref<6x128x512xbf16, #tpu.memory_space<vmem>>, vector<1x128x512xbf16>
    %21 = vector.shape_cast %20 : vector<1x128x512xbf16> to vector<128x512xbf16>
    %cst_9 = arith.constant dense<0.000000e+00> : vector<208x512xf32>
    %22 = tpu.matmul %19, %21, %cst_9 {dimension_numbers = #tpu.dot_dimension_numbers<[1], [0], [0], [1], [0, 0, 1, 1], [], []>} : vector<208x128xbf16>, vector<128x512xbf16>, vector<208x512xf32> -> vector<208x512xf32>
    %23 = arith.addf %13, %22 : vector<208x512xf32>
    %24 = vector.extract_strided_slice %1 {offsets = [0, 2], sizes = [208, 1], strides = [1, 1]} : vector<208x6xi32> to vector<208x1xi32>
    %25 = vector.broadcast %24 : vector<208x1xi32> to vector<208x128xi32>
    %26 = arith.cmpi eq, %25, %2 : vector<208x128xi32>
    %27 = arith.extui %26 : vector<208x128xi1> to vector<208x128xi32>
    %28 = arith.sitofp %27 : vector<208x128xi32> to vector<208x128xf32>
    %29 = arith.truncf %28 : vector<208x128xf32> to vector<208x128xbf16>
    %c2 = arith.constant 2 : index
    %c0_10 = arith.constant 0 : index
    %c0_11 = arith.constant 0 : index
    %30 = vector.load %arg3[%c2, %c0_10, %c0_11] : memref<6x128x512xbf16, #tpu.memory_space<vmem>>, vector<1x128x512xbf16>
    %31 = vector.shape_cast %30 : vector<1x128x512xbf16> to vector<128x512xbf16>
    %cst_12 = arith.constant dense<0.000000e+00> : vector<208x512xf32>
    %32 = tpu.matmul %29, %31, %cst_12 {dimension_numbers = #tpu.dot_dimension_numbers<[1], [0], [0], [1], [0, 0, 1, 1], [], []>} : vector<208x128xbf16>, vector<128x512xbf16>, vector<208x512xf32> -> vector<208x512xf32>
    %33 = arith.addf %23, %32 : vector<208x512xf32>
    %34 = vector.extract_strided_slice %1 {offsets = [0, 3], sizes = [208, 1], strides = [1, 1]} : vector<208x6xi32> to vector<208x1xi32>
    %35 = vector.broadcast %34 : vector<208x1xi32> to vector<208x128xi32>
    %36 = arith.cmpi eq, %35, %2 : vector<208x128xi32>
    %37 = arith.extui %36 : vector<208x128xi1> to vector<208x128xi32>
    %38 = arith.sitofp %37 : vector<208x128xi32> to vector<208x128xf32>
    %39 = arith.truncf %38 : vector<208x128xf32> to vector<208x128xbf16>
    %c3 = arith.constant 3 : index
    %c0_13 = arith.constant 0 : index
    %c0_14 = arith.constant 0 : index
    %40 = vector.load %arg3[%c3, %c0_13, %c0_14] : memref<6x128x512xbf16, #tpu.memory_space<vmem>>, vector<1x128x512xbf16>
    %41 = vector.shape_cast %40 : vector<1x128x512xbf16> to vector<128x512xbf16>
    %cst_15 = arith.constant dense<0.000000e+00> : vector<208x512xf32>
    %42 = tpu.matmul %39, %41, %cst_15 {dimension_numbers = #tpu.dot_dimension_numbers<[1], [0], [0], [1], [0, 0, 1, 1], [], []>} : vector<208x128xbf16>, vector<128x512xbf16>, vector<208x512xf32> -> vector<208x512xf32>
    %43 = arith.addf %33, %42 : vector<208x512xf32>
    %44 = vector.extract_strided_slice %1 {offsets = [0, 4], sizes = [208, 1], strides = [1, 1]} : vector<208x6xi32> to vector<208x1xi32>
    %45 = vector.broadcast %44 : vector<208x1xi32> to vector<208x128xi32>
    %46 = arith.cmpi eq, %45, %2 : vector<208x128xi32>
    %47 = arith.extui %46 : vector<208x128xi1> to vector<208x128xi32>
    %48 = arith.sitofp %47 : vector<208x128xi32> to vector<208x128xf32>
    %49 = arith.truncf %48 : vector<208x128xf32> to vector<208x128xbf16>
    %c4 = arith.constant 4 : index
    %c0_16 = arith.constant 0 : index
    %c0_17 = arith.constant 0 : index
    %50 = vector.load %arg3[%c4, %c0_16, %c0_17] : memref<6x128x512xbf16, #tpu.memory_space<vmem>>, vector<1x128x512xbf16>
    %51 = vector.shape_cast %50 : vector<1x128x512xbf16> to vector<128x512xbf16>
    %cst_18 = arith.constant dense<0.000000e+00> : vector<208x512xf32>
    %52 = tpu.matmul %49, %51, %cst_18 {dimension_numbers = #tpu.dot_dimension_numbers<[1], [0], [0], [1], [0, 0, 1, 1], [], []>} : vector<208x128xbf16>, vector<128x512xbf16>, vector<208x512xf32> -> vector<208x512xf32>
    %53 = arith.addf %43, %52 : vector<208x512xf32>
    %54 = vector.extract_strided_slice %1 {offsets = [0, 5], sizes = [208, 1], strides = [1, 1]} : vector<208x6xi32> to vector<208x1xi32>
    %55 = vector.broadcast %54 : vector<208x1xi32> to vector<208x128xi32>
    %56 = arith.cmpi eq, %55, %2 : vector<208x128xi32>
    %57 = arith.extui %56 : vector<208x128xi1> to vector<208x128xi32>
    %58 = arith.sitofp %57 : vector<208x128xi32> to vector<208x128xf32>
    %59 = arith.truncf %58 : vector<208x128xf32> to vector<208x128xbf16>
    %c5 = arith.constant 5 : index
    %c0_19 = arith.constant 0 : index
    %c0_20 = arith.constant 0 : index
    %60 = vector.load %arg3[%c5, %c0_19, %c0_20] : memref<6x128x512xbf16, #tpu.memory_space<vmem>>, vector<1x128x512xbf16>
    %61 = vector.shape_cast %60 : vector<1x128x512xbf16> to vector<128x512xbf16>
    %cst_21 = arith.constant dense<0.000000e+00> : vector<208x512xf32>
    %62 = tpu.matmul %59, %61, %cst_21 {dimension_numbers = #tpu.dot_dimension_numbers<[1], [0], [0], [1], [0, 0, 1, 1], [], []>} : vector<208x128xbf16>, vector<128x512xbf16>, vector<208x512xf32> -> vector<208x512xf32>
    %63 = arith.addf %53, %62 : vector<208x512xf32>
    %c0_22 = arith.constant 0 : index
    %c0_23 = arith.constant 0 : index
    %c0_24 = arith.constant 0 : index
    %64 = vector.load %arg5[%c0_22, %c0_23, %c0_24] : memref<1x208x512xf32, #tpu.memory_space<vmem>>, vector<1x208x512xf32>
    %65 = vector.shape_cast %64 : vector<1x208x512xf32> to vector<208x512xf32>
    %66 = vector.shape_cast %63 : vector<208x512xf32> to vector<1x208x512xf32>
    tpu.vector_store %arg5[%c0_22, %c0_23, %c0_24], %66 {strides = array<i32>} : memref<1x208x512xf32, #tpu.memory_space<vmem>>, vector<1x208x512xf32>,
    return
  }
  func.func @transform_0(%arg0: i32, %arg1: i32) -> (i32, i32, i32) {
    %c0_i32 = arith.constant 0 : i32
    %c0_i32_0 = arith.constant 0 : i32
    return %arg1, %arg0, %c0_i32 : i32, i32, i32
  }
  func.func @transform_1(%arg0: i32, %arg1: i32) -> (i32, i32, i32) {
    %c0_i32 = arith.constant 0 : i32
    %c0_i32_0 = arith.constant 0 : i32
    %c0_i32_1 = arith.constant 0 : i32
    %c0_i32_2 = arith.constant 0 : i32
    return %c0_i32, %c0_i32_0, %c0_i32_1 : i32, i32, i32
  }
  func.func @transform_2(%arg0: i32, %arg1: i32) -> (i32, i32) {
    %c0_i32 = arith.constant 0 : i32
    %c0_i32_0 = arith.constant 0 : i32
    return %arg0, %c0_i32 : i32, i32
  }
  func.func @transform_3(%arg0: i32, %arg1: i32) -> (i32, i32, i32) {
    %c0_i32 = arith.constant 0 : i32
    %c0_i32_0 = arith.constant 0 : i32
    return %arg1, %arg0, %c0_i32 : i32, i32, i32
  }
}

</mosaic_0001>

<bundles_post_ra>
// kernel: tpu_custom_call.1
= control target key start
LH: loop header
LB: loop body
LE: loop exit
PB: predicated region body
PF: predicated region fallthrough
CT: control target
= control target key end

     0   :  { %8 = vsyncpa [#allocation3], 0  ;;  %s8183_s0 = inlined_call_operand.vmem [shape: s32[2,203,6], index: 0, kind: input, shape index: {}]   ;;  %s8184_s1 = inlined_call_operand.hbm [shape: bf16[6,128,512], index: 1, kind: input, shape index: {}]   ;;  %s8185_s2 = inlined_call_operand.hbm [shape: f32[1024,512], index: 2, kind: input, shape index: {}]   ;;  %s8186_s3 = inlined_call_operand.vmem [shape: f32[2,203,512], index: 3, kind: output, shape index: {}]  }
   0x1   :  { %9 = vsyncpa [#allocation5], 0  ;;  %s7171_s12 = smov 0   ;;  %s7173_s13 = smov 0  }
   0x2   :  { %s7175_s14 = smov 0  }
   0x3 LB: > { %s5369_s15 = sadd.s32 4294967295, %s7136_s14   ;;  %s24_s16 = sadd.s32 1, %s7132_s13  ;;  %s7136_s14 = sphi %s7175_s14, %s15_s14   ;;  %s7132_s13 = sphi %s7173_s13, %s8196_s13   ;;  %s7128_s12 = sphi %s7171_s12, %s8195_s12  }
   0x4   : > { %p25_p0 = scmp.ge.s32.totalorder %s24_s16, 2  ;;  %p5371_p1 = scmp.ge.s32.totalorder %s7136_s14, 1 }
   0x5   : > { %p135_p2 = scmp.lt.s32.totalorder %s7136_s14, 3  ;;  %p7196_p4 = scmp.eq.s32.totalorder %s5369_s15, 0 }
   0x6   : > { %s8198_s16 = smov (%p25_p0, %s24_s16), 0  ;;  %s7138_s19 = smov [#allocation2]  }
   0x7   : > { %p7192_p3 = pnand %p5371_p1, %p135_p2  ;;  %s147_s20 = sshll.u32 %s7138_s19, 4  ;;  %s148_s20 = int_to_ptr.vmem [resolvable:$true] %s147_s20 }
   0x8   : > { %s8191_s18 = scalar_select %p7196_p4, 1, 0 }
   0x9   : > { %s8190_s17 = scalar_select %p7192_p3, 1, 0 }
   0xa   : > { %p6676_p5 = pneg %p7192_p3  ;;  %s7139_s22 = smov [#allocation4]  }
   0xb   : > { %s171_s23 = sshll.u32 %s7139_s22, 4  ;;  %s7050_s26 = scalar_lea.hbm %s8184_s1, 24576  ;;  %s7208_s23 = int_to_ptr.vmem [resolvable:$true] %s171_s23 }
   0xc   : > { %p7204_p6 = pnand %p7196_p4, %p6676_p5  ;;  %p7051_p7 = scmp.ne.s32.totalorder %s8184_s1, %s7050_s26 }
   0xd   : > { %p7057_p11 = scmp.lt.u32.totalorder %s7050_s26, %s8184_s1 }
   0xe   : > { %p7052_p8 = pneg %p7204_p6 }
  0x10   : > { %p7053_p9 = pnand %p7052_p8, %p7051_p7 }
  0x12   : > { %p7054_p10 = pneg %p7053_p9 }
  0x14   : > { %p7059_p12 = pnand %p7057_p11, %p7054_p10 }
  0x16   : > { %7062 = shalt.err (!%p7059_p12)
}
  0x17   : > { %s7063_s4 = scalar_lea.vmem %s148_s20, 24576  ;;  %p7071_p2 = scmp.lt.s32.totalorder %s148_s20, %s148_s20 }
  0x18   : > { %p7064_p13 = scmp.ne.s32.totalorder %s148_s20, %s7063_s4  ;;  %p7072_p5 = scmp.lt.s32.totalorder %s7063_s4, %s7063_s4 }
  0x1a   : > { %p7066_p0 = pnand %p7064_p13, %p7052_p8  ;;  %p7073_p4 = por %p7072_p5, %p7071_p2 }
  0x1c   : > { %p7067_p1 = pneg %p7066_p0 }
  0x1e   : > { %p7074_p3 = pnand %p7073_p4, %p7067_p1 }
  0x20   : > { %7077 = shalt.err (!%p7074_p3)
}
  0x21   : > { %s7140_s5 = smov 256   ;;  %s7141_s6 = smov 16  }
  0x22   : > { %6679 = dma.hbm_to_vmem [thread:$0]  (!%p7204_p6), %s8184_s1, 24576, %s148_s20, [#allocation3], %s7140_s5, %s7140_s5, %s7141_s6  }
  0x23   : > { %s7078_s11 = scalar_lea.hbm %s8185_s2, 13312  ;;  %s7083_s25 = scalar_lea.hbm %s8185_s2, 65536 }
  0x24   : > { %p7079_p7 = scmp.ne.s32.totalorder %s8185_s2, %s7078_s11  ;;  %p7084_p9 = scmp.lt.u32.totalorder %s7083_s25, %s7078_s11 }
  0x25   : > { %p7085_p10 = scmp.lt.u32.totalorder %s7078_s11, %s8185_s2 }
  0x26   : > { %p7081_p3 = pnand %p7079_p7, %p7052_p8 }
  0x27   : > { %p7086_p11 = por %p7085_p10, %p7084_p9 }
  0x28   : > { %p7082_p4 = pneg %p7081_p3 }
  0x2a   : > { %p7087_p12 = pnand %p7086_p11, %p7082_p4 }
  0x2c   : > { %7090 = shalt.err (!%p7087_p12)
}
  0x2d   : > { %s7091_s20 = scalar_lea.vmem %s7208_s23, 13312  ;;  %p7099_p2 = scmp.lt.s32.totalorder %s7208_s23, %s7208_s23 }
  0x2e   : > { %p7092_p13 = scmp.ne.s32.totalorder %s7208_s23, %s7091_s20  ;;  %p7100_p5 = scmp.lt.s32.totalorder %s7091_s20, %s7091_s20 }
  0x30   : > { %p7094_p0 = pnand %p7092_p13, %p7052_p8  ;;  %p7101_p7 = por %p7100_p5, %p7099_p2 }
  0x32   : > { %p7095_p1 = pneg %p7094_p0 }
  0x34   : > { %p7102_p3 = pnand %p7101_p7, %p7095_p1 }
  0x36   : > { %7105 = shalt.err (!%p7102_p3)
}
  0x37   : > { %s7142_s28 = smov 512   ;;  %s7143_s29 = smov 32  }
  0x38   : > { %6682 = dma.hbm_to_vmem [thread:$0]  (!%p7204_p6), %s8185_s2, 13312, %s7208_s23, [#allocation5], %s7142_s28, %s7142_s28, %s7143_s29  }
  0x39   : > { %p8193_p4 = scmp.ne.s32.totalorder %s8190_s17, 0 }
  0x3a   : > { %p8194_p8 = scmp.ne.s32.totalorder (!%p8193_p4), %s8191_s18, 0 }
  0x3b   : > { %200 = sbr.rel (%p8193_p4) target bundleno = 1045 (0x415), region = 32 }
  0x42   : > { %7119 = dma.done.wait (%p8194_p8), [#allocation3], 24576  }
  0x43   : > { %7121 = vsyncadd (%p8194_p8), [#allocation3], 4294942720 }
  0x44   : > { %7123 = dma.done.wait (%p8194_p8), [#allocation5], 13312  }
  0x45   : > { %7125 = vsyncadd (%p8194_p8), [#allocation5], 4294953984  ;;  %p238_p9 = scmp.lt.s32.totalorder %s7128_s12, 1  ;;  %v7144_v0 = vmov 0   ;;  %v6736_v9 = vld [vmem:[#allocation2 + $0x4] ss:$16 sps:$4 sm:$0xff]   ;;  %v291_v63 = vlaneseq }
  0x46   : > { %6725 = vset.pattern.permute.xlu1 %v7144_v0  ;;  %6724 = vset.pattern.permute.xlu0 %v7144_v0  ;;  %v6738_v10 = vld [vmem:[#allocation2 + $0xc] ss:$16 sps:$4 sm:$0xff]   ;;  %v6740_v11 = vld [vmem:[#allocation2] ss:$16 sps:$4 sm:$0xff]   ;;  %v6741_v12 = vld [vmem:[#allocation2 + $0x8] ss:$16 sps:$4 sm:$0xff]  }
  0x47   : > { %s8200_s12 = smov (!%p238_p9, %s7128_s12), 1  ;;  %790 = vmatprep.mubr.bf16.mxu0 %v7144_v0  ;;  %953 = vmatprep.mubr.bf16.mxu1 %v7144_v0  ;;  %v6742_v15 = vld [vmem:[#allocation2 + $0x24] ss:$16 sps:$4 sm:$0xff]   ;;  %v6744_v16 = vld [vmem:[#allocation2 + $0x2c] ss:$16 sps:$4 sm:$0xff]   ;;  %v7145_v61 = vmov 1  }
  0x48   : > { %s6666_s17 = smul.u32 208, %s8200_s12  ;;  %758 = vmatprep.subr.bf16.mxu0 %v6736_v9  ;;  %921 = vmatprep.subr.bf16.mxu1 %v6738_v10  ;;  %v6746_v17 = vld [vmem:[#allocation2 + $0x20] ss:$16 sps:$4 sm:$0xff]   ;;  %v6747_v18 = vld [vmem:[#allocation2 + $0x28] ss:$16 sps:$4 sm:$0xff]   ;;  %v7146_v62 = vmov 2  }
  0x49   : > { %759 = vmatpush1.bf16.msra.mxu0 %v6740_v11  ;;  %922 = vmatpush1.bf16.msra.mxu1 %v6741_v12  ;;  %v6748_v19 = vld [vmem:[#allocation2 + $0x44] ss:$16 sps:$4 sm:$0xff]   ;;  %v6750_v20 = vld [vmem:[#allocation2 + $0x4c] ss:$16 sps:$4 sm:$0xff]   ;;  %v6752_v22 = vld [vmem:[#allocation2 + $0x40] ss:$16 sps:$4 sm:$0xff]  }
  0x4a   : > { %s7282_s18 = scalar_lea.vmem %s8183_s0, %s6666_s17  ;;  %760 = vmatprep.subr.bf16.mxu0 %v6742_v15  ;;  %923 = vmatprep.subr.bf16.mxu1 %v6744_v16  ;;  %v6753_v24 = vld [vmem:[#allocation2 + $0x48] ss:$16 sps:$4 sm:$0xff]   ;;  %v6754_v25 = vld [vmem:[#allocation2 + $0x64] ss:$16 sps:$4 sm:$0xff]   ;;  %v6756_v26 = vld [vmem:[#allocation2 + $0x6c] ss:$16 sps:$4 sm:$0xff]  }
  0x4b   : > { %v7285_v1 = vld [vmem:[%s7282_s18 + $0x10] sm:$0xff]  ;;  %v7288_v2 = vld [vmem:[%s7282_s18] sm:$0xff]  ;;  %v7293_v3 = vld [vmem:[%s7282_s18 + $0x18] sm:$0xff]  ;;  %v7426_v10 = vand.u32 127, %v291_v63  ;;  %s6667_s5 = smul.u32 832, %s8200_s12 }
  0x4c   : > { %404 = vperm.xlu1 %6725, %v7285_v1   ;;  %398 = vperm.xlu0 %6724, %v7288_v2   ;;  %v7296_v4 = vld [vmem:[%s7282_s18 + $0x8] sm:$0xff]  ;;  %v7304_v6 = vld [vmem:[%s7282_s18 + $0x20] sm:$0xff]  ;;  %v7307_v7 = vld [vmem:[%s7282_s18 + $0x38] sm:$0xff] }
  0x4d   : > { %v7301_v5 = vld [vmem:[%s7282_s18 + $0x28] sm:$0xff]  ;;  %v7310_v8 = vld [vmem:[%s7282_s18 + $0x30] sm:$0xff]  ;;  %v7318_v14 = vld [vmem:[%s7282_s18 + $0x40] sm:$0xff]  ;;  %761 = vmatpush1.bf16.msra.mxu0 %v6746_v17  ;;  %924 = vmatpush1.bf16.msra.mxu1 %v6747_v18  ;;  %s8068_s8 = scalar_lea.vmem %s8186_s3, %s6667_s5 }
  0x4e   : > { %v7315_v13 = vld [vmem:[%s7282_s18 + $0x48] sm:$0xff]  ;;  %v7323_v21 = vld [vmem:[%s7282_s18 + $0x58] sm:$0xff]  ;;  %v7328_v23 = vld [vmem:[%s7282_s18 + $0x50] sm:$0xff]  ;;  %762 = vmatprep.subr.bf16.mxu0 %v6748_v19  ;;  %925 = vmatprep.subr.bf16.mxu1 %v6750_v20  ;;  %v7147_v19 = vmov 1.0|1.0  }
  0x4f   : > { %v6758_v27 = vld [vmem:[#allocation2 + $0x60] ss:$16 sps:$4 sm:$0xff]   ;;  %v7333_v28 = vld [vmem:[%s7282_s18 + $0x68] sm:$0xff]  ;;  %v6760_v31 = vld [vmem:[#allocation2 + $0x84] ss:$16 sps:$4 sm:$0xff]  }
  0x50   : > { %407 = vperm.xlu1 %6725, %v7293_v3   ;;  %401 = vperm.xlu0 %6724, %v7296_v4   ;;  %v7336_v29 = vld [vmem:[%s7282_s18 + $0x60] sm:$0xff]  ;;  %v6759_v30 = vld [vmem:[#allocation2 + $0x68] ss:$16 sps:$4 sm:$0xff]   ;;  %v6762_v32 = vld [vmem:[#allocation2 + $0x8c] ss:$16 sps:$4 sm:$0xff]  }
  0x51   : > { %763 = vmatpush1.bf16.msra.mxu0 %v6752_v22  ;;  %926 = vmatpush1.bf16.msra.mxu1 %v6753_v24  ;;  %v7339_v33 = vld [vmem:[%s7282_s18 + $0x78] sm:$0xff]  ;;  %v6764_v34 = vld [vmem:[#allocation2 + $0x80] ss:$16 sps:$4 sm:$0xff]   ;;  %v6766_v37 = vld [vmem:[#allocation2 + $0xa4] ss:$16 sps:$4 sm:$0xff]  }
  0x52   : > { %764 = vmatprep.subr.bf16.mxu0 %v6754_v25  ;;  %927 = vmatprep.subr.bf16.mxu1 %v6756_v26  ;;  %v7344_v35 = vld [vmem:[%s7282_s18 + $0x70] sm:$0xff]  ;;  %v6765_v36 = vld [vmem:[#allocation2 + $0x88] ss:$16 sps:$4 sm:$0xff]   ;;  %v6768_v38 = vld [vmem:[#allocation2 + $0xac] ss:$16 sps:$4 sm:$0xff]  }
  0x53   : > { %v6770_v39 = vld [vmem:[#allocation2 + $0xa0] ss:$16 sps:$4 sm:$0xff]   ;;  %v7349_v40 = vld [vmem:[%s7282_s18 + $0x88] sm:$0xff]  ;;  %v6772_v43 = vld [vmem:[#allocation2 + $0xc4] ss:$16 sps:$4 sm:$0xff]  }
  0x54   : > { %413 = vperm.xlu1 %6725, %v7301_v5   ;;  %410 = vperm.xlu0 %6724, %v7304_v6   ;;  %v7352_v41 = vld [vmem:[%s7282_s18 + $0x80] sm:$0xff]  ;;  %v6771_v42 = vld [vmem:[#allocation2 + $0xa8] ss:$16 sps:$4 sm:$0xff]   ;;  %v6774_v44 = vld [vmem:[#allocation2 + $0xcc] ss:$16 sps:$4 sm:$0xff]  }
  0x55   : > { %765 = vmatpush1.bf16.msra.mxu0 %v6758_v27  ;;  %928 = vmatpush1.bf16.msra.mxu1 %v6759_v30  ;;  %v7355_v45 = vld [vmem:[%s7282_s18 + $0x98] sm:$0xff]  ;;  %v6776_v46 = vld [vmem:[#allocation2 + $0xc0] ss:$16 sps:$4 sm:$0xff]   ;;  %v6778_v49 = vld [vmem:[#allocation2 + $0xe4] ss:$16 sps:$4 sm:$0xff]  }
  0x56   : > { %766 = vmatprep.subr.bf16.mxu0 %v6760_v31  ;;  %929 = vmatprep.subr.bf16.mxu1 %v6762_v32  ;;  %v7360_v47 = vld [vmem:[%s7282_s18 + $0x90] sm:$0xff]  ;;  %v6777_v48 = vld [vmem:[#allocation2 + $0xc8] ss:$16 sps:$4 sm:$0xff]   ;;  %v6780_v50 = vld [vmem:[#allocation2 + $0xec] ss:$16 sps:$4 sm:$0xff]  }
  0x57   : > { %v7363_v51 = vld [vmem:[%s7282_s18 + $0xa8] sm:$0xff]  ;;  %v7366_v52 = vld [vmem:[%s7282_s18 + $0xa0] sm:$0xff]  ;;  %v7371_v57 = vld [vmem:[%s7282_s18 + $0xb8] sm:$0xff] }
  0x58   : > { %419 = vperm.xlu1 %6725, %v7307_v7   ;;  %416 = vperm.xlu0 %6724, %v7310_v8   ;;  %v6782_v53 = vld [vmem:[#allocation2 + $0xe0] ss:$16 sps:$4 sm:$0xff]   ;;  %v6783_v54 = vld [vmem:[#allocation2 + $0xe8] ss:$16 sps:$4 sm:$0xff]   ;;  %v6786_v55 = vld [vmem:[#allocation2 + $0x104] ss:$16 sps:$4 sm:$0xff]  }
  0x59   : > { %767 = vmatpush1.bf16.msra.mxu0 %v6764_v34  ;;  %930 = vmatpush1.bf16.msra.mxu1 %v6765_v36  ;;  %v6789_v56 = vld [vmem:[#allocation2 + $0x10c] ss:$16 sps:$4 sm:$0xff]   ;;  %v7374_v58 = vld [vmem:[%s7282_s18 + $0xb0] sm:$0xff]  ;;  %v7384_v60 = vld [vmem:[%s7282_s18 + $0xc0] sm:$0xff] }
  0x5a   : > { %768 = vmatprep.subr.bf16.mxu0 %v6766_v37  ;;  %931 = vmatprep.subr.bf16.mxu1 %v6768_v38  ;;  %v7381_v59 = vld [vmem:[%s7282_s18 + $0xc8] sm:$0xff]  ;;  %v6784_v15 = vld [vmem:[#allocation2 + $0x100] ss:$16 sps:$4 sm:$0xff]   ;;  %v6792_v17 = vld [vmem:[#allocation2 + $0x124] ss:$16 sps:$4 sm:$0xff]  }
  0x5b   : > { %v6787_v16 = vld [vmem:[#allocation2 + $0x108] ss:$16 sps:$4 sm:$0xff]   ;;  %v6795_v18 = vld [vmem:[#allocation2 + $0x12c] ss:$16 sps:$4 sm:$0xff]   ;;  %v6790_v20 = vld [vmem:[#allocation2 + $0x120] ss:$16 sps:$4 sm:$0xff]  }
  0x5c   : > { %425 = vperm.xlu1 %6725, %v7315_v13   ;;  %422 = vperm.xlu0 %6724, %v7318_v14   ;;  %v6793_v22 = vld [vmem:[#allocation2 + $0x128] ss:$16 sps:$4 sm:$0xff]   ;;  %v6798_v24 = vld [vmem:[#allocation2 + $0x144] ss:$16 sps:$4 sm:$0xff]   ;;  %v6801_v25 = vld [vmem:[#allocation2 + $0x14c] ss:$16 sps:$4 sm:$0xff]  }
  0x5d   : > { %769 = vmatpush1.bf16.msra.mxu0 %v6770_v39  ;;  %932 = vmatpush1.bf16.msra.mxu1 %v6771_v42  ;;  %v6796_v27 = vld [vmem:[#allocation2 + $0x140] ss:$16 sps:$4 sm:$0xff]   ;;  %v6799_v30 = vld [vmem:[#allocation2 + $0x148] ss:$16 sps:$4 sm:$0xff]   ;;  %v6804_v31 = vld [vmem:[#allocation2 + $0x164] ss:$16 sps:$4 sm:$0xff]  }
  0x5e   : > { %770 = vmatprep.subr.bf16.mxu0 %v6772_v43  ;;  %933 = vmatprep.subr.bf16.mxu1 %v6774_v44  ;;  %v6807_v32 = vld [vmem:[#allocation2 + $0x16c] ss:$16 sps:$4 sm:$0xff]   ;;  %v6802_v37 = vld [vmem:[#allocation2 + $0x160] ss:$16 sps:$4 sm:$0xff]   ;;  %v6805_v38 = vld [vmem:[#allocation2 + $0x168] ss:$16 sps:$4 sm:$0xff]  }
  0x5f   : > { %v6810_v39 = vld [vmem:[#allocation2 + $0x184] ss:$16 sps:$4 sm:$0xff]   ;;  %v6813_v42 = vld [vmem:[#allocation2 + $0x18c] ss:$16 sps:$4 sm:$0xff]   ;;  %v6808_v43 = vld [vmem:[#allocation2 + $0x180] ss:$16 sps:$4 sm:$0xff]  }
  0x60   : > { %431 = vperm.xlu1 %6725, %v7323_v21   ;;  %428 = vperm.xlu0 %6724, %v7328_v23   ;;  %v6811_v44 = vld [vmem:[#allocation2 + $0x188] ss:$16 sps:$4 sm:$0xff]   ;;  %v6828_v63 = vld [vmem:[#allocation2 + $0x1e4] ss:$16 sps:$4 sm:$0xff]  }
  0x61   : > { %771 = vmatpush1.bf16.msra.mxu0 %v6776_v46  ;;  %934 = vmatpush1.bf16.msra.mxu1 %v6777_v48  ;;  %v6816_v46 = vld [vmem:[#allocation2 + $0x1a4] ss:$16 sps:$4 sm:$0xff]   ;;  %v6819_v48 = vld [vmem:[#allocation2 + $0x1ac] ss:$16 sps:$4 sm:$0xff]  }
  0x62   : > { %772 = vmatprep.subr.bf16.mxu0 %v6778_v49  ;;  %935 = vmatprep.subr.bf16.mxu1 %v6780_v50 }
  0x64   : > { %437 = vperm.xlu1 %6725, %v7333_v28   ;;  %434 = vperm.xlu0 %6724, %v7336_v29  }
  0x65   : > { %773 = vmatpush1.bf16.msra.mxu0 %v6782_v53  ;;  %936 = vmatpush1.bf16.msra.mxu1 %v6783_v54  ;;  %v6814_v53 = vld [vmem:[#allocation2 + $0x1a0] ss:$16 sps:$4 sm:$0xff]   ;;  %v6817_v54 = vld [vmem:[#allocation2 + $0x1a8] ss:$16 sps:$4 sm:$0xff]  }
  0x66   : > { %1550 = vmatprep.subr.bf16.mxu0 %v6786_v55  ;;  %1713 = vmatprep.subr.bf16.mxu1 %v6789_v56  ;;  %v6822_v55 = vld [vmem:[#allocation2 + $0x1c4] ss:$16 sps:$4 sm:$0xff]   ;;  %v6825_v56 = vld [vmem:[#allocation2 + $0x1cc] ss:$16 sps:$4 sm:$0xff]  }
  0x68   : > { %443 = vperm.xlu1 %6725, %v7339_v33   ;;  %440 = vperm.xlu0 %6724, %v7344_v35  }
  0x6c   : > { %449 = vperm.xlu1 %6725, %v7349_v40   ;;  %446 = vperm.xlu0 %6724, %v7352_v41  }
  0x70   : > { %455 = vperm.xlu1 %6725, %v7355_v45   ;;  %452 = vperm.xlu0 %6724, %v7360_v47  }
  0x74   : > { %461 = vperm.xlu1 %6725, %v7363_v51   ;;  %458 = vperm.xlu0 %6724, %v7366_v52  }
  0x78   : > { %467 = vperm.xlu1 %6725, %v7371_v57   ;;  %464 = vperm.xlu0 %6724, %v7374_v58  }
  0x7c   : > { %473 = vperm.xlu1 %6725, %v7381_v59   ;;  %470 = vperm.xlu0 %6724, %v7384_v60  }
  0x80   : > { %6727 = vset.pattern.permute.xlu1 %v7145_v61  ;;  %6726 = vset.pattern.permute.xlu0 %v7145_v61  ;;  %v6820_v61 = vld [vmem:[#allocation2 + $0x1c0] ss:$16 sps:$4 sm:$0xff]  }
  0x81   : > { %1192 = vperm.xlu1 %6727, %v7296_v4   ;;  %1189 = vperm.xlu0 %6726, %v7288_v2  }
  0x85   : > { %1195 = vperm.xlu1 %6727, %v7285_v1   ;;  %1198 = vperm.xlu0 %6726, %v7293_v3  }
  0x89   : > { %1201 = vperm.xlu1 %6727, %v7304_v6   ;;  %1204 = vperm.xlu0 %6726, %v7301_v5  }
  0x8d   : > { %1207 = vperm.xlu1 %6727, %v7310_v8   ;;  %1210 = vperm.xlu0 %6726, %v7307_v7  }
  0x91   : > { %1213 = vperm.xlu1 %6727, %v7318_v14   ;;  %1216 = vperm.xlu0 %6726, %v7315_v13  }
  0x95   : > { %1219 = vperm.xlu1 %6727, %v7328_v23   ;;  %1222 = vperm.xlu0 %6726, %v7323_v21  }
  0x99   : > { %1225 = vperm.xlu1 %6727, %v7336_v29   ;;  %1228 = vperm.xlu0 %6726, %v7333_v28  }
  0x9d   : > { %1231 = vperm.xlu1 %6727, %v7344_v35   ;;  %1234 = vperm.xlu0 %6726, %v7339_v33  }
  0xa1   : > { %1237 = vperm.xlu1 %6727, %v7352_v41   ;;  %1240 = vperm.xlu0 %6726, %v7349_v40  }
  0xa5   : > { %1243 = vperm.xlu1 %6727, %v7360_v47   ;;  %1246 = vperm.xlu0 %6726, %v7355_v45  }
  0xa9   : > { %1249 = vperm.xlu1 %6727, %v7366_v52   ;;  %1252 = vperm.xlu0 %6726, %v7363_v51  }
  0xad   : > { %1255 = vperm.xlu1 %6727, %v7374_v58   ;;  %1258 = vperm.xlu0 %6726, %v7371_v57  }
  0xb1   : > { %1261 = vperm.xlu1 %6727, %v7384_v60   ;;  %1264 = vperm.xlu0 %6726, %v7381_v59  }
  0xb5   : > { %6728 = vset.pattern.permute.xlu1 %v7146_v62  ;;  %6729 = vset.pattern.permute.xlu0 %v7146_v62  ;;  %v6823_v62 = vld [vmem:[#allocation2 + $0x1c8] ss:$16 sps:$4 sm:$0xff]  }
  0xb6   : > { %1981 = vperm.xlu1 %6728, %v7288_v2   ;;  %1984 = vperm.xlu0 %6729, %v7296_v4  }
  0xba   : > { %1987 = vperm.xlu1 %6728, %v7285_v1   ;;  %1993 = vperm.xlu0 %6729, %v7304_v6  }
  0xbe   : > { %1990 = vperm.xlu1 %6728, %v7293_v3   ;;  %1999 = vperm.xlu0 %6729, %v7310_v8  }
  0xc2   : > { %1996 = vperm.xlu1 %6728, %v7301_v5   ;;  %2005 = vperm.xlu0 %6729, %v7318_v14  }
  0xc6   : > { %2002 = vperm.xlu1 %6728, %v7307_v7   ;;  %2011 = vperm.xlu0 %6729, %v7328_v23  }
  0xca   : > { %2008 = vperm.xlu1 %6728, %v7315_v13   ;;  %2017 = vperm.xlu0 %6729, %v7336_v29  }
  0xcb   : > { %v399_v9 = vpop.permute.xlu0 %398  ;;  %v405_v12 = vpop.permute.xlu1 %404 }
  0xcc   : > { %vm475_vm1 = vcmp.eq.s32.totalorder %v399_v9, %v7426_v10  ;;  %vm477_vm3 = vcmp.eq.s32.totalorder %v405_v12, %v7426_v10  ;;  %v6831_v9 = vld [vmem:[#allocation2 + $0x1ec] ss:$16 sps:$4 sm:$0xff]  }
  0xce   : > { %2014 = vperm.xlu1 %6728, %v7323_v21   ;;  %2023 = vperm.xlu0 %6729, %v7344_v35  }
  0xcf   : > { %v402_v11 = vpop.permute.xlu0 %401  ;;  %v408_v26 = vpop.permute.xlu1 %407 }
  0xd0   : > { %vm476_vm0 = vcmp.eq.s32.totalorder %v402_v11, %v7426_v10  ;;  %vm478_vm4 = vcmp.eq.s32.totalorder %v408_v26, %v7426_v10 }
  0xd1   : > { %vm5438_vm2 = vmpackc.low %vm476_vm0, %vm475_vm1 }
  0xd2   : > { %2020 = vperm.xlu1 %6728, %v7333_v28   ;;  %2029 = vperm.xlu0 %6729, %v7352_v41   ;;  %vm5440_vm5 = vmpackc.low %vm478_vm4, %vm477_vm3 }
  0xd3   : > { %5439 = vmatmul.mubr.msk.bf16.vlgmr.msra.gmra.mrb[0].mxu0 %vm5438_vm2, %v7147_v19  ;;  %5465 = vmatmul.mubr.msk.bf16.vlgmr.msra.gmra.mrb[0].mxu1 %vm5438_vm2, %v7147_v19  ;;  %v414_v34 = vpop.permute.xlu1 %413  ;;  %v411_v36 = vpop.permute.xlu0 %410 }
  0xd4   : > { %1551 = vmatpush1.bf16.msra.mxu0 %v6784_v15  ;;  %1714 = vmatpush1.bf16.msra.mxu1 %v6787_v16  ;;  %vm480_vm6 = vcmp.eq.s32.totalorder %v414_v34, %v7426_v10  ;;  %vm479_vm7 = vcmp.eq.s32.totalorder %v411_v36, %v7426_v10  ;;  %v6826_v15 = vld [vmem:[#allocation2 + $0x1e0] ss:$16 sps:$4 sm:$0xff]   ;;  %v6829_v16 = vld [vmem:[#allocation2 + $0x1e8] ss:$16 sps:$4 sm:$0xff]  }
  0xd5   : > { %800 = vmatprep.mubr.bf16.mxu0 %v7144_v0  ;;  %963 = vmatprep.mubr.bf16.mxu1 %v7144_v0  ;;  %vm5442_vm8 = vmpackc.low %vm480_vm6, %vm479_vm7  ;;  %v7559_v34 = vld [vmem:[%s7282_s18 + $0x8] sm:$0xff]  ;;  %v6850_v36 = vld [vmem:[#allocation2 + $0x260] ss:$16 sps:$4 sm:$0xff]  }
  0xd6   : > { %1552 = vmatprep.subr.bf16.mxu0 %v6792_v17  ;;  %1715 = vmatprep.subr.bf16.mxu1 %v6795_v18  ;;  %v6834_v17 = vld [vmem:[#allocation2 + $0x204] ss:$16 sps:$4 sm:$0xff]   ;;  %v7148_v18 = vmov 3  }
  0xd7   : > { %2026 = vperm.xlu1 %6728, %v7339_v33   ;;  %2035 = vperm.xlu0 %6729, %v7360_v47   ;;  %v420_v49 = vpop.permute.xlu1 %419  ;;  %v417_v50 = vpop.permute.xlu0 %416 }
  0xd8   : > { %1553 = vmatpush1.bf16.msra.mxu0 %v6790_v20  ;;  %1716 = vmatpush1.bf16.msra.mxu1 %v6793_v22  ;;  %vm482_vm9 = vcmp.eq.s32.totalorder %v420_v49, %v7426_v10  ;;  %vm481_vm10 = vcmp.eq.s32.totalorder %v417_v50, %v7426_v10  ;;  %v6837_v20 = vld [vmem:[#allocation2 + $0x20c] ss:$16 sps:$4 sm:$0xff]   ;;  %v6859_v49 = vld [vmem:[#allocation2 + $0x288] ss:$16 sps:$4 sm:$0xff]   ;;  %v6864_v50 = vld [vmem:[#allocation2 + $0x2a4] ss:$16 sps:$4 sm:$0xff]  }
  0xd9   : > { %1554 = vmatprep.subr.bf16.mxu0 %v6798_v24  ;;  %1717 = vmatprep.subr.bf16.mxu1 %v6801_v25  ;;  %vm5444_vm11 = vmpackc.low %vm482_vm9, %vm481_vm10 }
  0xdb   : > { %5441 = vmatmul.mubr.msk.bf16.gmra.mrb[4].mxu0 %vm5440_vm5, %v7147_v19  ;;  %5467 = vmatmul.mubr.msk.bf16.gmra.mrb[4].mxu1 %vm5440_vm5, %v7147_v19  ;;  %v426_v11 = vpop.permute.xlu1 %425  ;;  %v423_v12 = vpop.permute.xlu0 %422 }
  0xdc   : > { %810 = vmatprep.mubr.bf16.mxu0 %v7144_v0  ;;  %973 = vmatprep.mubr.bf16.mxu1 %v7144_v0  ;;  %vm484_vm12 = vcmp.eq.s32.totalorder %v426_v11, %v7426_v10  ;;  %vm483_vm13 = vcmp.eq.s32.totalorder %v423_v12, %v7426_v10  ;;  %v7587_v11 = vld [vmem:[%s7282_s18 + $0x30] sm:$0xff] }
  0xdd   : > { %1555 = vmatpush1.bf16.msra.mxu0 %v6796_v27  ;;  %1718 = vmatpush1.bf16.msra.mxu1 %v6799_v30  ;;  %vm5446_vm14 = vmpackc.low %vm484_vm12, %vm483_vm13  ;;  %v6847_v27 = vld [vmem:[#allocation2 + $0x248] ss:$16 sps:$4 sm:$0xff]   ;;  %v6852_v30 = vld [vmem:[#allocation2 + $0x264] ss:$16 sps:$4 sm:$0xff]  }
  0xde   : > { %1556 = vmatprep.subr.bf16.mxu0 %v6804_v31  ;;  %1719 = vmatprep.subr.bf16.mxu1 %v6807_v32  ;;  %v6855_v31 = vld [vmem:[#allocation2 + $0x26c] ss:$16 sps:$4 sm:$0xff]   ;;  %v7555_v32 = vld [vmem:[%s7282_s18] sm:$0xff] }
  0xdf   : > { %2032 = vperm.xlu1 %6728, %v7349_v40   ;;  %2041 = vperm.xlu0 %6729, %v7366_v52   ;;  %v432_v22 = vpop.permute.xlu1 %431  ;;  %v429_v24 = vpop.permute.xlu0 %428  ;;  %v6868_v12 = vld [vmem:[#allocation2 + $0x2c0] ss:$16 sps:$4 sm:$0xff]  }
  0xe0   : > { %vm486_vm15 = vcmp.eq.s32.totalorder %v432_v22, %v7426_v10  ;;  %vm485_vm0 = vcmp.eq.s32.totalorder %v429_v24, %v7426_v10 }
  0xe1   : > { %1557 = vmatpush1.bf16.msra.mxu0 %v6802_v37  ;;  %1720 = vmatpush1.bf16.msra.mxu1 %v6805_v38  ;;  %vm5448_vm1 = vmpackc.low %vm486_vm15, %vm485_vm0  ;;  %v6853_v37 = vld [vmem:[#allocation2 + $0x268] ss:$16 sps:$4 sm:$0xff]  }
  0xe2   : > { %1558 = vmatprep.subr.bf16.mxu0 %v6810_v39  ;;  %1721 = vmatprep.subr.bf16.mxu1 %v6813_v42  ;;  %v6858_v42 = vld [vmem:[#allocation2 + $0x284] ss:$16 sps:$4 sm:$0xff]  }
  0xe3   : > { %5443 = vmatmul.mubr.msk.bf16.gmra.mrb[8].mxu0 %vm5442_vm8, %v7147_v19  ;;  %5469 = vmatmul.mubr.msk.bf16.gmra.mrb[8].mxu1 %vm5442_vm8, %v7147_v19  ;;  %v438_v25 = vpop.permute.xlu1 %437  ;;  %v435_v26 = vpop.permute.xlu0 %434 }
  0xe4   : > { %820 = vmatprep.mubr.bf16.mxu0 %v7144_v0  ;;  %983 = vmatprep.mubr.bf16.mxu1 %v7144_v0  ;;  %vm488_vm2 = vcmp.eq.s32.totalorder %v438_v25, %v7426_v10  ;;  %vm487_vm3 = vcmp.eq.s32.totalorder %v435_v26, %v7426_v10  ;;  %v6882_v25 = vld [vmem:[#allocation2 + $0x304] ss:$16 sps:$4 sm:$0xff]   ;;  %v6885_v26 = vld [vmem:[#allocation2 + $0x30c] ss:$16 sps:$4 sm:$0xff]  }
  0xe5   : > { %1559 = vmatpush1.bf16.msra.mxu0 %v6808_v43  ;;  %1722 = vmatpush1.bf16.msra.mxu1 %v6811_v44  ;;  %vm5450_vm4 = vmpackc.low %vm488_vm2, %vm487_vm3  ;;  %v6861_v43 = vld [vmem:[#allocation2 + $0x28c] ss:$16 sps:$4 sm:$0xff]   ;;  %v7569_v44 = vld [vmem:[%s7282_s18 + $0x10] sm:$0xff] }
  0xe6   : > { %1560 = vmatprep.subr.bf16.mxu0 %v6816_v46  ;;  %1723 = vmatprep.subr.bf16.mxu1 %v6819_v48  ;;  %v7573_v46 = vld [vmem:[%s7282_s18 + $0x20] sm:$0xff] }
  0xe7   : > { %2038 = vperm.xlu1 %6728, %v7355_v45   ;;  %2047 = vperm.xlu0 %6729, %v7374_v58   ;;  %v6856_v48 = vld [vmem:[#allocation2 + $0x280] ss:$16 sps:$4 sm:$0xff]  }
  0xe9   : > { %1561 = vmatpush1.bf16.msra.mxu0 %v6814_v53  ;;  %1724 = vmatpush1.bf16.msra.mxu1 %v6817_v54  ;;  %v6867_v53 = vld [vmem:[#allocation2 + $0x2ac] ss:$16 sps:$4 sm:$0xff]   ;;  %v6862_v54 = vld [vmem:[#allocation2 + $0x2a0] ss:$16 sps:$4 sm:$0xff]  }
  0xea   : > { %1562 = vmatprep.subr.bf16.mxu0 %v6822_v55  ;;  %1725 = vmatprep.subr.bf16.mxu1 %v6825_v56  ;;  %v6865_v55 = vld [vmem:[#allocation2 + $0x2a8] ss:$16 sps:$4 sm:$0xff]  }
  0xeb   : > { %5445 = vmatmul.mubr.msk.bf16.gmra.mrb[12].mxu0 %vm5444_vm11, %v7147_v19  ;;  %5471 = vmatmul.mubr.msk.bf16.gmra.mrb[12].mxu1 %vm5444_vm11, %v7147_v19 }
  0xec   : > { %830 = vmatprep.mubr.bf16.mxu0 %v7144_v0  ;;  %993 = vmatprep.mubr.bf16.mxu1 %v7144_v0 }
  0xed   : > { %2044 = vperm.xlu1 %6728, %v7363_v51   ;;  %2053 = vperm.xlu0 %6729, %v7384_v60  }
  0xee   : > { %1563 = vmatpush1.bf16.msra.mxu0 %v6820_v61  ;;  %1726 = vmatpush1.bf16.msra.mxu1 %v6823_v62  ;;  %v6870_v62 = vld [vmem:[#allocation2 + $0x2c4] ss:$16 sps:$4 sm:$0xff]  }
  0xef   : > { %1564 = vmatprep.subr.bf16.mxu0 %v6828_v63  ;;  %1727 = vmatprep.subr.bf16.mxu1 %v6831_v9  ;;  %v6873_v63 = vld [vmem:[#allocation2 + $0x2cc] ss:$16 sps:$4 sm:$0xff]  }
  0xf0   : > { %v7583_v9 = vld [vmem:[%s7282_s18 + $0x18] sm:$0xff] }
  0xf1   : > { %2050 = vperm.xlu1 %6728, %v7371_v57   ;;  %6730 = vset.pattern.permute.xlu0 %v7148_v18 }
  0xf2   : > { %1565 = vmatpush1.bf16.msra.mxu0 %v6826_v15  ;;  %1728 = vmatpush1.bf16.msra.mxu1 %v6829_v16  ;;  %v6871_v15 = vld [vmem:[#allocation2 + $0x2c8] ss:$16 sps:$4 sm:$0xff]   ;;  %v6876_v16 = vld [vmem:[#allocation2 + $0x2e4] ss:$16 sps:$4 sm:$0xff]  }
  0xf3   : > { %5447 = vmatmul.mubr.msk.bf16.gmra.mrb[16].mxu0 %vm5446_vm14, %v7147_v19  ;;  %5473 = vmatmul.mubr.msk.bf16.gmra.mrb[16].mxu1 %vm5446_vm14, %v7147_v19 }
  0xf4   : > { %840 = vmatprep.mubr.bf16.mxu0 %v7144_v0  ;;  %1003 = vmatprep.mubr.bf16.mxu1 %v7144_v0 }
  0xf5   : > { %2056 = vperm.xlu1 %6728, %v7381_v59   ;;  %2342 = vmatprep.subr.bf16.mxu0 %v6834_v17  ;;  %v6879_v17 = vld [vmem:[#allocation2 + $0x2ec] ss:$16 sps:$4 sm:$0xff]  }
  0xf6   : > { %2505 = vmatprep.subr.bf16.mxu1 %v6837_v20  ;;  %2773 = vperm.xlu0 %6730, %v7288_v2   ;;  %v444_v2 = vpop.permute.xlu1 %443  ;;  %v6877_v20 = vld [vmem:[#allocation2 + $0x2e8] ss:$16 sps:$4 sm:$0xff]  }
  0xf7   : > { %vm490_vm5 = vcmp.eq.s32.totalorder %v444_v2, %v7426_v10  ;;  %v7597_v2 = vld [vmem:[%s7282_s18 + $0x28] sm:$0xff] }
  0xf9   : > { %6731 = vset.pattern.permute.xlu1 %v7148_v18  ;;  %v6874_v18 = vld [vmem:[#allocation2 + $0x2e0] ss:$16 sps:$4 sm:$0xff]  }
  0xfa   : > { %2776 = vperm.xlu1 %6731, %v7296_v4   ;;  %2782 = vperm.xlu0 %6730, %v7293_v3   ;;  %v441_v3 = vpop.permute.xlu0 %440 }
  0xfb   : > { %5449 = vmatmul.mubr.msk.bf16.gmra.mrb[20].mxu0 %vm5448_vm1, %v7147_v19  ;;  %5475 = vmatmul.mubr.msk.bf16.gmra.mrb[20].mxu1 %vm5448_vm1, %v7147_v19  ;;  %vm489_vm6 = vcmp.eq.s32.totalorder %v441_v3, %v7426_v10  ;;  %v7601_v3 = vld [vmem:[%s7282_s18 + $0x40] sm:$0xff] }
  0xfc   : > { %850 = vmatprep.mubr.bf16.mxu0 %v7144_v0  ;;  %1013 = vmatprep.mubr.bf16.mxu1 %v7144_v0  ;;  %vm5452_vm7 = vmpackc.low %vm490_vm5, %vm489_vm6 }
  0xfe   : > { %2779 = vperm.xlu1 %6731, %v7285_v1   ;;  %2788 = vperm.xlu0 %6730, %v7301_v5   ;;  %v450_v1 = vpop.permute.xlu1 %449  ;;  %v447_v4 = vpop.permute.xlu0 %446 }
  0xff   : > { %vm492_vm8 = vcmp.eq.s32.totalorder %v450_v1, %v7426_v10  ;;  %vm491_vm9 = vcmp.eq.s32.totalorder %v447_v4, %v7426_v10  ;;  %v7609_v1 = vld [vmem:[%s7282_s18 + $0x38] sm:$0xff]  ;;  %v7613_v4 = vld [vmem:[%s7282_s18 + $0x50] sm:$0xff] }
 0x100   : > { %vm5454_vm10 = vmpackc.low %vm492_vm8, %vm491_vm9 }
 0x102   : > { %2785 = vperm.xlu1 %6731, %v7304_v6   ;;  %2794 = vperm.xlu0 %6730, %v7307_v7   ;;  %v456_v5 = vpop.permute.xlu1 %455  ;;  %v453_v6 = vpop.permute.xlu0 %452 }
 0x103   : > { %5451 = vmatmul.mubr.msk.bf16.gmra.mrb[24].mxu0 %vm5450_vm4, %v7147_v19  ;;  %5477 = vmatmul.mubr.msk.bf16.gmra.mrb[24].mxu1 %vm5450_vm4, %v7147_v19  ;;  %vm494_vm11 = vcmp.eq.s32.totalorder %v456_v5, %v7426_v10  ;;  %vm493_vm12 = vcmp.eq.s32.totalorder %v453_v6, %v7426_v10 }
 0x104   : > { %860 = vmatprep.mubr.bf16.mxu0 %v7144_v0  ;;  %1023 = vmatprep.mubr.bf16.mxu1 %v7144_v0  ;;  %vm5456_vm13 = vmpackc.low %vm494_vm11, %vm493_vm12 }
 0x106   : > { %2791 = vperm.xlu1 %6731, %v7310_v8   ;;  %2800 = vperm.xlu0 %6730, %v7315_v13   ;;  %v462_v7 = vpop.permute.xlu1 %461  ;;  %v459_v8 = vpop.permute.xlu0 %458 }
 0x107   : > { %vm496_vm14 = vcmp.eq.s32.totalorder %v462_v7, %v7426_v10  ;;  %vm495_vm15 = vcmp.eq.s32.totalorder %v459_v8, %v7426_v10  ;;  %v7619_v7 = vld [vmem:[%s7282_s18 + $0x48] sm:$0xff]  ;;  %v7623_v8 = vld [vmem:[%s7282_s18 + $0x60] sm:$0xff] }
 0x108   : > { %vm5458_vm0 = vmpackc.low %vm496_vm14, %vm495_vm15 }
 0x10a   : > { %2797 = vperm.xlu1 %6731, %v7318_v14   ;;  %2806 = vperm.xlu0 %6730, %v7323_v21   ;;  %v468_v13 = vpop.permute.xlu1 %467  ;;  %v465_v14 = vpop.permute.xlu0 %464 }
 0x10b   : > { %5453 = vmatmul.mubr.msk.bf16.gmra.mrb[28].mxu0 %vm5452_vm7, %v7147_v19  ;;  %5479 = vmatmul.mubr.msk.bf16.gmra.mrb[28].mxu1 %vm5452_vm7, %v7147_v19  ;;  %vm498_vm1 = vcmp.eq.s32.totalorder %v468_v13, %v7426_v10  ;;  %vm497_vm2 = vcmp.eq.s32.totalorder %v465_v14, %v7426_v10  ;;  %v7631_v13 = vld [vmem:[%s7282_s18 + $0x58] sm:$0xff]  ;;  %v7635_v14 = vld [vmem:[%s7282_s18 + $0x70] sm:$0xff] }
 0x10c   : > { %870 = vmatprep.mubr.bf16.mxu0 %v7144_v0  ;;  %1033 = vmatprep.mubr.bf16.mxu1 %v7144_v0  ;;  %vm5460_vm3 = vmpackc.low %vm498_vm1, %vm497_vm2 }
 0x10e   : > { %2803 = vperm.xlu1 %6731, %v7328_v23   ;;  %2812 = vperm.xlu0 %6730, %v7333_v28   ;;  %v474_v21 = vpop.permute.xlu1 %473  ;;  %v471_v23 = vpop.permute.xlu0 %470 }
 0x10f   : > { %vm500_vm4 = vcmp.eq.s32.totalorder %v474_v21, %v7426_v10  ;;  %vm499_vm5 = vcmp.eq.s32.totalorder %v471_v23, %v7426_v10 }
 0x110   : > { %vm5462_vm6 = vmpackc.low %vm500_vm4, %vm499_vm5 }
 0x112   : > { %2809 = vperm.xlu1 %6731, %v7336_v29   ;;  %2818 = vperm.xlu0 %6730, %v7339_v33   ;;  %v1193_v28 = vpop.permute.xlu1 %1192  ;;  %v1190_v29 = vpop.permute.xlu0 %1189  ;;  %v6832_v33 = vld [vmem:[#allocation2 + $0x200] ss:$16 sps:$4 sm:$0xff]  }
 0x113   : > { %5455 = vmatmul.mubr.msk.bf16.gmra.mrb[32].mxu0 %vm5454_vm10, %v7147_v19  ;;  %5481 = vmatmul.mubr.msk.bf16.gmra.mrb[32].mxu1 %vm5454_vm10, %v7147_v19  ;;  %vm1267_vm7 = vcmp.eq.s32.totalorder %v1193_v28, %v7426_v10  ;;  %vm1266_vm8 = vcmp.eq.s32.totalorder %v1190_v29, %v7426_v10  ;;  %v7641_v28 = vld [vmem:[%s7282_s18 + $0x68] sm:$0xff]  ;;  %v7645_v29 = vld [vmem:[%s7282_s18 + $0x80] sm:$0xff] }
 0x114   : > { %880 = vmatprep.mubr.bf16.mxu0 %v7144_v0  ;;  %1043 = vmatprep.mubr.bf16.mxu1 %v7144_v0  ;;  %vm5548_vm9 = vmpackc.low %vm1267_vm7, %vm1266_vm8 }
 0x116   : > { %2815 = vperm.xlu1 %6731, %v7344_v35   ;;  %2824 = vperm.xlu0 %6730, %v7349_v40   ;;  %v6835_v35 = vld [vmem:[#allocation2 + $0x208] ss:$16 sps:$4 sm:$0xff]   ;;  %v6840_v40 = vld [vmem:[#allocation2 + $0x224] ss:$16 sps:$4 sm:$0xff]  }
 0x11a   : > { %2821 = vperm.xlu1 %6731, %v7352_v41   ;;  %2830 = vperm.xlu0 %6730, %v7355_v45   ;;  %v6843_v41 = vld [vmem:[#allocation2 + $0x22c] ss:$16 sps:$4 sm:$0xff]   ;;  %v6838_v45 = vld [vmem:[#allocation2 + $0x220] ss:$16 sps:$4 sm:$0xff]  }
 0x11b   : > { %5457 = vmatmul.mubr.msk.bf16.gmra.mrb[36].mxu0 %vm5456_vm13, %v7147_v19  ;;  %5483 = vmatmul.mubr.msk.bf16.gmra.mrb[36].mxu1 %vm5456_vm13, %v7147_v19 }
 0x11c   : > { %890 = vmatprep.mubr.bf16.mxu0 %v7144_v0  ;;  %1053 = vmatprep.mubr.bf16.mxu1 %v7144_v0 }
 0x11e   : > { %2827 = vperm.xlu1 %6731, %v7360_v47   ;;  %2836 = vperm.xlu0 %6730, %v7363_v51   ;;  %v6841_v47 = vld [vmem:[#allocation2 + $0x228] ss:$16 sps:$4 sm:$0xff]   ;;  %v6846_v51 = vld [vmem:[#allocation2 + $0x244] ss:$16 sps:$4 sm:$0xff]  }
 0x122   : > { %2833 = vperm.xlu1 %6731, %v7366_v52   ;;  %2842 = vperm.xlu0 %6730, %v7371_v57   ;;  %v6849_v52 = vld [vmem:[#allocation2 + $0x24c] ss:$16 sps:$4 sm:$0xff]   ;;  %v1196_v57 = vpop.permute.xlu1 %1195 }
 0x123   : > { %5459 = vmatmul.mubr.msk.bf16.gmra.mrb[40].mxu0 %vm5458_vm0, %v7147_v19  ;;  %5485 = vmatmul.mubr.msk.bf16.gmra.mrb[40].mxu1 %vm5458_vm0, %v7147_v19  ;;  %vm1268_vm10 = vcmp.eq.s32.totalorder %v1196_v57, %v7426_v10 }
 0x124   : > { %900 = vmatprep.mubr.bf16.mxu0 %v7144_v0  ;;  %1063 = vmatprep.mubr.bf16.mxu1 %v7144_v0 }
 0x126   : > { %2839 = vperm.xlu1 %6731, %v7374_v58   ;;  %2848 = vperm.xlu0 %6730, %v7381_v59   ;;  %v1199_v58 = vpop.permute.xlu0 %1198  ;;  %v7149_v59 = vmov 4   ;;  %v1202_v38 = vpop.permute.xlu1 %1201 }
 0x127   : > { %vm1269_vm11 = vcmp.eq.s32.totalorder %v1199_v58, %v7426_v10  ;;  %vm1270_vm13 = vcmp.eq.s32.totalorder %v1202_v38, %v7426_v10 }
 0x128   : > { %vm5550_vm12 = vmpackc.low %vm1269_vm11, %vm1268_vm10 }
 0x12a   : > { %2845 = vperm.xlu1 %6731, %v7384_v60   ;;  %6733 = vset.pattern.permute.xlu0 %v7149_v59  ;;  %v6844_v60 = vld [vmem:[#allocation2 + $0x240] ss:$16 sps:$4 sm:$0xff]   ;;  %v1205_v39 = vpop.permute.xlu0 %1204  ;;  %v1208_v56 = vpop.permute.xlu1 %1207 }
 0x12b   : > { %5461 = vmatmul.mubr.msk.bf16.gmra.mrb[44].mxu0 %vm5460_vm3, %v7147_v19  ;;  %5487 = vmatmul.mubr.msk.bf16.gmra.mrb[44].mxu1 %vm5460_vm3, %v7147_v19  ;;  %vm1271_vm14 = vcmp.eq.s32.totalorder %v1205_v39, %v7426_v10  ;;  %vm1272_vm0 = vcmp.eq.s32.totalorder %v1208_v56, %v7426_v10  ;;  %v6888_v56 = vld [vmem:[#allocation2 + $0x324] ss:$16 sps:$4 sm:$0xff]  }
 0x12c   : > { %910 = vmatprep.mubr.bf16.mxu0 %v7144_v0  ;;  %1073 = vmatprep.mubr.bf16.mxu1 %v7144_v0  ;;  %vm5552_vm15 = vmpackc.low %vm1271_vm14, %vm1270_vm13 }
 0x12d   : > { %3568 = vperm.xlu0 %6733, %v7559_v34  }
 0x12e   : > { %6732 = vset.pattern.permute.xlu1 %v7149_v59  ;;  %v1211_v61 = vpop.permute.xlu0 %1210  ;;  %v1214_v22 = vpop.permute.xlu1 %1213  ;;  %v7685_v59 = vld [vmem:[%s7282_s18 + $0xa8] sm:$0xff] }
 0x12f   : > { %3565 = vperm.xlu1 %6732, %v7555_v32   ;;  %vm1273_vm1 = vcmp.eq.s32.totalorder %v1211_v61, %v7426_v10  ;;  %vm1274_vm3 = vcmp.eq.s32.totalorder %v1214_v22, %v7426_v10  ;;  %v6891_v61 = vld [vmem:[#allocation2 + $0x32c] ss:$16 sps:$4 sm:$0xff]   ;;  %v6900_v22 = vld [vmem:[#allocation2 + $0x364] ss:$16 sps:$4 sm:$0xff]  }
 0x130   : > { %vm5554_vm2 = vmpackc.low %vm1273_vm1, %vm1272_vm0 }
 0x131   : > { %3577 = vperm.xlu0 %6733, %v7573_v46  }
 0x132   : > { %v1217_v24 = vpop.permute.xlu0 %1216  ;;  %v1220_v5 = vpop.permute.xlu1 %1219 }
 0x133   : > { %5463 = vmatmul.mubr.msk.bf16.gmra.mrb[48].mxu0 %vm5462_vm6, %v7147_v19  ;;  %5489 = vmatmul.mubr.msk.bf16.gmra.mrb[48].mxu1 %vm5462_vm6, %v7147_v19  ;;  %vm1275_vm4 = vcmp.eq.s32.totalorder %v1217_v24, %v7426_v10  ;;  %vm1276_vm6 = vcmp.eq.s32.totalorder %v1220_v5, %v7426_v10  ;;  %v6903_v24 = vld [vmem:[#allocation2 + $0x36c] ss:$16 sps:$4 sm:$0xff]  }
 0x134   : > { %1582 = vmatprep.mubr.bf16.mxu0 %v7144_v0  ;;  %1745 = vmatprep.mubr.bf16.mxu1 %v7144_v0  ;;  %vm5556_vm5 = vmpackc.low %vm1275_vm4, %vm1274_vm3 }
 0x135   : > { %3571 = vperm.xlu1 %6732, %v7569_v44   ;;  %3583 = vperm.xlu0 %6733, %v7587_v11  }
 0x136   : > { %v1223_v6 = vpop.permute.xlu0 %1222  ;;  %v1226_v21 = vpop.permute.xlu1 %1225 }
 0x137   : > { %vm1277_vm7 = vcmp.eq.s32.totalorder %v1223_v6, %v7426_v10 }
 0x138   : > { %vm5558_vm8 = vmpackc.low %vm1277_vm7, %vm1276_vm6 }
 0x139   : > { %3574 = vperm.xlu1 %6732, %v7583_v9   ;;  %3589 = vperm.xlu0 %6733, %v7601_v3  }
 0x13a   : > { %v1229_v23 = vpop.permute.xlu0 %1228 }
 0x13b   : > { %5549 = vmatmul.mubr.msk.bf16.vlgmr.msra.gmra.mrb[0].mxu0 %vm5548_vm9, %v7147_v19  ;;  %5575 = vmatmul.mubr.msk.bf16.vlgmr.msra.gmra.mrb[0].mxu1 %vm5548_vm9, %v7147_v19  ;;  %vm1278_vm9 = vcmp.eq.s32.totalorder %v1226_v21, %v7426_v10  ;;  %vm1279_vm10 = vcmp.eq.s32.totalorder %v1229_v23, %v7426_v10  ;;  %v6906_v21 = vld [vmem:[#allocation2 + $0x384] ss:$16 sps:$4 sm:$0xff]   ;;  %v6907_v23 = vld [vmem:[#allocation2 + $0x388] ss:$16 sps:$4 sm:$0xff]  }
 0x13c   : > { %2343 = vmatpush1.bf16.msra.mxu0 %v6832_v33  ;;  %2506 = vmatpush1.bf16.msra.mxu1 %v6835_v35  ;;  %vm5560_vm11 = vmpackc.low %vm1279_vm10, %vm1278_vm9  ;;  %v7653_v33 = vld [vmem:[%s7282_s18 + $0x78] sm:$0xff]  ;;  %v7657_v35 = vld [vmem:[%s7282_s18 + $0x90] sm:$0xff] }
 0x13d   : > { %1592 = vmatprep.mubr.bf16.mxu0 %v7144_v0  ;;  %1755 = vmatprep.mubr.bf16.mxu1 %v7144_v0 }
 0x13e   : > { %2344 = vmatprep.subr.bf16.mxu0 %v6840_v40  ;;  %2507 = vmatprep.subr.bf16.mxu1 %v6843_v41  ;;  %v1232_v40 = vpop.permute.xlu1 %1231  ;;  %v1235_v41 = vpop.permute.xlu0 %1234 }
 0x13f   : > { %3580 = vperm.xlu1 %6732, %v7597_v2   ;;  %3595 = vperm.xlu0 %6733, %v7613_v4   ;;  %vm1281_vm13 = vcmp.eq.s32.totalorder %v1235_v41, %v7426_v10  ;;  %v6915_v41 = vld [vmem:[#allocation2 + $0x3ac] ss:$16 sps:$4 sm:$0xff]  }
 0x140   : > { %2345 = vmatpush1.bf16.msra.mxu0 %v6838_v45  ;;  %2508 = vmatpush1.bf16.msra.mxu1 %v6841_v47  ;;  %v7663_v45 = vld [vmem:[%s7282_s18 + $0x88] sm:$0xff]  ;;  %v7667_v47 = vld [vmem:[%s7282_s18 + $0xa0] sm:$0xff] }
 0x141   : > { %2346 = vmatprep.subr.bf16.mxu0 %v6846_v51  ;;  %2509 = vmatprep.subr.bf16.mxu1 %v6849_v52  ;;  %v7675_v51 = vld [vmem:[%s7282_s18 + $0x98] sm:$0xff]  ;;  %v7679_v52 = vld [vmem:[%s7282_s18 + $0xb0] sm:$0xff] }
 0x142   : > { %v1238_v57 = vpop.permute.xlu1 %1237  ;;  %v1241_v58 = vpop.permute.xlu0 %1240 }
 0x143   : > { %5551 = vmatmul.mubr.msk.bf16.gmra.mrb[4].mxu0 %vm5550_vm12, %v7147_v19  ;;  %5577 = vmatmul.mubr.msk.bf16.gmra.mrb[4].mxu1 %vm5550_vm12, %v7147_v19  ;;  %vm1280_vm12 = vcmp.eq.s32.totalorder %v1232_v40, %v7426_v10  ;;  %vm1283_vm0 = vcmp.eq.s32.totalorder %v1241_v58, %v7426_v10  ;;  %v6912_v40 = vld [vmem:[#allocation2 + $0x3a4] ss:$16 sps:$4 sm:$0xff]  }
 0x144   : > { %1602 = vmatprep.mubr.bf16.mxu0 %v7144_v0  ;;  %1765 = vmatprep.mubr.bf16.mxu1 %v7144_v0  ;;  %vm5562_vm14 = vmpackc.low %vm1281_vm13, %vm1280_vm12 }
 0x145   : > { %2347 = vmatpush1.bf16.msra.mxu0 %v6844_v60  ;;  %2510 = vmatpush1.bf16.msra.mxu1 %v6847_v27  ;;  %v7689_v60 = vld [vmem:[%s7282_s18 + $0xc0] sm:$0xff]  ;;  %v7697_v27 = vld [vmem:[%s7282_s18 + $0xb8] sm:$0xff] }
 0x146   : > { %2348 = vmatprep.subr.bf16.mxu0 %v6852_v30  ;;  %2511 = vmatprep.subr.bf16.mxu1 %v6855_v31  ;;  %v1244_v30 = vpop.permute.xlu1 %1243  ;;  %v1247_v31 = vpop.permute.xlu0 %1246 }
 0x147   : > { %3586 = vperm.xlu1 %6732, %v7609_v1   ;;  %3601 = vperm.xlu0 %6733, %v7623_v8   ;;  %vm1285_vm3 = vcmp.eq.s32.totalorder %v1247_v31, %v7426_v10  ;;  %v6921_v31 = vld [vmem:[#allocation2 + $0x3cc] ss:$16 sps:$4 sm:$0xff]  }
 0x149   : > { %2349 = vmatpush1.bf16.msra.mxu0 %v6850_v36  ;;  %2512 = vmatpush1.bf16.msra.mxu1 %v6853_v37  ;;  %v7703_v36 = vld [vmem:[%s7282_s18 + $0xc8] sm:$0xff] }
 0x14a   : > { %2350 = vmatprep.subr.bf16.mxu0 %v6858_v42  ;;  %2513 = vmatprep.subr.bf16.mxu1 %v6861_v43  ;;  %v1250_v37 = vpop.permute.xlu1 %1249  ;;  %v1253_v38 = vpop.permute.xlu0 %1252 }
 0x14b   : > { %5553 = vmatmul.mubr.msk.bf16.gmra.mrb[8].mxu0 %vm5552_vm15, %v7147_v19  ;;  %5579 = vmatmul.mubr.msk.bf16.gmra.mrb[8].mxu1 %vm5552_vm15, %v7147_v19  ;;  %vm1282_vm15 = vcmp.eq.s32.totalorder %v1238_v57, %v7426_v10  ;;  %vm1287_vm6 = vcmp.eq.s32.totalorder %v1253_v38, %v7426_v10  ;;  %v6919_v38 = vld [vmem:[#allocation2 + $0x3c8] ss:$16 sps:$4 sm:$0xff]  }
 0x14c   : > { %1612 = vmatprep.mubr.bf16.mxu0 %v7144_v0  ;;  %1775 = vmatprep.mubr.bf16.mxu1 %v7144_v0  ;;  %vm5564_vm1 = vmpackc.low %vm1283_vm0, %vm1282_vm15 }
 0x14d   : > { %2351 = vmatpush1.bf16.msra.mxu0 %v6856_v48  ;;  %2514 = vmatpush1.bf16.msra.mxu1 %v6859_v49 }
 0x14e   : > { %2352 = vmatprep.subr.bf16.mxu0 %v6864_v50  ;;  %2515 = vmatprep.subr.bf16.mxu1 %v6867_v53  ;;  %v1256_v39 = vpop.permute.xlu1 %1255  ;;  %v1259_v42 = vpop.permute.xlu0 %1258 }
 0x14f   : > { %3592 = vperm.xlu1 %6732, %v7619_v7   ;;  %3607 = vperm.xlu0 %6733, %v7635_v14   ;;  %vm1289_vm9 = vcmp.eq.s32.totalorder %v1259_v42, %v7426_v10  ;;  %v6927_v42 = vld [vmem:[#allocation2 + $0x3ec] ss:$16 sps:$4 sm:$0xff]  }
 0x151   : > { %2353 = vmatpush1.bf16.msra.mxu0 %v6862_v54  ;;  %2516 = vmatpush1.bf16.msra.mxu1 %v6865_v55  ;;  %v6880_v54 = vld [vmem:[#allocation2 + $0x300] ss:$16 sps:$4 sm:$0xff]   ;;  %v6883_v55 = vld [vmem:[#allocation2 + $0x308] ss:$16 sps:$4 sm:$0xff]  }
 0x152   : > { %2354 = vmatprep.subr.bf16.mxu0 %v6870_v62  ;;  %2517 = vmatprep.subr.bf16.mxu1 %v6873_v63  ;;  %v1262_v43 = vpop.permute.xlu1 %1261  ;;  %v1265_v48 = vpop.permute.xlu0 %1264  ;;  %v6886_v62 = vld [vmem:[#allocation2 + $0x320] ss:$16 sps:$4 sm:$0xff]   ;;  %v6889_v63 = vld [vmem:[#allocation2 + $0x328] ss:$16 sps:$4 sm:$0xff]  }
 0x153   : > { %5555 = vmatmul.mubr.msk.bf16.gmra.mrb[12].mxu0 %vm5554_vm2, %v7147_v19  ;;  %5581 = vmatmul.mubr.msk.bf16.gmra.mrb[12].mxu1 %vm5554_vm2, %v7147_v19  ;;  %vm1284_vm2 = vcmp.eq.s32.totalorder %v1244_v30, %v7426_v10  ;;  %vm1291_vm12 = vcmp.eq.s32.totalorder %v1265_v48, %v7426_v10  ;;  %v6918_v30 = vld [vmem:[#allocation2 + $0x3c4] ss:$16 sps:$4 sm:$0xff]  }
 0x154   : > { %1622 = vmatprep.mubr.bf16.mxu0 %v7144_v0  ;;  %1785 = vmatprep.mubr.bf16.mxu1 %v7144_v0  ;;  %vm5566_vm4 = vmpackc.low %vm1285_vm3, %vm1284_vm2 }
 0x155   : > { %2355 = vmatpush1.bf16.msra.mxu0 %v6868_v12  ;;  %2518 = vmatpush1.bf16.msra.mxu1 %v6871_v15  ;;  %v6894_v12 = vld [vmem:[#allocation2 + $0x344] ss:$16 sps:$4 sm:$0xff]   ;;  %v6897_v15 = vld [vmem:[#allocation2 + $0x34c] ss:$16 sps:$4 sm:$0xff]  }
 0x156   : > { %2356 = vmatprep.subr.bf16.mxu0 %v6876_v16  ;;  %2519 = vmatprep.subr.bf16.mxu1 %v6879_v17  ;;  %v1982_v49 = vpop.permute.xlu1 %1981  ;;  %v1985_v50 = vpop.permute.xlu0 %1984  ;;  %v7150_v17 = vmov 5  }
 0x157   : > { %3598 = vperm.xlu1 %6732, %v7631_v13   ;;  %3613 = vperm.xlu0 %6733, %v7645_v29   ;;  %vm2059_vm15 = vcmp.eq.s32.totalorder %v1985_v50, %v7426_v10  ;;  %v6933_v50 = vld [vmem:[#allocation2 + $0x40c] ss:$16 sps:$4 sm:$0xff]  }
 0x159   : > { %2357 = vmatpush1.bf16.msra.mxu0 %v6874_v18  ;;  %2520 = vmatpush1.bf16.msra.mxu1 %v6877_v20  ;;  %v6892_v18 = vld [vmem:[#allocation2 + $0x340] ss:$16 sps:$4 sm:$0xff]   ;;  %v6895_v20 = vld [vmem:[#allocation2 + $0x348] ss:$16 sps:$4 sm:$0xff]  }
 0x15a   : > { %3134 = vmatprep.subr.bf16.mxu0 %v6882_v25  ;;  %3297 = vmatprep.subr.bf16.mxu1 %v6885_v26  ;;  %v1988_v53 = vpop.permute.xlu1 %1987  ;;  %v6898_v25 = vld [vmem:[#allocation2 + $0x360] ss:$16 sps:$4 sm:$0xff]   ;;  %v6901_v26 = vld [vmem:[#allocation2 + $0x368] ss:$16 sps:$4 sm:$0xff]   ;;  %v1994_v6 = vpop.permute.xlu0 %1993 }
 0x15b   : > { %5557 = vmatmul.mubr.msk.bf16.gmra.mrb[16].mxu0 %vm5556_vm5, %v7147_v19  ;;  %5583 = vmatmul.mubr.msk.bf16.gmra.mrb[16].mxu1 %vm5556_vm5, %v7147_v19  ;;  %vm1286_vm5 = vcmp.eq.s32.totalorder %v1250_v37, %v7426_v10  ;;  %v6916_v37 = vld [vmem:[#allocation2 + $0x3c0] ss:$16 sps:$4 sm:$0xff]  }
 0x15c   : > { %1632 = vmatprep.mubr.bf16.mxu0 %v7144_v0  ;;  %1795 = vmatprep.mubr.bf16.mxu1 %v7144_v0  ;;  %vm5568_vm7 = vmpackc.low %vm1287_vm6, %vm1286_vm5  ;;  %vm2062_vm5 = vcmp.eq.s32.totalorder %v1994_v6, %v7426_v10  ;;  %v6952_v6 = vld [vmem:[#allocation2 + $0x480] ss:$16 sps:$4 sm:$0xff]  }
 0x15d   : > { %3604 = vperm.xlu1 %6732, %v7641_v28   ;;  %3619 = vperm.xlu0 %6733, %v7657_v35  }
 0x15e   : > { %v1991_v16 = vpop.permute.xlu1 %1990  ;;  %v2000_v58 = vpop.permute.xlu0 %1999 }
 0x15f   : > { %vm2061_vm2 = vcmp.eq.s32.totalorder %v1991_v16, %v7426_v10  ;;  %v6943_v16 = vld [vmem:[#allocation2 + $0x448] ss:$16 sps:$4 sm:$0xff]  }
 0x161   : > { %3610 = vperm.xlu1 %6732, %v7653_v33   ;;  %3625 = vperm.xlu0 %6733, %v7667_v47  }
 0x162   : > { %v1997_v5 = vpop.permute.xlu1 %1996  ;;  %v2006_v48 = vpop.permute.xlu0 %2005 }
 0x163   : > { %5559 = vmatmul.mubr.msk.bf16.gmra.mrb[20].mxu0 %vm5558_vm8, %v7147_v19  ;;  %5585 = vmatmul.mubr.msk.bf16.gmra.mrb[20].mxu1 %vm5558_vm8, %v7147_v19  ;;  %vm1288_vm8 = vcmp.eq.s32.totalorder %v1256_v39, %v7426_v10  ;;  %v6924_v39 = vld [vmem:[#allocation2 + $0x3e4] ss:$16 sps:$4 sm:$0xff]  }
 0x164   : > { %1642 = vmatprep.mubr.bf16.mxu0 %v7144_v0  ;;  %1805 = vmatprep.mubr.bf16.mxu1 %v7144_v0  ;;  %vm5570_vm10 = vmpackc.low %vm1289_vm9, %vm1288_vm8  ;;  %vm2064_vm8 = vcmp.eq.s32.totalorder %v2000_v58, %v7426_v10  ;;  %v6964_v58 = vld [vmem:[#allocation2 + $0x4c0] ss:$16 sps:$4 sm:$0xff]  }
 0x165   : > { %3616 = vperm.xlu1 %6732, %v7663_v45   ;;  %3631 = vperm.xlu0 %6733, %v7679_v52  }
 0x166   : > { %v2003_v57 = vpop.permute.xlu1 %2002 }
 0x169   : > { %3622 = vperm.xlu1 %6732, %v7675_v51   ;;  %3637 = vperm.xlu0 %6733, %v7689_v60  }
 0x16b   : > { %5561 = vmatmul.mubr.msk.bf16.gmra.mrb[24].mxu0 %vm5560_vm11, %v7147_v19  ;;  %5587 = vmatmul.mubr.msk.bf16.gmra.mrb[24].mxu1 %vm5560_vm11, %v7147_v19  ;;  %vm1290_vm11 = vcmp.eq.s32.totalorder %v1262_v43, %v7426_v10  ;;  %v2009_v43 = vpop.permute.xlu1 %2008 }
 0x16c   : > { %1652 = vmatprep.mubr.bf16.mxu0 %v7144_v0  ;;  %1815 = vmatprep.mubr.bf16.mxu1 %v7144_v0  ;;  %vm5572_vm13 = vmpackc.low %vm1291_vm12, %vm1290_vm11  ;;  %vm2066_vm11 = vcmp.eq.s32.totalorder %v2006_v48, %v7426_v10 }
 0x16d   : > { %3628 = vperm.xlu1 %6732, %v7685_v59   ;;  %6734 = vset.pattern.permute.xlu0 %v7150_v17 }
 0x16e   : > { %4357 = vperm.xlu0 %6734, %v7555_v32   ;;  %v6904_v32 = vld [vmem:[#allocation2 + $0x380] ss:$16 sps:$4 sm:$0xff]  }
 0x171   : > { %3634 = vperm.xlu1 %6732, %v7697_v27  }
 0x172   : > { %4366 = vperm.xlu0 %6734, %v7583_v9   ;;  %v6913_v9 = vld [vmem:[#allocation2 + $0x3a8] ss:$16 sps:$4 sm:$0xff]  }
 0x173   : > { %5563 = vmatmul.mubr.msk.bf16.gmra.mrb[28].mxu0 %vm5562_vm14, %v7147_v19  ;;  %5589 = vmatmul.mubr.msk.bf16.gmra.mrb[28].mxu1 %vm5562_vm14, %v7147_v19  ;;  %vm2058_vm14 = vcmp.eq.s32.totalorder %v1982_v49, %v7426_v10  ;;  %v6930_v49 = vld [vmem:[#allocation2 + $0x404] ss:$16 sps:$4 sm:$0xff]  }
 0x174   : > { %1662 = vmatprep.mubr.bf16.mxu0 %v7144_v0  ;;  %1825 = vmatprep.mubr.bf16.mxu1 %v7144_v0  ;;  %vm5658_vm0 = vmpackc.low %vm2059_vm15, %vm2058_vm14 }
 0x175   : > { %3640 = vperm.xlu1 %6732, %v7703_v36  }
 0x176   : > { %4372 = vperm.xlu0 %6734, %v7597_v2   ;;  %v6925_v2 = vld [vmem:[#allocation2 + $0x3e8] ss:$16 sps:$4 sm:$0xff]  }
 0x179   : > { %6735 = vset.pattern.permute.xlu1 %v7150_v17  ;;  %v6948_v17 = vld [vmem:[#allocation2 + $0x464] ss:$16 sps:$4 sm:$0xff]  }
 0x17a   : > { %4360 = vperm.xlu1 %6735, %v7559_v34   ;;  %v6909_v34 = vld [vmem:[#allocation2 + $0x38c] ss:$16 sps:$4 sm:$0xff]   ;;  %4378 = vperm.xlu0 %6734, %v7609_v1  }
 0x17b   : > { %5565 = vmatmul.mubr.msk.bf16.gmra.mrb[32].mxu0 %vm5564_vm1, %v7147_v19  ;;  %5591 = vmatmul.mubr.msk.bf16.gmra.mrb[32].mxu1 %vm5564_vm1, %v7147_v19  ;;  %vm2060_vm1 = vcmp.eq.s32.totalorder %v1988_v53, %v7426_v10  ;;  %v2012_v53 = vpop.permute.xlu0 %2011 }
 0x17c   : > { %1672 = vmatprep.mubr.bf16.mxu0 %v7144_v0  ;;  %1835 = vmatprep.mubr.bf16.mxu1 %v7144_v0  ;;  %vm5660_vm3 = vmpackc.low %vm2061_vm2, %vm2060_vm1  ;;  %vm2068_vm14 = vcmp.eq.s32.totalorder %v2012_v53, %v7426_v10 }
 0x17e   : > { %4363 = vperm.xlu1 %6735, %v7569_v44   ;;  %v6910_v44 = vld [vmem:[#allocation2 + $0x3a0] ss:$16 sps:$4 sm:$0xff]   ;;  %4384 = vperm.xlu0 %6734, %v7619_v7  }
 0x17f   : > { %v2018_v1 = vpop.permute.xlu0 %2017 }
 0x180   : > { %vm2070_vm1 = vcmp.eq.s32.totalorder %v2018_v1, %v7426_v10 }
 0x182   : > { %4369 = vperm.xlu1 %6735, %v7573_v46   ;;  %v6922_v46 = vld [vmem:[#allocation2 + $0x3e0] ss:$16 sps:$4 sm:$0xff]   ;;  %4390 = vperm.xlu0 %6734, %v7631_v13  }
 0x183   : > { %5567 = vmatmul.mubr.msk.bf16.gmra.mrb[36].mxu0 %vm5566_vm4, %v7147_v19  ;;  %5593 = vmatmul.mubr.msk.bf16.gmra.mrb[36].mxu1 %vm5566_vm4, %v7147_v19  ;;  %vm2063_vm4 = vcmp.eq.s32.totalorder %v1997_v5, %v7426_v10  ;;  %v2024_v7 = vpop.permute.xlu0 %2023  ;;  %v6957_v5 = vld [vmem:[#allocation2 + $0x48c] ss:$16 sps:$4 sm:$0xff]  }
 0x184   : > { %1682 = vmatprep.mubr.bf16.mxu0 %v7144_v0  ;;  %1845 = vmatprep.mubr.bf16.mxu1 %v7144_v0  ;;  %vm5662_vm6 = vmpackc.low %vm2063_vm4, %vm2062_vm5  ;;  %vm2072_vm4 = vcmp.eq.s32.totalorder %v2024_v7, %v7426_v10 }
 0x186   : > { %4375 = vperm.xlu1 %6735, %v7587_v11   ;;  %v2015_v11 = vpop.permute.xlu1 %2014  ;;  %4396 = vperm.xlu0 %6734, %v7641_v28  }
 0x187   : > { %v2030_v13 = vpop.permute.xlu0 %2029 }
 0x18a   : > { %4381 = vperm.xlu1 %6735, %v7601_v3   ;;  %v2021_v3 = vpop.permute.xlu1 %2020  ;;  %4402 = vperm.xlu0 %6734, %v7653_v33  }
 0x18b   : > { %5569 = vmatmul.mubr.msk.bf16.gmra.mrb[40].mxu0 %vm5568_vm7, %v7147_v19  ;;  %5595 = vmatmul.mubr.msk.bf16.gmra.mrb[40].mxu1 %vm5568_vm7, %v7147_v19  ;;  %vm2065_vm7 = vcmp.eq.s32.totalorder %v2003_v57, %v7426_v10  ;;  %v2036_v28 = vpop.permute.xlu0 %2035  ;;  %v6969_v57 = vld [vmem:[#allocation2 + $0x4cc] ss:$16 sps:$4 sm:$0xff]  }
 0x18c   : > { %1692 = vmatprep.mubr.bf16.mxu0 %v7144_v0  ;;  %1855 = vmatprep.mubr.bf16.mxu1 %v7144_v0  ;;  %vm5664_vm9 = vmpackc.low %vm2065_vm7, %vm2064_vm8  ;;  %vm2074_vm7 = vcmp.eq.s32.totalorder %v2030_v13, %v7426_v10 }
 0x18e   : > { %4387 = vperm.xlu1 %6735, %v7613_v4   ;;  %4408 = vperm.xlu0 %6734, %v7663_v45   ;;  %v2027_v4 = vpop.permute.xlu1 %2026 }
 0x18f   : > { %v2042_v33 = vpop.permute.xlu0 %2041 }
 0x192   : > { %4393 = vperm.xlu1 %6735, %v7623_v8   ;;  %4414 = vperm.xlu0 %6734, %v7675_v51   ;;  %v2033_v8 = vpop.permute.xlu1 %2032 }
 0x193   : > { %5571 = vmatmul.mubr.msk.bf16.gmra.mrb[44].mxu0 %vm5570_vm10, %v7147_v19  ;;  %5597 = vmatmul.mubr.msk.bf16.gmra.mrb[44].mxu1 %vm5570_vm10, %v7147_v19  ;;  %vm2067_vm10 = vcmp.eq.s32.totalorder %v2009_v43, %v7426_v10  ;;  %v2048_v45 = vpop.permute.xlu0 %2047  ;;  %v6981_v43 = vld [vmem:[#allocation2 + $0x50c] ss:$16 sps:$4 sm:$0xff]  }
 0x194   : > { %1702 = vmatprep.mubr.bf16.mxu0 %v7144_v0  ;;  %1865 = vmatprep.mubr.bf16.mxu1 %v7144_v0  ;;  %vm5666_vm12 = vmpackc.low %vm2067_vm10, %vm2066_vm11  ;;  %vm2076_vm10 = vcmp.eq.s32.totalorder %v2036_v28, %v7426_v10 }
 0x196   : > { %4399 = vperm.xlu1 %6735, %v7635_v14   ;;  %4420 = vperm.xlu0 %6734, %v7685_v59   ;;  %v2039_v14 = vpop.permute.xlu1 %2038 }
 0x197   : > { %v2054_v51 = vpop.permute.xlu0 %2053 }
 0x19a   : > { %4405 = vperm.xlu1 %6735, %v7645_v29   ;;  %4426 = vperm.xlu0 %6734, %v7697_v27   ;;  %v2045_v29 = vpop.permute.xlu1 %2044  ;;  %v6931_v27 = vld [vmem:[#allocation2 + $0x408] ss:$16 sps:$4 sm:$0xff]  }
 0x19b   : > { %5573 = vmatmul.mubr.msk.bf16.gmra.mrb[48].mxu0 %vm5572_vm13, %v7147_v19  ;;  %5599 = vmatmul.mubr.msk.bf16.gmra.mrb[48].mxu1 %vm5572_vm13, %v7147_v19  ;;  %vm2069_vm13 = vcmp.eq.s32.totalorder %v2015_v11, %v7426_v10  ;;  %v2774_v59 = vpop.permute.xlu0 %2773 }
 0x19c   : > { %2374 = vmatprep.mubr.bf16.mxu0 %v7144_v0  ;;  %2537 = vmatprep.mubr.bf16.mxu1 %v7144_v0  ;;  %vm5668_vm15 = vmpackc.low %vm2069_vm13, %vm2068_vm14  ;;  %vm2078_vm13 = vcmp.eq.s32.totalorder %v2042_v33, %v7426_v10 }
 0x19e   : > { %4411 = vperm.xlu1 %6735, %v7657_v35   ;;  %4432 = vperm.xlu0 %6734, %v7703_v36   ;;  %v2051_v35 = vpop.permute.xlu1 %2050  ;;  %v6936_v36 = vld [vmem:[#allocation2 + $0x424] ss:$16 sps:$4 sm:$0xff]  }
 0x1a2   : > { %4417 = vperm.xlu1 %6735, %v7667_v47   ;;  %v2057_v47 = vpop.permute.xlu1 %2056 }
 0x1a3   : > { %5659 = vmatmul.mubr.msk.bf16.vlgmr.msra.gmra.mrb[0].mxu0 %vm5658_vm0, %v7147_v19  ;;  %5685 = vmatmul.mubr.msk.bf16.vlgmr.msra.gmra.mrb[0].mxu1 %vm5658_vm0, %v7147_v19  ;;  %vm2071_vm0 = vcmp.eq.s32.totalorder %v2021_v3, %v7426_v10 }
 0x1a4   : > { %3135 = vmatpush1.bf16.msra.mxu0 %v6880_v54  ;;  %3298 = vmatpush1.bf16.msra.mxu1 %v6883_v55  ;;  %vm5670_vm2 = vmpackc.low %vm2071_vm0, %vm2070_vm1  ;;  %vm2080_vm0 = vcmp.eq.s32.totalorder %v2048_v45, %v7426_v10  ;;  %v6939_v54 = vld [vmem:[#allocation2 + $0x42c] ss:$16 sps:$4 sm:$0xff]   ;;  %v6934_v55 = vld [vmem:[#allocation2 + $0x420] ss:$16 sps:$4 sm:$0xff]  }
 0x1a5   : > { %2384 = vmatprep.mubr.bf16.mxu0 %v7144_v0  ;;  %2547 = vmatprep.mubr.bf16.mxu1 %v7144_v0 }
 0x1a6   : > { %3136 = vmatprep.subr.bf16.mxu0 %v6888_v56  ;;  %3299 = vmatprep.subr.bf16.mxu1 %v6891_v61  ;;  %v6937_v56 = vld [vmem:[#allocation2 + $0x428] ss:$16 sps:$4 sm:$0xff]   ;;  %v6942_v61 = vld [vmem:[#allocation2 + $0x444] ss:$16 sps:$4 sm:$0xff]  }
 0x1a7   : > { %4423 = vperm.xlu1 %6735, %v7679_v52   ;;  %v2777_v52 = vpop.permute.xlu1 %2776 }
 0x1a8   : > { %3137 = vmatpush1.bf16.msra.mxu0 %v6886_v62  ;;  %3300 = vmatpush1.bf16.msra.mxu1 %v6889_v63  ;;  %v6945_v62 = vld [vmem:[#allocation2 + $0x44c] ss:$16 sps:$4 sm:$0xff]  }
 0x1a9   : > { %3138 = vmatprep.subr.bf16.mxu0 %v6894_v12  ;;  %3301 = vmatprep.subr.bf16.mxu1 %v6897_v15  ;;  %v2783_v12 = vpop.permute.xlu0 %2782  ;;  %v6940_v15 = vld [vmem:[#allocation2 + $0x440] ss:$16 sps:$4 sm:$0xff]  }
 0x1ab   : > { %5661 = vmatmul.mubr.msk.bf16.gmra.mrb[4].mxu0 %vm5660_vm3, %v7147_v19  ;;  %5687 = vmatmul.mubr.msk.bf16.gmra.mrb[4].mxu1 %vm5660_vm3, %v7147_v19  ;;  %vm2073_vm3 = vcmp.eq.s32.totalorder %v2027_v4, %v7426_v10  ;;  %v2780_v63 = vpop.permute.xlu1 %2779 }
 0x1ac   : > { %2394 = vmatprep.mubr.bf16.mxu0 %v7144_v0  ;;  %2557 = vmatprep.mubr.bf16.mxu1 %v7144_v0  ;;  %vm5672_vm5 = vmpackc.low %vm2073_vm3, %vm2072_vm4  ;;  %vm2082_vm3 = vcmp.eq.s32.totalorder %v2054_v51, %v7426_v10 }
 0x1ad   : > { %3139 = vmatpush1.bf16.msra.mxu0 %v6892_v18  ;;  %3302 = vmatpush1.bf16.msra.mxu1 %v6895_v20  ;;  %v6951_v18 = vld [vmem:[#allocation2 + $0x46c] ss:$16 sps:$4 sm:$0xff]   ;;  %v6946_v20 = vld [vmem:[#allocation2 + $0x460] ss:$16 sps:$4 sm:$0xff]  }
 0x1ae   : > { %3140 = vmatprep.subr.bf16.mxu0 %v6900_v22  ;;  %3303 = vmatprep.subr.bf16.mxu1 %v6903_v24  ;;  %v6949_v22 = vld [vmem:[#allocation2 + $0x468] ss:$16 sps:$4 sm:$0xff]  }
 0x1af   : > { %4429 = vperm.xlu1 %6735, %v7689_v60   ;;  %v6928_v60 = vld [vmem:[#allocation2 + $0x400] ss:$16 sps:$4 sm:$0xff]   ;;  %v2786_v24 = vpop.permute.xlu1 %2785 }
 0x1b1   : > { %3141 = vmatpush1.bf16.msra.mxu0 %v6898_v25  ;;  %3304 = vmatpush1.bf16.msra.mxu1 %v6901_v26  ;;  %v2789_v25 = vpop.permute.xlu0 %2788  ;;  %v6954_v26 = vld [vmem:[#allocation2 + $0x484] ss:$16 sps:$4 sm:$0xff]  }
 0x1b2   : > { %3142 = vmatprep.subr.bf16.mxu0 %v6906_v21  ;;  %3305 = vmatprep.subr.bf16.mxu1 %v6909_v34  ;;  %v6955_v21 = vld [vmem:[#allocation2 + $0x488] ss:$16 sps:$4 sm:$0xff]   ;;  %v6960_v34 = vld [vmem:[#allocation2 + $0x4a4] ss:$16 sps:$4 sm:$0xff]  }
 0x1b3   : > { %5663 = vmatmul.mubr.msk.bf16.gmra.mrb[8].mxu0 %vm5662_vm6, %v7147_v19  ;;  %5689 = vmatmul.mubr.msk.bf16.gmra.mrb[8].mxu1 %vm5662_vm6, %v7147_v19  ;;  %vm2075_vm6 = vcmp.eq.s32.totalorder %v2033_v8, %v7426_v10 }
 0x1b4   : > { %2404 = vmatprep.mubr.bf16.mxu0 %v7144_v0  ;;  %2567 = vmatprep.mubr.bf16.mxu1 %v7144_v0  ;;  %vm5674_vm8 = vmpackc.low %vm2075_vm6, %vm2074_vm7  ;;  %vm2850_vm6 = vcmp.eq.s32.totalorder %v2774_v59, %v7426_v10  ;;  %v6979_v59 = vld [vmem:[#allocation2 + $0x508] ss:$16 sps:$4 sm:$0xff]  }
 0x1b5   : > { %3143 = vmatpush1.bf16.msra.mxu0 %v6904_v32  ;;  %3306 = vmatpush1.bf16.msra.mxu1 %v6907_v23  ;;  %v6963_v32 = vld [vmem:[#allocation2 + $0x4ac] ss:$16 sps:$4 sm:$0xff]   ;;  %v6958_v23 = vld [vmem:[#allocation2 + $0x4a0] ss:$16 sps:$4 sm:$0xff]  }
 0x1b6   : > { %3144 = vmatprep.subr.bf16.mxu0 %v6912_v40  ;;  %3307 = vmatprep.subr.bf16.mxu1 %v6915_v41  ;;  %v6961_v40 = vld [vmem:[#allocation2 + $0x4a8] ss:$16 sps:$4 sm:$0xff]   ;;  %v2792_v41 = vpop.permute.xlu1 %2791 }
 0x1b9   : > { %3145 = vmatpush1.bf16.msra.mxu0 %v6910_v44  ;;  %3308 = vmatpush1.bf16.msra.mxu1 %v6913_v9  ;;  %v2795_v44 = vpop.permute.xlu0 %2794  ;;  %v6966_v9 = vld [vmem:[#allocation2 + $0x4c4] ss:$16 sps:$4 sm:$0xff]  }
 0x1ba   : > { %3146 = vmatprep.subr.bf16.mxu0 %v6918_v30  ;;  %3309 = vmatprep.subr.bf16.mxu1 %v6921_v31  ;;  %v6967_v30 = vld [vmem:[#allocation2 + $0x4c8] ss:$16 sps:$4 sm:$0xff]   ;;  %v6972_v31 = vld [vmem:[#allocation2 + $0x4e4] ss:$16 sps:$4 sm:$0xff]  }
 0x1bb   : > { %5665 = vmatmul.mubr.msk.bf16.gmra.mrb[12].mxu0 %vm5664_vm9, %v7147_v19  ;;  %5691 = vmatmul.mubr.msk.bf16.gmra.mrb[12].mxu1 %vm5664_vm9, %v7147_v19  ;;  %vm2077_vm9 = vcmp.eq.s32.totalorder %v2039_v14, %v7426_v10 }
 0x1bc   : > { %2414 = vmatprep.mubr.bf16.mxu0 %v7144_v0  ;;  %2577 = vmatprep.mubr.bf16.mxu1 %v7144_v0  ;;  %vm5676_vm11 = vmpackc.low %vm2077_vm9, %vm2076_vm10  ;;  %vm2853_vm9 = vcmp.eq.s32.totalorder %v2783_v12, %v7426_v10  ;;  %v6996_v12 = vld [vmem:[#allocation2 + $0x564] ss:$16 sps:$4 sm:$0xff]  }
 0x1bd   : > { %3147 = vmatpush1.bf16.msra.mxu0 %v6916_v37  ;;  %3310 = vmatpush1.bf16.msra.mxu1 %v6919_v38  ;;  %v6975_v37 = vld [vmem:[#allocation2 + $0x4ec] ss:$16 sps:$4 sm:$0xff]   ;;  %v6970_v38 = vld [vmem:[#allocation2 + $0x4e0] ss:$16 sps:$4 sm:$0xff]  }
 0x1be   : > { %3148 = vmatprep.subr.bf16.mxu0 %v6924_v39  ;;  %3311 = vmatprep.subr.bf16.mxu1 %v6927_v42  ;;  %v6973_v39 = vld [vmem:[#allocation2 + $0x4e8] ss:$16 sps:$4 sm:$0xff]   ;;  %v2798_v42 = vpop.permute.xlu1 %2797 }
 0x1c1   : > { %3149 = vmatpush1.bf16.msra.mxu0 %v6922_v46  ;;  %3312 = vmatpush1.bf16.msra.mxu1 %v6925_v2  ;;  %v2801_v46 = vpop.permute.xlu0 %2800  ;;  %v6978_v2 = vld [vmem:[#allocation2 + $0x504] ss:$16 sps:$4 sm:$0xff]  }
 0x1c2   : > { %3926 = vmatprep.subr.bf16.mxu0 %v6930_v49  ;;  %4089 = vmatprep.subr.bf16.mxu1 %v6933_v50  ;;  %v2804_v48 = vpop.permute.xlu1 %2803 }
 0x1c3   : > { %5667 = vmatmul.mubr.msk.bf16.gmra.mrb[16].mxu0 %vm5666_vm12, %v7147_v19  ;;  %5693 = vmatmul.mubr.msk.bf16.gmra.mrb[16].mxu1 %vm5666_vm12, %v7147_v19  ;;  %vm2079_vm12 = vcmp.eq.s32.totalorder %v2045_v29, %v7426_v10 }
 0x1c4   : > { %2424 = vmatprep.mubr.bf16.mxu0 %v7144_v0  ;;  %2587 = vmatprep.mubr.bf16.mxu1 %v7144_v0  ;;  %vm5678_vm14 = vmpackc.low %vm2079_vm12, %vm2078_vm13  ;;  %vm2855_vm12 = vcmp.eq.s32.totalorder %v2789_v25, %v7426_v10  ;;  %v7000_v25 = vld [vmem:[#allocation2 + $0x580] ss:$16 sps:$4 sm:$0xff]  }
 0x1c5   : > { %v2807_v49 = vpop.permute.xlu0 %2806 }
 0x1c6   : > { %v2810_v50 = vpop.permute.xlu1 %2809 }
 0x1c9   : > { %v2813_v11 = vpop.permute.xlu0 %2812 }
 0x1ca   : > { %v2816_v53 = vpop.permute.xlu1 %2815 }
 0x1cb   : > { %5669 = vmatmul.mubr.msk.bf16.gmra.mrb[20].mxu0 %vm5668_vm15, %v7147_v19  ;;  %5695 = vmatmul.mubr.msk.bf16.gmra.mrb[20].mxu1 %vm5668_vm15, %v7147_v19  ;;  %vm2081_vm15 = vcmp.eq.s32.totalorder %v2051_v35, %v7426_v10 }
 0x1cc   : > { %2434 = vmatprep.mubr.bf16.mxu0 %v7144_v0  ;;  %2597 = vmatprep.mubr.bf16.mxu1 %v7144_v0  ;;  %vm5680_vm1 = vmpackc.low %vm2081_vm15, %vm2080_vm0  ;;  %vm2857_vm15 = vcmp.eq.s32.totalorder %v2795_v44, %v7426_v10  ;;  %v7012_v44 = vld [vmem:[#allocation2 + $0x5c0] ss:$16 sps:$4 sm:$0xff]  }
 0x1cd   : > { %v2819_v3 = vpop.permute.xlu0 %2818 }
 0x1ce   : > { %v2822_v1 = vpop.permute.xlu1 %2821 }
 0x1d1   : > { %v2825_v4 = vpop.permute.xlu0 %2824 }
 0x1d2   : > { %v2828_v7 = vpop.permute.xlu1 %2827 }
 0x1d3   : > { %5671 = vmatmul.mubr.msk.bf16.gmra.mrb[24].mxu0 %vm5670_vm2, %v7147_v19  ;;  %5697 = vmatmul.mubr.msk.bf16.gmra.mrb[24].mxu1 %vm5670_vm2, %v7147_v19  ;;  %vm2083_vm2 = vcmp.eq.s32.totalorder %v2057_v47, %v7426_v10 }
 0x1d4   : > { %2444 = vmatprep.mubr.bf16.mxu0 %v7144_v0  ;;  %2607 = vmatprep.mubr.bf16.mxu1 %v7144_v0  ;;  %vm5682_vm4 = vmpackc.low %vm2083_vm2, %vm2082_vm3  ;;  %vm2859_vm2 = vcmp.eq.s32.totalorder %v2801_v46, %v7426_v10 }
 0x1d5   : > { %v2831_v8 = vpop.permute.xlu0 %2830 }
 0x1d6   : > { %v2834_v13 = vpop.permute.xlu1 %2833 }
 0x1d9   : > { %v2837_v14 = vpop.permute.xlu0 %2836 }
 0x1da   : > { %v2840_v28 = vpop.permute.xlu1 %2839 }
 0x1db   : > { %5673 = vmatmul.mubr.msk.bf16.gmra.mrb[28].mxu0 %vm5672_vm5, %v7147_v19  ;;  %5699 = vmatmul.mubr.msk.bf16.gmra.mrb[28].mxu1 %vm5672_vm5, %v7147_v19  ;;  %vm2851_vm5 = vcmp.eq.s32.totalorder %v2777_v52, %v7426_v10  ;;  %v6976_v52 = vld [vmem:[#allocation2 + $0x500] ss:$16 sps:$4 sm:$0xff]  }
 0x1dc   : > { %2454 = vmatprep.mubr.bf16.mxu0 %v7144_v0  ;;  %2617 = vmatprep.mubr.bf16.mxu1 %v7144_v0  ;;  %vm5768_vm7 = vmpackc.low %vm2851_vm5, %vm2850_vm6  ;;  %vm2861_vm5 = vcmp.eq.s32.totalorder %v2807_v49, %v7426_v10 }
 0x1dd   : > { %v2843_v29 = vpop.permute.xlu0 %2842 }
 0x1de   : > { %v2846_v33 = vpop.permute.xlu1 %2845 }
 0x1e1   : > { %v2849_v35 = vpop.permute.xlu0 %2848 }
 0x1e2   : > { %v3566_v45 = vpop.permute.xlu1 %3565 }
 0x1e3   : > { %5675 = vmatmul.mubr.msk.bf16.gmra.mrb[32].mxu0 %vm5674_vm8, %v7147_v19  ;;  %5701 = vmatmul.mubr.msk.bf16.gmra.mrb[32].mxu1 %vm5674_vm8, %v7147_v19  ;;  %vm2852_vm8 = vcmp.eq.s32.totalorder %v2780_v63, %v7426_v10  ;;  %v6991_v63 = vld [vmem:[#allocation2 + $0x548] ss:$16 sps:$4 sm:$0xff]  }
 0x1e4   : > { %2464 = vmatprep.mubr.bf16.mxu0 %v7144_v0  ;;  %2627 = vmatprep.mubr.bf16.mxu1 %v7144_v0  ;;  %vm5770_vm10 = vmpackc.low %vm2853_vm9, %vm2852_vm8  ;;  %vm2863_vm8 = vcmp.eq.s32.totalorder %v2813_v11, %v7426_v10 }
 0x1e5   : > { %v3569_v47 = vpop.permute.xlu0 %3568 }
 0x1e6   : > { %v3572_v51 = vpop.permute.xlu1 %3571 }
 0x1eb   : > { %5677 = vmatmul.mubr.msk.bf16.gmra.mrb[36].mxu0 %vm5676_vm11, %v7147_v19  ;;  %5703 = vmatmul.mubr.msk.bf16.gmra.mrb[36].mxu1 %vm5676_vm11, %v7147_v19  ;;  %vm2854_vm11 = vcmp.eq.s32.totalorder %v2786_v24, %v7426_v10  ;;  %v7005_v24 = vld [vmem:[#allocation2 + $0x58c] ss:$16 sps:$4 sm:$0xff]  }
 0x1ec   : > { %2474 = vmatprep.mubr.bf16.mxu0 %v7144_v0  ;;  %2637 = vmatprep.mubr.bf16.mxu1 %v7144_v0  ;;  %vm5772_vm13 = vmpackc.low %vm2855_vm12, %vm2854_vm11  ;;  %vm2865_vm11 = vcmp.eq.s32.totalorder %v2819_v3, %v7426_v10 }
 0x1f3   : > { %5679 = vmatmul.mubr.msk.bf16.gmra.mrb[40].mxu0 %vm5678_vm14, %v7147_v19  ;;  %5705 = vmatmul.mubr.msk.bf16.gmra.mrb[40].mxu1 %vm5678_vm14, %v7147_v19  ;;  %vm2856_vm14 = vcmp.eq.s32.totalorder %v2792_v41, %v7426_v10  ;;  %v7017_v41 = vld [vmem:[#allocation2 + $0x5cc] ss:$16 sps:$4 sm:$0xff]  }
 0x1f4   : > { %2484 = vmatprep.mubr.bf16.mxu0 %v7144_v0  ;;  %2647 = vmatprep.mubr.bf16.mxu1 %v7144_v0  ;;  %vm5774_vm0 = vmpackc.low %vm2857_vm15, %vm2856_vm14  ;;  %vm2867_vm14 = vcmp.eq.s32.totalorder %v2825_v4, %v7426_v10 }
 0x1fb   : > { %5681 = vmatmul.mubr.msk.bf16.gmra.mrb[44].mxu0 %vm5680_vm1, %v7147_v19  ;;  %5707 = vmatmul.mubr.msk.bf16.gmra.mrb[44].mxu1 %vm5680_vm1, %v7147_v19  ;;  %vm2858_vm1 = vcmp.eq.s32.totalorder %v2798_v42, %v7426_v10 }
 0x1fc   : > { %2494 = vmatprep.mubr.bf16.mxu0 %v7144_v0  ;;  %2657 = vmatprep.mubr.bf16.mxu1 %v7144_v0  ;;  %vm5776_vm3 = vmpackc.low %vm2859_vm2, %vm2858_vm1  ;;  %vm2869_vm1 = vcmp.eq.s32.totalorder %v2831_v8, %v7426_v10 }
 0x203   : > { %5683 = vmatmul.mubr.msk.bf16.gmra.mrb[48].mxu0 %vm5682_vm4, %v7147_v19  ;;  %5709 = vmatmul.mubr.msk.bf16.gmra.mrb[48].mxu1 %vm5682_vm4, %v7147_v19  ;;  %vm2860_vm4 = vcmp.eq.s32.totalorder %v2804_v48, %v7426_v10 }
 0x204   : > { %3166 = vmatprep.mubr.bf16.mxu0 %v7144_v0  ;;  %3329 = vmatprep.mubr.bf16.mxu1 %v7144_v0  ;;  %vm5778_vm6 = vmpackc.low %vm2861_vm5, %vm2860_vm4  ;;  %vm2871_vm4 = vcmp.eq.s32.totalorder %v2837_v14, %v7426_v10 }
 0x20b   : > { %5769 = vmatmul.mubr.msk.bf16.vlgmr.msra.gmra.mrb[0].mxu0 %vm5768_vm7, %v7147_v19  ;;  %5795 = vmatmul.mubr.msk.bf16.vlgmr.msra.gmra.mrb[0].mxu1 %vm5768_vm7, %v7147_v19  ;;  %vm2862_vm7 = vcmp.eq.s32.totalorder %v2810_v50, %v7426_v10 }
 0x20c   : > { %3927 = vmatpush1.bf16.msra.mxu0 %v6928_v60  ;;  %4090 = vmatpush1.bf16.msra.mxu1 %v6931_v27  ;;  %vm5780_vm9 = vmpackc.low %vm2863_vm8, %vm2862_vm7  ;;  %vm2873_vm7 = vcmp.eq.s32.totalorder %v2843_v29, %v7426_v10  ;;  %v6984_v60 = vld [vmem:[#allocation2 + $0x524] ss:$16 sps:$4 sm:$0xff]   ;;  %v6987_v27 = vld [vmem:[#allocation2 + $0x52c] ss:$16 sps:$4 sm:$0xff]  }
 0x20d   : > { %3176 = vmatprep.mubr.bf16.mxu0 %v7144_v0  ;;  %3339 = vmatprep.mubr.bf16.mxu1 %v7144_v0 }
 0x20e   : > { %3928 = vmatprep.subr.bf16.mxu0 %v6936_v36  ;;  %4091 = vmatprep.subr.bf16.mxu1 %v6939_v54  ;;  %v6982_v36 = vld [vmem:[#allocation2 + $0x520] ss:$16 sps:$4 sm:$0xff]   ;;  %v6985_v54 = vld [vmem:[#allocation2 + $0x528] ss:$16 sps:$4 sm:$0xff]  }
 0x210   : > { %3929 = vmatpush1.bf16.msra.mxu0 %v6934_v55  ;;  %4092 = vmatpush1.bf16.msra.mxu1 %v6937_v56  ;;  %v6990_v55 = vld [vmem:[#allocation2 + $0x544] ss:$16 sps:$4 sm:$0xff]   ;;  %v6993_v56 = vld [vmem:[#allocation2 + $0x54c] ss:$16 sps:$4 sm:$0xff]  }
 0x211   : > { %3930 = vmatprep.subr.bf16.mxu0 %v6942_v61  ;;  %4093 = vmatprep.subr.bf16.mxu1 %v6945_v62  ;;  %v3575_v61 = vpop.permute.xlu1 %3574  ;;  %v6988_v62 = vld [vmem:[#allocation2 + $0x540] ss:$16 sps:$4 sm:$0xff]  }
 0x213   : > { %5771 = vmatmul.mubr.msk.bf16.gmra.mrb[4].mxu0 %vm5770_vm10, %v7147_v19  ;;  %5797 = vmatmul.mubr.msk.bf16.gmra.mrb[4].mxu1 %vm5770_vm10, %v7147_v19  ;;  %vm2864_vm10 = vcmp.eq.s32.totalorder %v2816_v53, %v7426_v10 }
 0x214   : > { %3186 = vmatprep.mubr.bf16.mxu0 %v7144_v0  ;;  %3349 = vmatprep.mubr.bf16.mxu1 %v7144_v0  ;;  %vm5782_vm12 = vmpackc.low %vm2865_vm11, %vm2864_vm10  ;;  %vm2875_vm10 = vcmp.eq.s32.totalorder %v2849_v35, %v7426_v10 }
 0x215   : > { %3931 = vmatpush1.bf16.msra.mxu0 %v6940_v15  ;;  %4094 = vmatpush1.bf16.msra.mxu1 %v6943_v16  ;;  %v6999_v15 = vld [vmem:[#allocation2 + $0x56c] ss:$16 sps:$4 sm:$0xff]   ;;  %v6994_v16 = vld [vmem:[#allocation2 + $0x560] ss:$16 sps:$4 sm:$0xff]  }
 0x216   : > { %3932 = vmatprep.subr.bf16.mxu0 %v6948_v17  ;;  %4095 = vmatprep.subr.bf16.mxu1 %v6951_v18  ;;  %v6997_v17 = vld [vmem:[#allocation2 + $0x568] ss:$16 sps:$4 sm:$0xff]   ;;  %v3581_v18 = vpop.permute.xlu1 %3580 }
 0x219   : > { %3933 = vmatpush1.bf16.msra.mxu0 %v6946_v20  ;;  %4096 = vmatpush1.bf16.msra.mxu1 %v6949_v22  ;;  %v3578_v20 = vpop.permute.xlu0 %3577  ;;  %v7002_v22 = vld [vmem:[#allocation2 + $0x584] ss:$16 sps:$4 sm:$0xff]  }
 0x21a   : > { %3934 = vmatprep.subr.bf16.mxu0 %v6954_v26  ;;  %4097 = vmatprep.subr.bf16.mxu1 %v6957_v5  ;;  %v7003_v26 = vld [vmem:[#allocation2 + $0x588] ss:$16 sps:$4 sm:$0xff]   ;;  %v7008_v5 = vld [vmem:[#allocation2 + $0x5a4] ss:$16 sps:$4 sm:$0xff]  }
 0x21b   : > { %5773 = vmatmul.mubr.msk.bf16.gmra.mrb[8].mxu0 %vm5772_vm13, %v7147_v19  ;;  %5799 = vmatmul.mubr.msk.bf16.gmra.mrb[8].mxu1 %vm5772_vm13, %v7147_v19  ;;  %vm2866_vm13 = vcmp.eq.s32.totalorder %v2822_v1, %v7426_v10 }
 0x21c   : > { %3196 = vmatprep.mubr.bf16.mxu0 %v7144_v0  ;;  %3359 = vmatprep.mubr.bf16.mxu1 %v7144_v0  ;;  %vm5784_vm15 = vmpackc.low %vm2867_vm14, %vm2866_vm13  ;;  %vm3643_vm13 = vcmp.eq.s32.totalorder %v3569_v47, %v7426_v10 }
 0x21d   : > { %3935 = vmatpush1.bf16.msra.mxu0 %v6952_v6  ;;  %4098 = vmatpush1.bf16.msra.mxu1 %v6955_v21  ;;  %v7011_v6 = vld [vmem:[#allocation2 + $0x5ac] ss:$16 sps:$4 sm:$0xff]   ;;  %v7006_v21 = vld [vmem:[#allocation2 + $0x5a0] ss:$16 sps:$4 sm:$0xff]  }
 0x21e   : > { %3936 = vmatprep.subr.bf16.mxu0 %v6960_v34  ;;  %4099 = vmatprep.subr.bf16.mxu1 %v6963_v32  ;;  %v7009_v34 = vld [vmem:[#allocation2 + $0x5a8] ss:$16 sps:$4 sm:$0xff]   ;;  %v3587_v32 = vpop.permute.xlu1 %3586 }
 0x221   : > { %3937 = vmatpush1.bf16.msra.mxu0 %v6958_v23  ;;  %4100 = vmatpush1.bf16.msra.mxu1 %v6961_v40  ;;  %v3584_v23 = vpop.permute.xlu0 %3583  ;;  %v7014_v40 = vld [vmem:[#allocation2 + $0x5c4] ss:$16 sps:$4 sm:$0xff]  }
 0x222   : > { %3938 = vmatprep.subr.bf16.mxu0 %v6966_v9  ;;  %4101 = vmatprep.subr.bf16.mxu1 %v6969_v57  ;;  %v7015_v9 = vld [vmem:[#allocation2 + $0x5c8] ss:$16 sps:$4 sm:$0xff]   ;;  %v7020_v57 = vld [vmem:[#allocation2 + $0x5e4] ss:$16 sps:$4 sm:$0xff]  }
 0x223   : > { %5775 = vmatmul.mubr.msk.bf16.gmra.mrb[12].mxu0 %vm5774_vm0, %v7147_v19  ;;  %5801 = vmatmul.mubr.msk.bf16.gmra.mrb[12].mxu1 %vm5774_vm0, %v7147_v19  ;;  %vm2868_vm0 = vcmp.eq.s32.totalorder %v2828_v7, %v7426_v10 }
 0x224   : > { %3206 = vmatprep.mubr.bf16.mxu0 %v7144_v0  ;;  %3369 = vmatprep.mubr.bf16.mxu1 %v7144_v0  ;;  %vm5786_vm2 = vmpackc.low %vm2869_vm1, %vm2868_vm0  ;;  %vm3645_vm0 = vcmp.eq.s32.totalorder %v3575_v61, %v7426_v10 }
 0x225   : > { %3939 = vmatpush1.bf16.msra.mxu0 %v6964_v58  ;;  %4102 = vmatpush1.bf16.msra.mxu1 %v6967_v30  ;;  %v7023_v58 = vld [vmem:[#allocation2 + $0x5ec] ss:$16 sps:$4 sm:$0xff]   ;;  %v7018_v30 = vld [vmem:[#allocation2 + $0x5e0] ss:$16 sps:$4 sm:$0xff]  }
 0x226   : > { %3940 = vmatprep.subr.bf16.mxu0 %v6972_v31  ;;  %4103 = vmatprep.subr.bf16.mxu1 %v6975_v37  ;;  %v7021_v31 = vld [vmem:[#allocation2 + $0x5e8] ss:$16 sps:$4 sm:$0xff]   ;;  %v3593_v37 = vpop.permute.xlu1 %3592 }
 0x229   : > { %3941 = vmatpush1.bf16.msra.mxu0 %v6970_v38  ;;  %4104 = vmatpush1.bf16.msra.mxu1 %v6973_v39  ;;  %v3590_v38 = vpop.permute.xlu0 %3589 }
 0x22a   : > { %4718 = vmatprep.subr.bf16.mxu0 %v6978_v2  ;;  %4881 = vmatprep.subr.bf16.mxu1 %v6981_v43  ;;  %v3599_v39 = vpop.permute.xlu1 %3598 }
 0x22b   : > { %5777 = vmatmul.mubr.msk.bf16.gmra.mrb[16].mxu0 %vm5776_vm3, %v7147_v19  ;;  %5803 = vmatmul.mubr.msk.bf16.gmra.mrb[16].mxu1 %vm5776_vm3, %v7147_v19  ;;  %vm2870_vm3 = vcmp.eq.s32.totalorder %v2834_v13, %v7426_v10 }
 0x22c   : > { %3216 = vmatprep.mubr.bf16.mxu0 %v7144_v0  ;;  %3379 = vmatprep.mubr.bf16.mxu1 %v7144_v0  ;;  %vm5788_vm5 = vmpackc.low %vm2871_vm4, %vm2870_vm3  ;;  %vm3646_vm3 = vcmp.eq.s32.totalorder %v3578_v20, %v7426_v10 }
 0x22d   : > { %v3596_v42 = vpop.permute.xlu0 %3595 }
 0x22e   : > { %v3605_v46 = vpop.permute.xlu1 %3604 }
 0x231   : > { %v3602_v2 = vpop.permute.xlu0 %3601 }
 0x232   : > { %v3611_v43 = vpop.permute.xlu1 %3610 }
 0x233   : > { %5779 = vmatmul.mubr.msk.bf16.gmra.mrb[20].mxu0 %vm5778_vm6, %v7147_v19  ;;  %5805 = vmatmul.mubr.msk.bf16.gmra.mrb[20].mxu1 %vm5778_vm6, %v7147_v19  ;;  %vm2872_vm6 = vcmp.eq.s32.totalorder %v2840_v28, %v7426_v10 }
 0x234   : > { %3226 = vmatprep.mubr.bf16.mxu0 %v7144_v0  ;;  %3389 = vmatprep.mubr.bf16.mxu1 %v7144_v0  ;;  %vm5790_vm8 = vmpackc.low %vm2873_vm7, %vm2872_vm6  ;;  %vm3648_vm6 = vcmp.eq.s32.totalorder %v3584_v23, %v7426_v10 }
 0x235   : > { %v3608_v48 = vpop.permute.xlu0 %3607 }
 0x236   : > { %v3617_v49 = vpop.permute.xlu1 %3616 }
 0x239   : > { %v3614_v50 = vpop.permute.xlu0 %3613 }
 0x23a   : > { %v3623_v11 = vpop.permute.xlu1 %3622 }
 0x23b   : > { %5781 = vmatmul.mubr.msk.bf16.gmra.mrb[24].mxu0 %vm5780_vm9, %v7147_v19  ;;  %5807 = vmatmul.mubr.msk.bf16.gmra.mrb[24].mxu1 %vm5780_vm9, %v7147_v19  ;;  %vm2874_vm9 = vcmp.eq.s32.totalorder %v2846_v33, %v7426_v10 }
 0x23c   : > { %3236 = vmatprep.mubr.bf16.mxu0 %v7144_v0  ;;  %3399 = vmatprep.mubr.bf16.mxu1 %v7144_v0  ;;  %vm5792_vm11 = vmpackc.low %vm2875_vm10, %vm2874_vm9  ;;  %vm3650_vm9 = vcmp.eq.s32.totalorder %v3590_v38, %v7426_v10 }
 0x23d   : > { %v3620_v53 = vpop.permute.xlu0 %3619 }
 0x23e   : > { %v3629_v3 = vpop.permute.xlu1 %3628 }
 0x241   : > { %v3626_v1 = vpop.permute.xlu0 %3625 }
 0x242   : > { %v3635_v4 = vpop.permute.xlu1 %3634 }
 0x243   : > { %5783 = vmatmul.mubr.msk.bf16.gmra.mrb[28].mxu0 %vm5782_vm12, %v7147_v19  ;;  %5809 = vmatmul.mubr.msk.bf16.gmra.mrb[28].mxu1 %vm5782_vm12, %v7147_v19  ;;  %vm3642_vm12 = vcmp.eq.s32.totalorder %v3566_v45, %v7426_v10 }
 0x244   : > { %3246 = vmatprep.mubr.bf16.mxu0 %v7144_v0  ;;  %3409 = vmatprep.mubr.bf16.mxu1 %v7144_v0  ;;  %vm5878_vm14 = vmpackc.low %vm3643_vm13, %vm3642_vm12  ;;  %vm3652_vm12 = vcmp.eq.s32.totalorder %v3596_v42, %v7426_v10 }
 0x245   : > { %v3632_v7 = vpop.permute.xlu0 %3631 }
 0x246   : > { %v3641_v8 = vpop.permute.xlu1 %3640 }
 0x249   : > { %v3638_v13 = vpop.permute.xlu0 %3637 }
 0x24a   : > { %v4361_v14 = vpop.permute.xlu1 %4360 }
 0x24b   : > { %5785 = vmatmul.mubr.msk.bf16.gmra.mrb[32].mxu0 %vm5784_vm15, %v7147_v19  ;;  %5811 = vmatmul.mubr.msk.bf16.gmra.mrb[32].mxu1 %vm5784_vm15, %v7147_v19  ;;  %vm3644_vm15 = vcmp.eq.s32.totalorder %v3572_v51, %v7426_v10 }
 0x24c   : > { %3256 = vmatprep.mubr.bf16.mxu0 %v7144_v0  ;;  %3419 = vmatprep.mubr.bf16.mxu1 %v7144_v0  ;;  %vm5880_vm1 = vmpackc.low %vm3645_vm0, %vm3644_vm15  ;;  %vm3654_vm15 = vcmp.eq.s32.totalorder %v3602_v2, %v7426_v10  ;;  %v303_v2 = vld [vmem:[#allocation4 + $0x50] sm:$0xff] }
 0x24d   : > { %v4358_v28 = vpop.permute.xlu0 %4357 }
 0x24e   : > { %v4364_v29 = vpop.permute.xlu1 %4363 }
 0x251   : > { %v4367_v33 = vpop.permute.xlu0 %4366 }
 0x252   : > { %v4370_v35 = vpop.permute.xlu1 %4369 }
 0x253   : > { %5787 = vmatmul.mubr.msk.bf16.gmra.mrb[36].mxu0 %vm5786_vm2, %v7147_v19  ;;  %5813 = vmatmul.mubr.msk.bf16.gmra.mrb[36].mxu1 %vm5786_vm2, %v7147_v19  ;;  %vm3647_vm2 = vcmp.eq.s32.totalorder %v3581_v18, %v7426_v10 }
 0x254   : > { %3266 = vmatprep.mubr.bf16.mxu0 %v7144_v0  ;;  %3429 = vmatprep.mubr.bf16.mxu1 %v7144_v0  ;;  %vm5882_vm4 = vmpackc.low %vm3647_vm2, %vm3646_vm3  ;;  %vm3656_vm2 = vcmp.eq.s32.totalorder %v3608_v48, %v7426_v10  ;;  %v304_v48 = vld [vmem:[#allocation4 + $0x58] sm:$0xff] }
 0x255   : > { %v4373_v45 = vpop.permute.xlu0 %4372 }
 0x256   : > { %v4376_v47 = vpop.permute.xlu1 %4375 }
 0x259   : > { %v4379_v51 = vpop.permute.xlu0 %4378 }
 0x25b   : > { %5789 = vmatmul.mubr.msk.bf16.gmra.mrb[40].mxu0 %vm5788_vm5, %v7147_v19  ;;  %5815 = vmatmul.mubr.msk.bf16.gmra.mrb[40].mxu1 %vm5788_vm5, %v7147_v19  ;;  %vm3649_vm5 = vcmp.eq.s32.totalorder %v3587_v32, %v7426_v10 }
 0x25c   : > { %3276 = vmatprep.mubr.bf16.mxu0 %v7144_v0  ;;  %3439 = vmatprep.mubr.bf16.mxu1 %v7144_v0  ;;  %vm5884_vm7 = vmpackc.low %vm3649_vm5, %vm3648_vm6  ;;  %vm3658_vm5 = vcmp.eq.s32.totalorder %v3614_v50, %v7426_v10 }
 0x263   : > { %5791 = vmatmul.mubr.msk.bf16.gmra.mrb[44].mxu0 %vm5790_vm8, %v7147_v19  ;;  %5817 = vmatmul.mubr.msk.bf16.gmra.mrb[44].mxu1 %vm5790_vm8, %v7147_v19  ;;  %vm3651_vm8 = vcmp.eq.s32.totalorder %v3593_v37, %v7426_v10 }
 0x264   : > { %3286 = vmatprep.mubr.bf16.mxu0 %v7144_v0  ;;  %3449 = vmatprep.mubr.bf16.mxu1 %v7144_v0  ;;  %vm5886_vm10 = vmpackc.low %vm3651_vm8, %vm3650_vm9  ;;  %vm3660_vm8 = vcmp.eq.s32.totalorder %v3620_v53, %v7426_v10  ;;  %v307_v53 = vld [vmem:[#allocation4 + $0x70] sm:$0xff] }
 0x26b   : > { %5793 = vmatmul.mubr.msk.bf16.gmra.mrb[48].mxu0 %vm5792_vm11, %v7147_v19  ;;  %5819 = vmatmul.mubr.msk.bf16.gmra.mrb[48].mxu1 %vm5792_vm11, %v7147_v19  ;;  %vm3653_vm11 = vcmp.eq.s32.totalorder %v3599_v39, %v7426_v10 }
 0x26c   : > { %3958 = vmatprep.mubr.bf16.mxu0 %v7144_v0  ;;  %4121 = vmatprep.mubr.bf16.mxu1 %v7144_v0  ;;  %vm5888_vm13 = vmpackc.low %vm3653_vm11, %vm3652_vm12  ;;  %vm3662_vm11 = vcmp.eq.s32.totalorder %v3626_v1, %v7426_v10 }
 0x273   : > { %5879 = vmatmul.mubr.msk.bf16.vlgmr.msra.gmra.mrb[0].mxu0 %vm5878_vm14, %v7147_v19  ;;  %5905 = vmatmul.mubr.msk.bf16.vlgmr.msra.gmra.mrb[0].mxu1 %vm5878_vm14, %v7147_v19  ;;  %vm3655_vm14 = vcmp.eq.s32.totalorder %v3605_v46, %v7426_v10  ;;  %v301_v46 = vld [vmem:[#allocation4 + $0x40] sm:$0xff] }
 0x274   : > { %4719 = vmatpush1.bf16.msra.mxu0 %v6976_v52  ;;  %4882 = vmatpush1.bf16.msra.mxu1 %v6979_v59  ;;  %vm5890_vm0 = vmpackc.low %vm3655_vm14, %vm3654_vm15  ;;  %vm3664_vm14 = vcmp.eq.s32.totalorder %v3632_v7, %v7426_v10  ;;  %v4382_v52 = vpop.permute.xlu1 %4381  ;;  %v4385_v59 = vpop.permute.xlu0 %4384 }
 0x275   : > { %3968 = vmatprep.mubr.bf16.mxu0 %v7144_v0  ;;  %4131 = vmatprep.mubr.bf16.mxu1 %v7144_v0 }
 0x276   : > { %4720 = vmatprep.subr.bf16.mxu0 %v6984_v60  ;;  %4883 = vmatprep.subr.bf16.mxu1 %v6987_v27 }
 0x278   : > { %4721 = vmatpush1.bf16.msra.mxu0 %v6982_v36  ;;  %4884 = vmatpush1.bf16.msra.mxu1 %v6985_v54  ;;  %v4388_v60 = vpop.permute.xlu1 %4387  ;;  %v4391_v27 = vpop.permute.xlu0 %4390 }
 0x279   : > { %4722 = vmatprep.subr.bf16.mxu0 %v6990_v55  ;;  %4885 = vmatprep.subr.bf16.mxu1 %v6993_v56 }
 0x27b   : > { %5881 = vmatmul.mubr.msk.bf16.gmra.mrb[4].mxu0 %vm5880_vm1, %v7147_v19  ;;  %5907 = vmatmul.mubr.msk.bf16.gmra.mrb[4].mxu1 %vm5880_vm1, %v7147_v19  ;;  %vm3657_vm1 = vcmp.eq.s32.totalorder %v3611_v43, %v7426_v10  ;;  %v302_v43 = vld [vmem:[#allocation4 + $0x48] sm:$0xff] }
 0x27c   : > { %3978 = vmatprep.mubr.bf16.mxu0 %v7144_v0  ;;  %4141 = vmatprep.mubr.bf16.mxu1 %v7144_v0  ;;  %vm5892_vm3 = vmpackc.low %vm3657_vm1, %vm3656_vm2  ;;  %vm3666_vm1 = vcmp.eq.s32.totalorder %v3638_v13, %v7426_v10  ;;  %v4394_v36 = vpop.permute.xlu1 %4393  ;;  %v4397_v54 = vpop.permute.xlu0 %4396  ;;  %v308_v13 = vld [vmem:[#allocation4 + $0x78] sm:$0xff] }
 0x27d   : > { %4723 = vmatpush1.bf16.msra.mxu0 %v6988_v62  ;;  %4886 = vmatpush1.bf16.msra.mxu1 %v6991_v63 }
 0x27e   : > { %4724 = vmatprep.subr.bf16.mxu0 %v6996_v12  ;;  %4887 = vmatprep.subr.bf16.mxu1 %v6999_v15 }
 0x280   : > { %v4400_v55 = vpop.permute.xlu1 %4399  ;;  %v4403_v56 = vpop.permute.xlu0 %4402 }
 0x281   : > { %4725 = vmatpush1.bf16.msra.mxu0 %v6994_v16  ;;  %4888 = vmatpush1.bf16.msra.mxu1 %v6997_v17 }
 0x282   : > { %4726 = vmatprep.subr.bf16.mxu0 %v7002_v22  ;;  %4889 = vmatprep.subr.bf16.mxu1 %v7005_v24  ;;  %v293_v24 = vld [vmem:[#allocation4] sm:$0xff] }
 0x283   : > { %5883 = vmatmul.mubr.msk.bf16.gmra.mrb[8].mxu0 %vm5882_vm4, %v7147_v19  ;;  %5909 = vmatmul.mubr.msk.bf16.gmra.mrb[8].mxu1 %vm5882_vm4, %v7147_v19  ;;  %vm3659_vm4 = vcmp.eq.s32.totalorder %v3617_v49, %v7426_v10 }
 0x284   : > { %3988 = vmatprep.mubr.bf16.mxu0 %v7144_v0  ;;  %4151 = vmatprep.mubr.bf16.mxu1 %v7144_v0  ;;  %vm5894_vm6 = vmpackc.low %vm3659_vm4, %vm3658_vm5  ;;  %vm4434_vm4 = vcmp.eq.s32.totalorder %v4358_v28, %v7426_v10  ;;  %v4406_v61 = vpop.permute.xlu1 %4405  ;;  %v4409_v62 = vpop.permute.xlu0 %4408 }
 0x285   : > { %4727 = vmatpush1.bf16.msra.mxu0 %v7000_v25  ;;  %4890 = vmatpush1.bf16.msra.mxu1 %v7003_v26  ;;  %v295_v25 = vld [vmem:[#allocation4 + $0x10] sm:$0xff]  ;;  %v294_v26 = vld [vmem:[#allocation4 + $0x8] sm:$0xff] }
 0x286   : > { %4728 = vmatprep.subr.bf16.mxu0 %v7008_v5  ;;  %4891 = vmatprep.subr.bf16.mxu1 %v7011_v6  ;;  %v296_v5 = vld [vmem:[#allocation4 + $0x18] sm:$0xff] }
 0x288   : > { %v4412_v63 = vpop.permute.xlu1 %4411  ;;  %v4415_v12 = vpop.permute.xlu0 %4414 }
 0x289   : > { %4729 = vmatpush1.bf16.msra.mxu0 %v7006_v21  ;;  %4892 = vmatpush1.bf16.msra.mxu1 %v7009_v34  ;;  %v299_v21 = vld [vmem:[#allocation4 + $0x30] sm:$0xff] }
 0x28a   : > { %4730 = vmatprep.subr.bf16.mxu0 %v7014_v40  ;;  %4893 = vmatprep.subr.bf16.mxu1 %v7017_v41  ;;  %v298_v40 = vld [vmem:[#allocation4 + $0x28] sm:$0xff]  ;;  %v300_v41 = vld [vmem:[#allocation4 + $0x38] sm:$0xff] }
 0x28b   : > { %5885 = vmatmul.mubr.msk.bf16.gmra.mrb[12].mxu0 %vm5884_vm7, %v7147_v19  ;;  %5911 = vmatmul.mubr.msk.bf16.gmra.mrb[12].mxu1 %vm5884_vm7, %v7147_v19  ;;  %vm3661_vm7 = vcmp.eq.s32.totalorder %v3623_v11, %v7426_v10  ;;  %v305_v11 = vld [vmem:[#allocation4 + $0x60] sm:$0xff] }
 0x28c   : > { %3998 = vmatprep.mubr.bf16.mxu0 %v7144_v0  ;;  %4161 = vmatprep.mubr.bf16.mxu1 %v7144_v0  ;;  %vm5896_vm9 = vmpackc.low %vm3661_vm7, %vm3660_vm8  ;;  %vm4437_vm7 = vcmp.eq.s32.totalorder %v4367_v33, %v7426_v10  ;;  %v4418_v15 = vpop.permute.xlu1 %4417  ;;  %v4421_v16 = vpop.permute.xlu0 %4420 }
 0x28d   : > { %4731 = vmatpush1.bf16.msra.mxu0 %v7012_v44  ;;  %4894 = vmatpush1.bf16.msra.mxu1 %v7015_v9 }
 0x28e   : > { %4732 = vmatprep.subr.bf16.mxu0 %v7020_v57  ;;  %4895 = vmatprep.subr.bf16.mxu1 %v7023_v58 }
 0x290   : > { %v4424_v17 = vpop.permute.xlu1 %4423  ;;  %v4427_v18 = vpop.permute.xlu0 %4426 }
 0x291   : > { %4733 = vmatpush1.bf16.msra.mxu0 %v7018_v30  ;;  %4896 = vmatpush1.bf16.msra.mxu1 %v7021_v31 }
 0x293   : > { %5887 = vmatmul.mubr.msk.bf16.gmra.mrb[16].mxu0 %vm5886_vm10, %v7147_v19  ;;  %5913 = vmatmul.mubr.msk.bf16.gmra.mrb[16].mxu1 %vm5886_vm10, %v7147_v19  ;;  %vm3663_vm10 = vcmp.eq.s32.totalorder %v3629_v3, %v7426_v10 }
 0x294   : > { %4008 = vmatprep.mubr.bf16.mxu0 %v7144_v0  ;;  %4171 = vmatprep.mubr.bf16.mxu1 %v7144_v0  ;;  %vm5898_vm12 = vmpackc.low %vm3663_vm10, %vm3662_vm11  ;;  %vm4439_vm10 = vcmp.eq.s32.totalorder %v4373_v45, %v7426_v10  ;;  %v4430_v20 = vpop.permute.xlu1 %4429  ;;  %v4433_v22 = vpop.permute.xlu0 %4432 }
 0x29b   : > { %5889 = vmatmul.mubr.msk.bf16.gmra.mrb[20].mxu0 %vm5888_vm13, %v7147_v19  ;;  %5915 = vmatmul.mubr.msk.bf16.gmra.mrb[20].mxu1 %vm5888_vm13, %v7147_v19  ;;  %vm3665_vm13 = vcmp.eq.s32.totalorder %v3635_v4, %v7426_v10 }
 0x29c   : > { %4018 = vmatprep.mubr.bf16.mxu0 %v7144_v0  ;;  %4181 = vmatprep.mubr.bf16.mxu1 %v7144_v0  ;;  %vm5900_vm15 = vmpackc.low %vm3665_vm13, %vm3664_vm14  ;;  %vm4441_vm13 = vcmp.eq.s32.totalorder %v4379_v51, %v7426_v10 }
 0x2a3   : > { %5891 = vmatmul.mubr.msk.bf16.gmra.mrb[24].mxu0 %vm5890_vm0, %v7147_v19  ;;  %5917 = vmatmul.mubr.msk.bf16.gmra.mrb[24].mxu1 %vm5890_vm0, %v7147_v19  ;;  %vm3667_vm0 = vcmp.eq.s32.totalorder %v3641_v8, %v7426_v10  ;;  %v306_v8 = vld [vmem:[#allocation4 + $0x68] sm:$0xff] }
 0x2a4   : > { %4028 = vmatprep.mubr.bf16.mxu0 %v7144_v0  ;;  %4191 = vmatprep.mubr.bf16.mxu1 %v7144_v0  ;;  %vm5902_vm2 = vmpackc.low %vm3667_vm0, %vm3666_vm1  ;;  %vm4443_vm0 = vcmp.eq.s32.totalorder %v4385_v59, %v7426_v10 }
 0x2ab   : > { %5893 = vmatmul.mubr.msk.bf16.gmra.mrb[28].mxu0 %vm5892_vm3, %v7147_v19  ;;  %5919 = vmatmul.mubr.msk.bf16.gmra.mrb[28].mxu1 %vm5892_vm3, %v7147_v19  ;;  %vm4435_vm3 = vcmp.eq.s32.totalorder %v4361_v14, %v7426_v10 }
 0x2ac   : > { %4038 = vmatprep.mubr.bf16.mxu0 %v7144_v0  ;;  %4201 = vmatprep.mubr.bf16.mxu1 %v7144_v0  ;;  %vm5988_vm5 = vmpackc.low %vm4435_vm3, %vm4434_vm4  ;;  %vm4445_vm3 = vcmp.eq.s32.totalorder %v4391_v27, %v7426_v10  ;;  %v311_v27 = vld [vmem:[#allocation4 + $0x90] sm:$0xff] }
 0x2b3   : > { %5895 = vmatmul.mubr.msk.bf16.gmra.mrb[32].mxu0 %vm5894_vm6, %v7147_v19  ;;  %5921 = vmatmul.mubr.msk.bf16.gmra.mrb[32].mxu1 %vm5894_vm6, %v7147_v19  ;;  %vm4436_vm6 = vcmp.eq.s32.totalorder %v4364_v29, %v7426_v10 }
 0x2b4   : > { %4048 = vmatprep.mubr.bf16.mxu0 %v7144_v0  ;;  %4211 = vmatprep.mubr.bf16.mxu1 %v7144_v0  ;;  %vm5990_vm8 = vmpackc.low %vm4437_vm7, %vm4436_vm6  ;;  %vm4447_vm6 = vcmp.eq.s32.totalorder %v4397_v54, %v7426_v10  ;;  %v312_v54 = vld [vmem:[#allocation4 + $0x98] sm:$0xff] }
 0x2bb   : > { %5897 = vmatmul.mubr.msk.bf16.gmra.mrb[36].mxu0 %vm5896_vm9, %v7147_v19  ;;  %5923 = vmatmul.mubr.msk.bf16.gmra.mrb[36].mxu1 %vm5896_vm9, %v7147_v19  ;;  %vm4438_vm9 = vcmp.eq.s32.totalorder %v4370_v35, %v7426_v10 }
 0x2bc   : > { %4058 = vmatprep.mubr.bf16.mxu0 %v7144_v0  ;;  %4221 = vmatprep.mubr.bf16.mxu1 %v7144_v0  ;;  %vm5992_vm11 = vmpackc.low %vm4439_vm10, %vm4438_vm9  ;;  %vm4449_vm9 = vcmp.eq.s32.totalorder %v4403_v56, %v7426_v10 }
 0x2c3   : > { %5899 = vmatmul.mubr.msk.bf16.gmra.mrb[40].mxu0 %vm5898_vm12, %v7147_v19  ;;  %5925 = vmatmul.mubr.msk.bf16.gmra.mrb[40].mxu1 %vm5898_vm12, %v7147_v19  ;;  %vm4440_vm12 = vcmp.eq.s32.totalorder %v4376_v47, %v7426_v10 }
 0x2c4   : > { %4068 = vmatprep.mubr.bf16.mxu0 %v7144_v0  ;;  %4231 = vmatprep.mubr.bf16.mxu1 %v7144_v0  ;;  %vm5994_vm14 = vmpackc.low %vm4441_vm13, %vm4440_vm12  ;;  %vm4451_vm12 = vcmp.eq.s32.totalorder %v4409_v62, %v7426_v10  ;;  %v315_v62 = vld [vmem:[#allocation4 + $0xb0] sm:$0xff] }
 0x2cb   : > { %5901 = vmatmul.mubr.msk.bf16.gmra.mrb[44].mxu0 %vm5900_vm15, %v7147_v19  ;;  %5927 = vmatmul.mubr.msk.bf16.gmra.mrb[44].mxu1 %vm5900_vm15, %v7147_v19  ;;  %vm4442_vm15 = vcmp.eq.s32.totalorder %v4382_v52, %v7426_v10 }
 0x2cc   : > { %4078 = vmatprep.mubr.bf16.mxu0 %v7144_v0  ;;  %4241 = vmatprep.mubr.bf16.mxu1 %v7144_v0  ;;  %vm5996_vm1 = vmpackc.low %vm4443_vm0, %vm4442_vm15  ;;  %vm4453_vm15 = vcmp.eq.s32.totalorder %v4415_v12, %v7426_v10 }
 0x2d3   : > { %5903 = vmatmul.mubr.msk.bf16.gmra.mrb[48].mxu0 %vm5902_vm2, %v7147_v19  ;;  %5929 = vmatmul.mubr.msk.bf16.gmra.mrb[48].mxu1 %vm5902_vm2, %v7147_v19  ;;  %vm4444_vm2 = vcmp.eq.s32.totalorder %v4388_v60, %v7426_v10  ;;  %v309_v60 = vld [vmem:[#allocation4 + $0x80] sm:$0xff] }
 0x2d4   : > { %4750 = vmatprep.mubr.bf16.mxu0 %v7144_v0  ;;  %4913 = vmatprep.mubr.bf16.mxu1 %v7144_v0  ;;  %vm5998_vm4 = vmpackc.low %vm4445_vm3, %vm4444_vm2  ;;  %vm4455_vm2 = vcmp.eq.s32.totalorder %v4421_v16, %v7426_v10 }
 0x2db   : > { %5989 = vmatmul.mubr.msk.bf16.vlgmr.msra.gmra.mrb[0].mxu0 %vm5988_vm5, %v7147_v19  ;;  %6015 = vmatmul.mubr.msk.bf16.vlgmr.msra.gmra.mrb[0].mxu1 %vm5988_vm5, %v7147_v19  ;;  %vm4446_vm5 = vcmp.eq.s32.totalorder %v4394_v36, %v7426_v10  ;;  %v310_v36 = vld [vmem:[#allocation4 + $0x88] sm:$0xff] }
 0x2dc   : > { %4760 = vmatprep.mubr.bf16.mxu0 %v7144_v0  ;;  %4923 = vmatprep.mubr.bf16.mxu1 %v7144_v0  ;;  %vm6000_vm7 = vmpackc.low %vm4447_vm6, %vm4446_vm5  ;;  %vm4457_vm5 = vcmp.eq.s32.totalorder %v4427_v18, %v7426_v10  ;;  %v316_v18 = vld [vmem:[#allocation4 + $0xb8] sm:$0xff] }
 0x2e3   : > { %5991 = vmatmul.mubr.msk.bf16.gmra.mrb[4].mxu0 %vm5990_vm8, %v7147_v19  ;;  %6017 = vmatmul.mubr.msk.bf16.gmra.mrb[4].mxu1 %vm5990_vm8, %v7147_v19  ;;  %vm4448_vm8 = vcmp.eq.s32.totalorder %v4400_v55, %v7426_v10 }
 0x2e4   : > { %4770 = vmatprep.mubr.bf16.mxu0 %v7144_v0  ;;  %4933 = vmatprep.mubr.bf16.mxu1 %v7144_v0  ;;  %vm6002_vm10 = vmpackc.low %vm4449_vm9, %vm4448_vm8  ;;  %vm4459_vm8 = vcmp.eq.s32.totalorder %v4433_v22, %v7426_v10 }
 0x2eb   : > { %5993 = vmatmul.mubr.msk.bf16.gmra.mrb[8].mxu0 %vm5992_vm11, %v7147_v19  ;;  %6019 = vmatmul.mubr.msk.bf16.gmra.mrb[8].mxu1 %vm5992_vm11, %v7147_v19  ;;  %vm4450_vm11 = vcmp.eq.s32.totalorder %v4406_v61, %v7426_v10  ;;  %v313_v61 = vld [vmem:[#allocation4 + $0xa0] sm:$0xff] }
 0x2ec   : > { %4780 = vmatprep.mubr.bf16.mxu0 %v7144_v0  ;;  %4943 = vmatprep.mubr.bf16.mxu1 %v7144_v0  ;;  %vm6004_vm13 = vmpackc.low %vm4451_vm12, %vm4450_vm11 }
 0x2f3   : > { %5995 = vmatmul.mubr.msk.bf16.gmra.mrb[12].mxu0 %vm5994_vm14, %v7147_v19  ;;  %6021 = vmatmul.mubr.msk.bf16.gmra.mrb[12].mxu1 %vm5994_vm14, %v7147_v19  ;;  %vm4452_vm14 = vcmp.eq.s32.totalorder %v4412_v63, %v7426_v10 }
 0x2f4   : > { %4790 = vmatprep.mubr.bf16.mxu0 %v7144_v0  ;;  %4953 = vmatprep.mubr.bf16.mxu1 %v7144_v0  ;;  %vm6006_vm0 = vmpackc.low %vm4453_vm15, %vm4452_vm14 }
 0x2fb   : > { %5997 = vmatmul.mubr.msk.bf16.gmra.mrb[16].mxu0 %vm5996_vm1, %v7147_v19  ;;  %6023 = vmatmul.mubr.msk.bf16.gmra.mrb[16].mxu1 %vm5996_vm1, %v7147_v19  ;;  %vm4454_vm1 = vcmp.eq.s32.totalorder %v4418_v15, %v7426_v10 }
 0x2fc   : > { %4800 = vmatprep.mubr.bf16.mxu0 %v7144_v0  ;;  %4963 = vmatprep.mubr.bf16.mxu1 %v7144_v0  ;;  %vm6008_vm3 = vmpackc.low %vm4455_vm2, %vm4454_vm1 }
 0x303   : > { %5999 = vmatmul.mubr.msk.bf16.gmra.mrb[20].mxu0 %vm5998_vm4, %v7147_v19  ;;  %6025 = vmatmul.mubr.msk.bf16.gmra.mrb[20].mxu1 %vm5998_vm4, %v7147_v19  ;;  %vm4456_vm4 = vcmp.eq.s32.totalorder %v4424_v17, %v7426_v10  ;;  %v314_v17 = vld [vmem:[#allocation4 + $0xa8] sm:$0xff] }
 0x304   : > { %4810 = vmatprep.mubr.bf16.mxu0 %v7144_v0  ;;  %4973 = vmatprep.mubr.bf16.mxu1 %v7144_v0  ;;  %vm6010_vm6 = vmpackc.low %vm4457_vm5, %vm4456_vm4 }
 0x30b   : > { %6001 = vmatmul.mubr.msk.bf16.gmra.mrb[24].mxu0 %vm6000_vm7, %v7147_v19  ;;  %6027 = vmatmul.mubr.msk.bf16.gmra.mrb[24].mxu1 %vm6000_vm7, %v7147_v19  ;;  %vm4458_vm7 = vcmp.eq.s32.totalorder %v4430_v20, %v7426_v10  ;;  %v297_v10 = vld [vmem:[#allocation4 + $0x20] sm:$0xff] }
 0x30c   : > { %4820 = vmatprep.mubr.bf16.mxu0 %v7144_v0  ;;  %4983 = vmatprep.mubr.bf16.mxu1 %v7144_v0  ;;  %vm6012_vm9 = vmpackc.low %vm4459_vm8, %vm4458_vm7 }
 0x313   : > { %6003 = vmatmul.mubr.msk.bf16.gmra.mrb[28].mxu0 %vm6002_vm10, %v7147_v19  ;;  %6029 = vmatmul.mubr.msk.bf16.gmra.mrb[28].mxu1 %vm6002_vm10, %v7147_v19 }
 0x314   : > { %4830 = vmatprep.mubr.bf16.mxu0 %v7144_v0  ;;  %4993 = vmatprep.mubr.bf16.mxu1 %v7144_v0 }
 0x31b   : > { %6005 = vmatmul.mubr.msk.bf16.gmra.mrb[32].mxu0 %vm6004_vm13, %v7147_v19  ;;  %6031 = vmatmul.mubr.msk.bf16.gmra.mrb[32].mxu1 %vm6004_vm13, %v7147_v19 }
 0x31c   : > { %4840 = vmatprep.mubr.bf16.mxu0 %v7144_v0  ;;  %5003 = vmatprep.mubr.bf16.mxu1 %v7144_v0 }
 0x323   : > { %6007 = vmatmul.mubr.msk.bf16.gmra.mrb[36].mxu0 %vm6006_vm0, %v7147_v19  ;;  %6033 = vmatmul.mubr.msk.bf16.gmra.mrb[36].mxu1 %vm6006_vm0, %v7147_v19 }
 0x324   : > { %4850 = vmatprep.mubr.bf16.mxu0 %v7144_v0  ;;  %5013 = vmatprep.mubr.bf16.mxu1 %v7144_v0 }
 0x32b   : > { %6009 = vmatmul.mubr.msk.bf16.gmra.mrb[40].mxu0 %vm6008_vm3, %v7147_v19  ;;  %6035 = vmatmul.mubr.msk.bf16.gmra.mrb[40].mxu1 %vm6008_vm3, %v7147_v19 }
 0x32c   : > { %4860 = vmatprep.mubr.bf16.mxu0 %v7144_v0  ;;  %5023 = vmatprep.mubr.bf16.mxu1 %v7144_v0 }
 0x333   : > { %6011 = vmatmul.mubr.msk.bf16.gmra.mrb[44].mxu0 %vm6010_vm6, %v7147_v19  ;;  %6037 = vmatmul.mubr.msk.bf16.gmra.mrb[44].mxu1 %vm6010_vm6, %v7147_v19 }
 0x334   : > { %4870 = vmatprep.mubr.bf16.mxu0 %v7144_v0  ;;  %5033 = vmatprep.mubr.bf16.mxu1 %v7144_v0 }
 0x33b   : > { %6013 = vmatmul.mubr.msk.bf16.gmra.mrb[48].mxu0 %vm6012_vm9, %v7147_v19  ;;  %6039 = vmatmul.mubr.msk.bf16.gmra.mrb[48].mxu1 %vm6012_vm9, %v7147_v19 }
 0x3ae   : > { %v4752_v0 = vpop.f32.mrb[0].mxu0  ;;  %v4915_v6 = vpop.f32.mrb[0].mxu1 }
 0x3af   : > { %v6042_v34 = vadd.f32 %v4752_v0, %v293_v24  ;;  %v6094_v32 = vadd.f32 %v4915_v6, %v295_v25  ;;  %v4754_v19 = vpop.f32.mrb[1].mxu0  ;;  %v4917_v23 = vpop.f32.mrb[1].mxu1 }
 0x3b0   : > { %v6043_v44 = vadd.f32 %v4754_v19, %v294_v26  ;;  %v6095_v9 = vadd.f32 %v4917_v23, %v296_v5  ;;  %v4756_v57 = vpop.f32.mrb[2].mxu0  ;;  %v4919_v58 = vpop.f32.mrb[2].mxu1  ;;  %v318_v19 = vld [vmem:[#allocation4 + $0xc8] sm:$0xff]  ;;  %v320_v23 = vld [vmem:[#allocation4 + $0xd8] sm:$0xff] }
 0x3b1   : > { %5148 = vst [vmem:[%s8068_s8] sm:$0xff] %v6042_v34  ;;  %5150 = vst [vmem:[%s8068_s8 + $0x10] sm:$0xff] %v6094_v32  ;;  %v6044_v30 = vadd.f32 %v4756_v57, %v297_v10  ;;  %v6096_v31 = vadd.f32 %v4919_v58, %v299_v21  ;;  %v4758_v37 = vpop.f32.mrb[3].mxu0  ;;  %v4921_v38 = vpop.f32.mrb[3].mxu1  ;;  %v317_v34 = vld [vmem:[#allocation4 + $0xc0] sm:$0xff]  ;;  %v319_v32 = vld [vmem:[#allocation4 + $0xd0] sm:$0xff] }
 0x3b2   : > { %5149 = vst [vmem:[%s8068_s8 + $0x8] sm:$0xff] %v6043_v44  ;;  %5151 = vst [vmem:[%s8068_s8 + $0x18] sm:$0xff] %v6095_v9  ;;  %v6045_v39 = vadd.f32 %v4758_v37, %v298_v40  ;;  %v6097_v42 = vadd.f32 %v4921_v38, %v300_v41  ;;  %v321_v44 = vld [vmem:[#allocation4 + $0xe0] sm:$0xff]  ;;  %v323_v9 = vld [vmem:[#allocation4 + $0xf0] sm:$0xff] }
 0x3b3   : > { %5152 = vst [vmem:[%s8068_s8 + $0x20] sm:$0xff] %v6044_v30  ;;  %5154 = vst [vmem:[%s8068_s8 + $0x30] sm:$0xff] %v6096_v31  ;;  %v322_v37 = vld [vmem:[#allocation4 + $0xe8] sm:$0xff]  ;;  %v324_v38 = vld [vmem:[#allocation4 + $0xf8] sm:$0xff] }
 0x3b4   : > { %5153 = vst [vmem:[%s8068_s8 + $0x28] sm:$0xff] %v6045_v39  ;;  %5155 = vst [vmem:[%s8068_s8 + $0x38] sm:$0xff] %v6097_v42 }
 0x3b6   : > { %v4762_v49 = vpop.f32.mrb[4].mxu0  ;;  %v4925_v50 = vpop.f32.mrb[4].mxu1 }
 0x3b7   : > { %v6046_v3 = vadd.f32 %v4762_v49, %v301_v46  ;;  %v6098_v1 = vadd.f32 %v4925_v50, %v303_v2  ;;  %v4764_v4 = vpop.f32.mrb[5].mxu0  ;;  %v4927_v7 = vpop.f32.mrb[5].mxu1 }
 0x3b8   : > { %v6047_v14 = vadd.f32 %v4764_v4, %v302_v43  ;;  %v6099_v28 = vadd.f32 %v4927_v7, %v304_v48  ;;  %v4766_v29 = vpop.f32.mrb[6].mxu0  ;;  %v4929_v33 = vpop.f32.mrb[6].mxu1  ;;  %v326_v4 = vld [vmem:[#allocation4 + $0x108] sm:$0xff]  ;;  %v328_v7 = vld [vmem:[#allocation4 + $0x118] sm:$0xff] }
 0x3b9   : > { %5156 = vst [vmem:[%s8068_s8 + $0x40] sm:$0xff] %v6046_v3  ;;  %5158 = vst [vmem:[%s8068_s8 + $0x50] sm:$0xff] %v6098_v1  ;;  %v6048_v35 = vadd.f32 %v4766_v29, %v305_v11  ;;  %v6100_v45 = vadd.f32 %v4929_v33, %v307_v53  ;;  %v4768_v47 = vpop.f32.mrb[7].mxu0  ;;  %v4931_v51 = vpop.f32.mrb[7].mxu1  ;;  %v325_v3 = vld [vmem:[#allocation4 + $0x100] sm:$0xff]  ;;  %v327_v1 = vld [vmem:[#allocation4 + $0x110] sm:$0xff] }
 0x3ba   : > { %5157 = vst [vmem:[%s8068_s8 + $0x48] sm:$0xff] %v6047_v14  ;;  %5159 = vst [vmem:[%s8068_s8 + $0x58] sm:$0xff] %v6099_v28  ;;  %v6049_v52 = vadd.f32 %v4768_v47, %v306_v8  ;;  %v6101_v59 = vadd.f32 %v4931_v51, %v308_v13  ;;  %v329_v14 = vld [vmem:[#allocation4 + $0x120] sm:$0xff]  ;;  %v331_v28 = vld [vmem:[#allocation4 + $0x130] sm:$0xff] }
 0x3bb   : > { %5160 = vst [vmem:[%s8068_s8 + $0x60] sm:$0xff] %v6048_v35  ;;  %5162 = vst [vmem:[%s8068_s8 + $0x70] sm:$0xff] %v6100_v45  ;;  %v330_v47 = vld [vmem:[#allocation4 + $0x128] sm:$0xff]  ;;  %v332_v51 = vld [vmem:[#allocation4 + $0x138] sm:$0xff] }
 0x3bc   : > { %5161 = vst [vmem:[%s8068_s8 + $0x68] sm:$0xff] %v6049_v52  ;;  %5163 = vst [vmem:[%s8068_s8 + $0x78] sm:$0xff] %v6101_v59 }
 0x3be   : > { %v4772_v55 = vpop.f32.mrb[8].mxu0  ;;  %v4935_v56 = vpop.f32.mrb[8].mxu1 }
 0x3bf   : > { %v6050_v63 = vadd.f32 %v4772_v55, %v309_v60  ;;  %v6102_v12 = vadd.f32 %v4935_v56, %v311_v27  ;;  %v4774_v15 = vpop.f32.mrb[9].mxu0  ;;  %v4937_v16 = vpop.f32.mrb[9].mxu1 }
 0x3c0   : > { %v6051_v20 = vadd.f32 %v4774_v15, %v310_v36  ;;  %v6103_v22 = vadd.f32 %v4937_v16, %v312_v54  ;;  %v4776_v24 = vpop.f32.mrb[10].mxu0  ;;  %v4939_v25 = vpop.f32.mrb[10].mxu1  ;;  %v334_v15 = vld [vmem:[#allocation4 + $0x148] sm:$0xff]  ;;  %v336_v16 = vld [vmem:[#allocation4 + $0x158] sm:$0xff] }
 0x3c1   : > { %5164 = vst [vmem:[%s8068_s8 + $0x80] sm:$0xff] %v6050_v63  ;;  %5166 = vst [vmem:[%s8068_s8 + $0x90] sm:$0xff] %v6102_v12  ;;  %v6052_v26 = vadd.f32 %v4776_v24, %v313_v61  ;;  %v6104_v5 = vadd.f32 %v4939_v25, %v315_v62  ;;  %v4778_v0 = vpop.f32.mrb[11].mxu0  ;;  %v4941_v6 = vpop.f32.mrb[11].mxu1  ;;  %v333_v63 = vld [vmem:[#allocation4 + $0x140] sm:$0xff]  ;;  %v335_v12 = vld [vmem:[#allocation4 + $0x150] sm:$0xff] }
 0x3c2   : > { %5165 = vst [vmem:[%s8068_s8 + $0x88] sm:$0xff] %v6051_v20  ;;  %5167 = vst [vmem:[%s8068_s8 + $0x98] sm:$0xff] %v6103_v22  ;;  %v6053_v10 = vadd.f32 %v4778_v0, %v314_v17  ;;  %v6105_v21 = vadd.f32 %v4941_v6, %v316_v18  ;;  %v337_v20 = vld [vmem:[#allocation4 + $0x160] sm:$0xff]  ;;  %v339_v22 = vld [vmem:[#allocation4 + $0x170] sm:$0xff] }
 0x3c3   : > { %5168 = vst [vmem:[%s8068_s8 + $0xa0] sm:$0xff] %v6052_v26  ;;  %5170 = vst [vmem:[%s8068_s8 + $0xb0] sm:$0xff] %v6104_v5  ;;  %v338_v0 = vld [vmem:[#allocation4 + $0x168] sm:$0xff]  ;;  %v340_v6 = vld [vmem:[#allocation4 + $0x178] sm:$0xff] }
 0x3c4   : > { %5169 = vst [vmem:[%s8068_s8 + $0xa8] sm:$0xff] %v6053_v10  ;;  %5171 = vst [vmem:[%s8068_s8 + $0xb8] sm:$0xff] %v6105_v21 }
 0x3c6   : > { %v4782_v40 = vpop.f32.mrb[12].mxu0  ;;  %v4945_v41 = vpop.f32.mrb[12].mxu1 }
 0x3c7   : > { %v6054_v57 = vadd.f32 %v4782_v40, %v317_v34  ;;  %v6106_v58 = vadd.f32 %v4945_v41, %v319_v32  ;;  %v4784_v30 = vpop.f32.mrb[13].mxu0  ;;  %v4947_v31 = vpop.f32.mrb[13].mxu1 }
 0x3c8   : > { %v6055_v39 = vadd.f32 %v4784_v30, %v318_v19  ;;  %v6107_v42 = vadd.f32 %v4947_v31, %v320_v23  ;;  %v4786_v46 = vpop.f32.mrb[14].mxu0  ;;  %v4949_v2 = vpop.f32.mrb[14].mxu1  ;;  %v342_v30 = vld [vmem:[#allocation4 + $0x188] sm:$0xff]  ;;  %v344_v31 = vld [vmem:[#allocation4 + $0x198] sm:$0xff] }
 0x3c9   : > { %5172 = vst [vmem:[%s8068_s8 + $0xc0] sm:$0xff] %v6054_v57  ;;  %5174 = vst [vmem:[%s8068_s8 + $0xd0] sm:$0xff] %v6106_v58  ;;  %v6056_v43 = vadd.f32 %v4786_v46, %v321_v44  ;;  %v6108_v48 = vadd.f32 %v4949_v2, %v323_v9  ;;  %v4788_v49 = vpop.f32.mrb[15].mxu0  ;;  %v4951_v50 = vpop.f32.mrb[15].mxu1  ;;  %v341_v57 = vld [vmem:[#allocation4 + $0x180] sm:$0xff]  ;;  %v343_v58 = vld [vmem:[#allocation4 + $0x190] sm:$0xff] }
 0x3ca   : > { %5173 = vst [vmem:[%s8068_s8 + $0xc8] sm:$0xff] %v6055_v39  ;;  %5175 = vst [vmem:[%s8068_s8 + $0xd8] sm:$0xff] %v6107_v42  ;;  %v6057_v11 = vadd.f32 %v4788_v49, %v322_v37  ;;  %v6109_v53 = vadd.f32 %v4951_v50, %v324_v38  ;;  %v345_v39 = vld [vmem:[#allocation4 + $0x1a0] sm:$0xff]  ;;  %v347_v42 = vld [vmem:[#allocation4 + $0x1b0] sm:$0xff] }
 0x3cb   : > { %5176 = vst [vmem:[%s8068_s8 + $0xe0] sm:$0xff] %v6056_v43  ;;  %5178 = vst [vmem:[%s8068_s8 + $0xf0] sm:$0xff] %v6108_v48  ;;  %v346_v49 = vld [vmem:[#allocation4 + $0x1a8] sm:$0xff]  ;;  %v348_v50 = vld [vmem:[#allocation4 + $0x1b8] sm:$0xff] }
 0x3cc   : > { %5177 = vst [vmem:[%s8068_s8 + $0xe8] sm:$0xff] %v6057_v11  ;;  %5179 = vst [vmem:[%s8068_s8 + $0xf8] sm:$0xff] %v6109_v53 }
 0x3ce   : > { %v4792_v8 = vpop.f32.mrb[16].mxu0  ;;  %v4955_v13 = vpop.f32.mrb[16].mxu1 }
 0x3cf   : > { %v6058_v29 = vadd.f32 %v4792_v8, %v325_v3  ;;  %v6110_v33 = vadd.f32 %v4955_v13, %v327_v1  ;;  %v4794_v35 = vpop.f32.mrb[17].mxu0  ;;  %v4957_v45 = vpop.f32.mrb[17].mxu1 }
 0x3d0   : > { %v6059_v52 = vadd.f32 %v4794_v35, %v326_v4  ;;  %v6111_v59 = vadd.f32 %v4957_v45, %v328_v7  ;;  %v4796_v60 = vpop.f32.mrb[18].mxu0  ;;  %v4959_v27 = vpop.f32.mrb[18].mxu1  ;;  %v350_v35 = vld [vmem:[#allocation4 + $0x1c8] sm:$0xff]  ;;  %v352_v45 = vld [vmem:[#allocation4 + $0x1d8] sm:$0xff] }
 0x3d1   : > { %5180 = vst [vmem:[%s8068_s8 + $0x100] sm:$0xff] %v6058_v29  ;;  %5182 = vst [vmem:[%s8068_s8 + $0x110] sm:$0xff] %v6110_v33  ;;  %v6060_v36 = vadd.f32 %v4796_v60, %v329_v14  ;;  %v6112_v54 = vadd.f32 %v4959_v27, %v331_v28  ;;  %v4798_v55 = vpop.f32.mrb[19].mxu0  ;;  %v4961_v56 = vpop.f32.mrb[19].mxu1  ;;  %v349_v29 = vld [vmem:[#allocation4 + $0x1c0] sm:$0xff]  ;;  %v351_v33 = vld [vmem:[#allocation4 + $0x1d0] sm:$0xff] }
 0x3d2   : > { %5181 = vst [vmem:[%s8068_s8 + $0x108] sm:$0xff] %v6059_v52  ;;  %5183 = vst [vmem:[%s8068_s8 + $0x118] sm:$0xff] %v6111_v59  ;;  %v6061_v61 = vadd.f32 %v4798_v55, %v330_v47  ;;  %v6113_v62 = vadd.f32 %v4961_v56, %v332_v51  ;;  %v353_v52 = vld [vmem:[#allocation4 + $0x1e0] sm:$0xff]  ;;  %v355_v59 = vld [vmem:[#allocation4 + $0x1f0] sm:$0xff] }
 0x3d3   : > { %5184 = vst [vmem:[%s8068_s8 + $0x120] sm:$0xff] %v6060_v36  ;;  %5186 = vst [vmem:[%s8068_s8 + $0x130] sm:$0xff] %v6112_v54  ;;  %v354_v55 = vld [vmem:[#allocation4 + $0x1e8] sm:$0xff]  ;;  %v356_v56 = vld [vmem:[#allocation4 + $0x1f8] sm:$0xff] }
 0x3d4   : > { %5185 = vst [vmem:[%s8068_s8 + $0x128] sm:$0xff] %v6061_v61  ;;  %5187 = vst [vmem:[%s8068_s8 + $0x138] sm:$0xff] %v6113_v62 }
 0x3d6   : > { %v4802_v17 = vpop.f32.mrb[20].mxu0  ;;  %v4965_v18 = vpop.f32.mrb[20].mxu1 }
 0x3d7   : > { %v6062_v24 = vadd.f32 %v4802_v17, %v333_v63  ;;  %v6114_v25 = vadd.f32 %v4965_v18, %v335_v12  ;;  %v4804_v26 = vpop.f32.mrb[21].mxu0  ;;  %v4967_v5 = vpop.f32.mrb[21].mxu1 }
 0x3d8   : > { %v6063_v10 = vadd.f32 %v4804_v26, %v334_v15  ;;  %v6115_v21 = vadd.f32 %v4967_v5, %v336_v16  ;;  %v4806_v34 = vpop.f32.mrb[22].mxu0  ;;  %v4969_v32 = vpop.f32.mrb[22].mxu1  ;;  %v358_v26 = vld [vmem:[#allocation4 + $0x208] sm:$0xff]  ;;  %v360_v5 = vld [vmem:[#allocation4 + $0x218] sm:$0xff] }
 0x3d9   : > { %5188 = vst [vmem:[%s8068_s8 + $0x140] sm:$0xff] %v6062_v24  ;;  %5190 = vst [vmem:[%s8068_s8 + $0x150] sm:$0xff] %v6114_v25  ;;  %v6064_v19 = vadd.f32 %v4806_v34, %v337_v20  ;;  %v6116_v23 = vadd.f32 %v4969_v32, %v339_v22  ;;  %v4808_v40 = vpop.f32.mrb[23].mxu0  ;;  %v4971_v41 = vpop.f32.mrb[23].mxu1  ;;  %v357_v24 = vld [vmem:[#allocation4 + $0x200] sm:$0xff]  ;;  %v359_v25 = vld [vmem:[#allocation4 + $0x210] sm:$0xff] }
 0x3da   : > { %5189 = vst [vmem:[%s8068_s8 + $0x148] sm:$0xff] %v6063_v10  ;;  %5191 = vst [vmem:[%s8068_s8 + $0x158] sm:$0xff] %v6115_v21  ;;  %v6065_v44 = vadd.f32 %v4808_v40, %v338_v0  ;;  %v6117_v9 = vadd.f32 %v4971_v41, %v340_v6  ;;  %v361_v10 = vld [vmem:[#allocation4 + $0x220] sm:$0xff]  ;;  %v363_v21 = vld [vmem:[#allocation4 + $0x230] sm:$0xff] }
 0x3db   : > { %5192 = vst [vmem:[%s8068_s8 + $0x160] sm:$0xff] %v6064_v19  ;;  %5194 = vst [vmem:[%s8068_s8 + $0x170] sm:$0xff] %v6116_v23  ;;  %v362_v40 = vld [vmem:[#allocation4 + $0x228] sm:$0xff]  ;;  %v364_v41 = vld [vmem:[#allocation4 + $0x238] sm:$0xff] }
 0x3dc   : > { %5193 = vst [vmem:[%s8068_s8 + $0x168] sm:$0xff] %v6065_v44  ;;  %5195 = vst [vmem:[%s8068_s8 + $0x178] sm:$0xff] %v6117_v9 }
 0x3de   : > { %v4812_v37 = vpop.f32.mrb[24].mxu0  ;;  %v4975_v38 = vpop.f32.mrb[24].mxu1 }
 0x3df   : > { %v6066_v46 = vadd.f32 %v4812_v37, %v341_v57  ;;  %v6118_v2 = vadd.f32 %v4975_v38, %v343_v58  ;;  %v4814_v43 = vpop.f32.mrb[25].mxu0  ;;  %v4977_v48 = vpop.f32.mrb[25].mxu1 }
 0x3e0   : > { %v6067_v11 = vadd.f32 %v4814_v43, %v342_v30  ;;  %v6119_v53 = vadd.f32 %v4977_v48, %v344_v31  ;;  %v4816_v3 = vpop.f32.mrb[26].mxu0  ;;  %v4979_v1 = vpop.f32.mrb[26].mxu1  ;;  %v366_v43 = vld [vmem:[#allocation4 + $0x248] sm:$0xff]  ;;  %v368_v48 = vld [vmem:[#allocation4 + $0x258] sm:$0xff] }
 0x3e1   : > { %5196 = vst [vmem:[%s8068_s8 + $0x180] sm:$0xff] %v6066_v46  ;;  %5198 = vst [vmem:[%s8068_s8 + $0x190] sm:$0xff] %v6118_v2  ;;  %v6068_v4 = vadd.f32 %v4816_v3, %v345_v39  ;;  %v6120_v7 = vadd.f32 %v4979_v1, %v347_v42  ;;  %v4818_v8 = vpop.f32.mrb[27].mxu0  ;;  %v4981_v13 = vpop.f32.mrb[27].mxu1  ;;  %v365_v46 = vld [vmem:[#allocation4 + $0x240] sm:$0xff]  ;;  %v367_v2 = vld [vmem:[#allocation4 + $0x250] sm:$0xff] }
 0x3e2   : > { %5197 = vst [vmem:[%s8068_s8 + $0x188] sm:$0xff] %v6067_v11  ;;  %5199 = vst [vmem:[%s8068_s8 + $0x198] sm:$0xff] %v6119_v53  ;;  %v6069_v14 = vadd.f32 %v4818_v8, %v346_v49  ;;  %v6121_v28 = vadd.f32 %v4981_v13, %v348_v50  ;;  %v369_v11 = vld [vmem:[#allocation4 + $0x260] sm:$0xff]  ;;  %v371_v53 = vld [vmem:[#allocation4 + $0x270] sm:$0xff] }
 0x3e3   : > { %5200 = vst [vmem:[%s8068_s8 + $0x1a0] sm:$0xff] %v6068_v4  ;;  %5202 = vst [vmem:[%s8068_s8 + $0x1b0] sm:$0xff] %v6120_v7  ;;  %v370_v8 = vld [vmem:[#allocation4 + $0x268] sm:$0xff]  ;;  %v372_v13 = vld [vmem:[#allocation4 + $0x278] sm:$0xff] }
 0x3e4   : > { %5201 = vst [vmem:[%s8068_s8 + $0x1a8] sm:$0xff] %v6069_v14  ;;  %5203 = vst [vmem:[%s8068_s8 + $0x1b8] sm:$0xff] %v6121_v28 }
 0x3e6   : > { %v4822_v47 = vpop.f32.mrb[28].mxu0  ;;  %v4985_v51 = vpop.f32.mrb[28].mxu1 }
 0x3e7   : > { %v6070_v60 = vadd.f32 %v4822_v47, %v349_v29  ;;  %v6122_v27 = vadd.f32 %v4985_v51, %v351_v33  ;;  %v4824_v36 = vpop.f32.mrb[29].mxu0  ;;  %v4987_v54 = vpop.f32.mrb[29].mxu1 }
 0x3e8   : > { %v6071_v61 = vadd.f32 %v4824_v36, %v350_v35  ;;  %v6123_v62 = vadd.f32 %v4987_v54, %v352_v45  ;;  %v4826_v63 = vpop.f32.mrb[30].mxu0  ;;  %v4989_v12 = vpop.f32.mrb[30].mxu1  ;;  %v374_v36 = vld [vmem:[#allocation4 + $0x288] sm:$0xff]  ;;  %v376_v54 = vld [vmem:[#allocation4 + $0x298] sm:$0xff] }
 0x3e9   : > { %5204 = vst [vmem:[%s8068_s8 + $0x1c0] sm:$0xff] %v6070_v60  ;;  %5206 = vst [vmem:[%s8068_s8 + $0x1d0] sm:$0xff] %v6122_v27  ;;  %v6072_v15 = vadd.f32 %v4826_v63, %v353_v52  ;;  %v6124_v16 = vadd.f32 %v4989_v12, %v355_v59  ;;  %v4828_v17 = vpop.f32.mrb[31].mxu0  ;;  %v4991_v18 = vpop.f32.mrb[31].mxu1  ;;  %v373_v60 = vld [vmem:[#allocation4 + $0x280] sm:$0xff]  ;;  %v375_v27 = vld [vmem:[#allocation4 + $0x290] sm:$0xff] }
 0x3ea   : > { %5205 = vst [vmem:[%s8068_s8 + $0x1c8] sm:$0xff] %v6071_v61  ;;  %5207 = vst [vmem:[%s8068_s8 + $0x1d8] sm:$0xff] %v6123_v62  ;;  %v6073_v20 = vadd.f32 %v4828_v17, %v354_v55  ;;  %v6125_v22 = vadd.f32 %v4991_v18, %v356_v56  ;;  %v377_v61 = vld [vmem:[#allocation4 + $0x2a0] sm:$0xff]  ;;  %v379_v62 = vld [vmem:[#allocation4 + $0x2b0] sm:$0xff] }
 0x3eb   : > { %5208 = vst [vmem:[%s8068_s8 + $0x1e0] sm:$0xff] %v6072_v15  ;;  %5210 = vst [vmem:[%s8068_s8 + $0x1f0] sm:$0xff] %v6124_v16  ;;  %v378_v17 = vld [vmem:[#allocation4 + $0x2a8] sm:$0xff]  ;;  %v380_v18 = vld [vmem:[#allocation4 + $0x2b8] sm:$0xff] }
 0x3ec   : > { %5209 = vst [vmem:[%s8068_s8 + $0x1e8] sm:$0xff] %v6073_v20  ;;  %5211 = vst [vmem:[%s8068_s8 + $0x1f8] sm:$0xff] %v6125_v22 }
 0x3ee   : > { %v4832_v0 = vpop.f32.mrb[32].mxu0  ;;  %v4995_v6 = vpop.f32.mrb[32].mxu1 }
 0x3ef   : > { %v6074_v34 = vadd.f32 %v4832_v0, %v357_v24  ;;  %v6126_v32 = vadd.f32 %v4995_v6, %v359_v25  ;;  %v4834_v19 = vpop.f32.mrb[33].mxu0  ;;  %v4997_v23 = vpop.f32.mrb[33].mxu1 }
 0x3f0   : > { %v6075_v44 = vadd.f32 %v4834_v19, %v358_v26  ;;  %v6127_v9 = vadd.f32 %v4997_v23, %v360_v5  ;;  %v4836_v57 = vpop.f32.mrb[34].mxu0  ;;  %v4999_v58 = vpop.f32.mrb[34].mxu1  ;;  %v382_v19 = vld [vmem:[#allocation4 + $0x2c8] sm:$0xff]  ;;  %v384_v23 = vld [vmem:[#allocation4 + $0x2d8] sm:$0xff] }
 0x3f1   : > { %5212 = vst [vmem:[%s8068_s8 + $0x200] sm:$0xff] %v6074_v34  ;;  %5214 = vst [vmem:[%s8068_s8 + $0x210] sm:$0xff] %v6126_v32  ;;  %v6076_v30 = vadd.f32 %v4836_v57, %v361_v10  ;;  %v6128_v31 = vadd.f32 %v4999_v58, %v363_v21  ;;  %v4838_v37 = vpop.f32.mrb[35].mxu0  ;;  %v5001_v38 = vpop.f32.mrb[35].mxu1  ;;  %v381_v34 = vld [vmem:[#allocation4 + $0x2c0] sm:$0xff]  ;;  %v383_v32 = vld [vmem:[#allocation4 + $0x2d0] sm:$0xff] }
 0x3f2   : > { %5213 = vst [vmem:[%s8068_s8 + $0x208] sm:$0xff] %v6075_v44  ;;  %5215 = vst [vmem:[%s8068_s8 + $0x218] sm:$0xff] %v6127_v9  ;;  %v6077_v39 = vadd.f32 %v4838_v37, %v362_v40  ;;  %v6129_v42 = vadd.f32 %v5001_v38, %v364_v41  ;;  %v385_v44 = vld [vmem:[#allocation4 + $0x2e0] sm:$0xff]  ;;  %v387_v9 = vld [vmem:[#allocation4 + $0x2f0] sm:$0xff] }
 0x3f3   : > { %5216 = vst [vmem:[%s8068_s8 + $0x220] sm:$0xff] %v6076_v30  ;;  %5218 = vst [vmem:[%s8068_s8 + $0x230] sm:$0xff] %v6128_v31  ;;  %v386_v37 = vld [vmem:[#allocation4 + $0x2e8] sm:$0xff]  ;;  %v388_v38 = vld [vmem:[#allocation4 + $0x2f8] sm:$0xff] }
 0x3f4   : > { %5217 = vst [vmem:[%s8068_s8 + $0x228] sm:$0xff] %v6077_v39  ;;  %5219 = vst [vmem:[%s8068_s8 + $0x238] sm:$0xff] %v6129_v42 }
 0x3f6   : > { %v4842_v49 = vpop.f32.mrb[36].mxu0  ;;  %v5005_v50 = vpop.f32.mrb[36].mxu1 }
 0x3f7   : > { %v6078_v3 = vadd.f32 %v4842_v49, %v365_v46  ;;  %v6130_v1 = vadd.f32 %v5005_v50, %v367_v2  ;;  %v4844_v4 = vpop.f32.mrb[37].mxu0  ;;  %v5007_v7 = vpop.f32.mrb[37].mxu1 }
 0x3f8   : > { %v6079_v14 = vadd.f32 %v4844_v4, %v366_v43  ;;  %v6131_v28 = vadd.f32 %v5007_v7, %v368_v48  ;;  %v4846_v29 = vpop.f32.mrb[38].mxu0  ;;  %v5009_v33 = vpop.f32.mrb[38].mxu1  ;;  %v390_v4 = vld [vmem:[#allocation4 + $0x308] sm:$0xff]  ;;  %v392_v7 = vld [vmem:[#allocation4 + $0x318] sm:$0xff] }
 0x3f9   : > { %5220 = vst [vmem:[%s8068_s8 + $0x240] sm:$0xff] %v6078_v3  ;;  %5222 = vst [vmem:[%s8068_s8 + $0x250] sm:$0xff] %v6130_v1  ;;  %v6080_v35 = vadd.f32 %v4846_v29, %v369_v11  ;;  %v6132_v45 = vadd.f32 %v5009_v33, %v371_v53  ;;  %v4848_v47 = vpop.f32.mrb[39].mxu0  ;;  %v5011_v51 = vpop.f32.mrb[39].mxu1  ;;  %v389_v3 = vld [vmem:[#allocation4 + $0x300] sm:$0xff]  ;;  %v391_v1 = vld [vmem:[#allocation4 + $0x310] sm:$0xff] }
 0x3fa   : > { %5221 = vst [vmem:[%s8068_s8 + $0x248] sm:$0xff] %v6079_v14  ;;  %5223 = vst [vmem:[%s8068_s8 + $0x258] sm:$0xff] %v6131_v28  ;;  %v6081_v52 = vadd.f32 %v4848_v47, %v370_v8  ;;  %v6133_v59 = vadd.f32 %v5011_v51, %v372_v13  ;;  %v393_v14 = vld [vmem:[#allocation4 + $0x320] sm:$0xff]  ;;  %v395_v28 = vld [vmem:[#allocation4 + $0x330] sm:$0xff] }
 0x3fb   : > { %5224 = vst [vmem:[%s8068_s8 + $0x260] sm:$0xff] %v6080_v35  ;;  %5226 = vst [vmem:[%s8068_s8 + $0x270] sm:$0xff] %v6132_v45  ;;  %v394_v47 = vld [vmem:[#allocation4 + $0x328] sm:$0xff]  ;;  %v396_v51 = vld [vmem:[#allocation4 + $0x338] sm:$0xff] }
 0x3fc   : > { %5225 = vst [vmem:[%s8068_s8 + $0x268] sm:$0xff] %v6081_v52  ;;  %5227 = vst [vmem:[%s8068_s8 + $0x278] sm:$0xff] %v6133_v59 }
 0x3fe   : > { %v4852_v55 = vpop.f32.mrb[40].mxu0  ;;  %v5015_v56 = vpop.f32.mrb[40].mxu1 }
 0x3ff   : > { %v6082_v63 = vadd.f32 %v4852_v55, %v373_v60  ;;  %v6134_v12 = vadd.f32 %v5015_v56, %v375_v27  ;;  %v4854_v15 = vpop.f32.mrb[41].mxu0  ;;  %v5017_v16 = vpop.f32.mrb[41].mxu1 }
 0x400   : > { %v6083_v20 = vadd.f32 %v4854_v15, %v374_v36  ;;  %v6135_v22 = vadd.f32 %v5017_v16, %v376_v54  ;;  %v4856_v24 = vpop.f32.mrb[42].mxu0  ;;  %v5019_v25 = vpop.f32.mrb[42].mxu1 }
 0x401   : > { %5228 = vst [vmem:[%s8068_s8 + $0x280] sm:$0xff] %v6082_v63  ;;  %5230 = vst [vmem:[%s8068_s8 + $0x290] sm:$0xff] %v6134_v12  ;;  %v6084_v26 = vadd.f32 %v4856_v24, %v377_v61  ;;  %v6136_v5 = vadd.f32 %v5019_v25, %v379_v62  ;;  %v4858_v0 = vpop.f32.mrb[43].mxu0  ;;  %v5021_v6 = vpop.f32.mrb[43].mxu1 }
 0x402   : > { %5229 = vst [vmem:[%s8068_s8 + $0x288] sm:$0xff] %v6083_v20  ;;  %5231 = vst [vmem:[%s8068_s8 + $0x298] sm:$0xff] %v6135_v22  ;;  %v6085_v10 = vadd.f32 %v4858_v0, %v378_v17  ;;  %v6137_v21 = vadd.f32 %v5021_v6, %v380_v18 }
 0x403   : > { %5232 = vst [vmem:[%s8068_s8 + $0x2a0] sm:$0xff] %v6084_v26  ;;  %5234 = vst [vmem:[%s8068_s8 + $0x2b0] sm:$0xff] %v6136_v5 }
 0x404   : > { %5233 = vst [vmem:[%s8068_s8 + $0x2a8] sm:$0xff] %v6085_v10  ;;  %5235 = vst [vmem:[%s8068_s8 + $0x2b8] sm:$0xff] %v6137_v21 }
 0x406   : > { %v4862_v40 = vpop.f32.mrb[44].mxu0  ;;  %v5025_v41 = vpop.f32.mrb[44].mxu1 }
 0x407   : > { %v6086_v57 = vadd.f32 %v4862_v40, %v381_v34  ;;  %v6138_v58 = vadd.f32 %v5025_v41, %v383_v32  ;;  %v4864_v30 = vpop.f32.mrb[45].mxu0  ;;  %v5027_v31 = vpop.f32.mrb[45].mxu1 }
 0x408   : > { %v6087_v39 = vadd.f32 %v4864_v30, %v382_v19  ;;  %v6139_v42 = vadd.f32 %v5027_v31, %v384_v23  ;;  %v4866_v46 = vpop.f32.mrb[46].mxu0  ;;  %v5029_v2 = vpop.f32.mrb[46].mxu1 }
 0x409   : > { %5236 = vst [vmem:[%s8068_s8 + $0x2c0] sm:$0xff] %v6086_v57  ;;  %5238 = vst [vmem:[%s8068_s8 + $0x2d0] sm:$0xff] %v6138_v58  ;;  %v6088_v43 = vadd.f32 %v4866_v46, %v385_v44  ;;  %v6140_v48 = vadd.f32 %v5029_v2, %v387_v9  ;;  %v4868_v49 = vpop.f32.mrb[47].mxu0  ;;  %v5031_v50 = vpop.f32.mrb[47].mxu1 }
 0x40a   : > { %5237 = vst [vmem:[%s8068_s8 + $0x2c8] sm:$0xff] %v6087_v39  ;;  %5239 = vst [vmem:[%s8068_s8 + $0x2d8] sm:$0xff] %v6139_v42  ;;  %v6089_v11 = vadd.f32 %v4868_v49, %v386_v37  ;;  %v6141_v53 = vadd.f32 %v5031_v50, %v388_v38 }
 0x40b   : > { %5240 = vst [vmem:[%s8068_s8 + $0x2e0] sm:$0xff] %v6088_v43  ;;  %5242 = vst [vmem:[%s8068_s8 + $0x2f0] sm:$0xff] %v6140_v48 }
 0x40c   : > { %5241 = vst [vmem:[%s8068_s8 + $0x2e8] sm:$0xff] %v6089_v11  ;;  %5243 = vst [vmem:[%s8068_s8 + $0x2f8] sm:$0xff] %v6141_v53 }
 0x40e   : > { %v4872_v8 = vpop.f32.mrb[48].mxu0  ;;  %v5035_v13 = vpop.f32.mrb[48].mxu1 }
 0x40f   : > { %v6090_v29 = vadd.f32 %v4872_v8, %v389_v3  ;;  %v6142_v33 = vadd.f32 %v5035_v13, %v391_v1  ;;  %v4874_v35 = vpop.f32.mrb[49].mxu0  ;;  %v5037_v45 = vpop.f32.mrb[49].mxu1 }
 0x410   : > { %v6091_v52 = vadd.f32 %v4874_v35, %v390_v4  ;;  %v6143_v59 = vadd.f32 %v5037_v45, %v392_v7  ;;  %v4876_v60 = vpop.f32.mrb[50].mxu0  ;;  %v5039_v27 = vpop.f32.mrb[50].mxu1 }
 0x411   : > { %5244 = vst [vmem:[%s8068_s8 + $0x300] sm:$0xff] %v6090_v29  ;;  %5246 = vst [vmem:[%s8068_s8 + $0x310] sm:$0xff] %v6142_v33  ;;  %v6092_v36 = vadd.f32 %v4876_v60, %v393_v14  ;;  %v6144_v54 = vadd.f32 %v5039_v27, %v395_v28  ;;  %v4878_v55 = vpop.f32.mrb[51].mxu0  ;;  %v5041_v56 = vpop.f32.mrb[51].mxu1 }
 0x412   : > { %5245 = vst [vmem:[%s8068_s8 + $0x308] sm:$0xff] %v6091_v52  ;;  %5247 = vst [vmem:[%s8068_s8 + $0x318] sm:$0xff] %v6143_v59  ;;  %v6093_v61 = vadd.f32 %v4878_v55, %v394_v47  ;;  %v6145_v62 = vadd.f32 %v5041_v56, %v396_v51 }
 0x413   : > { %5248 = vst [vmem:[%s8068_s8 + $0x320] sm:$0xff] %v6092_v36  ;;  %5250 = vst [vmem:[%s8068_s8 + $0x330] sm:$0xff] %v6144_v54 }
 0x414   : > { %5249 = vst [vmem:[%s8068_s8 + $0x328] sm:$0xff] %v6093_v61  ;;  %5251 = vst [vmem:[%s8068_s8 + $0x338] sm:$0xff] %v6145_v62 }
 0x415 PF: > { %s15_s14 = sadd.s32 1, %s7136_s14   ;;  %s8195_s12 = smov %s7132_s13 }
 0x416   : > { %p12_p6 = scmp.ge.s32.totalorder %s15_s14, 4   ;;  %s8196_s13 = smov %s8198_s16 }
 0x418   :  { %14 = sbr.rel (!%p12_p6) target bundleno = 3 (0x3), region = 77 }
 0x41f   :  { %5284 = vsyncpa [#allocation3], 1 }
 0x420   :  { %5286 = vsyncpa [#allocation3 + $0x1], 1 }
 0x421   :  { %5287 = vsyncpa [#allocation5], 1 }

</bundles_post_ra>
